<compile_context>
chip_gen: v7x
topology: tpu7x:2x2x1
jax: 0.10.0
libtpu: 0.0.40
codegen_flags: <defaults>
</compile_context>

<pallas_src>
import jax
import jax.numpy as jnp
from jax.experimental import pallas as pl
from jax.experimental.pallas import tpu as pltpu

HIDDEN = 768
EPS = 1e-12


def add_layernorm_kernel(x_ref, y_ref, w_ref, b_ref, o_ref):
    # x_ref/y_ref: (tile_rows, H) tiles; w_ref/b_ref: (1, H) f32.
    s = x_ref[...].astype(jnp.float32) + y_ref[...].astype(jnp.float32)
    inv_h = jnp.float32(1.0 / s.shape[-1])
    # One fused pass over the tile: both cross-lane reductions issued together.
    sum_s = jnp.sum(s, axis=-1, keepdims=True)
    sum_s2 = jnp.sum(s * s, axis=-1, keepdims=True)
    mean = sum_s * inv_h
    var = jnp.maximum(sum_s2 * inv_h - mean * mean, 0.0)
    inv = jax.lax.rsqrt(var + jnp.float32(EPS))
    o_ref[...] = ((s - mean) * inv * w_ref[...] + b_ref[...]).astype(o_ref.dtype)


def _pick_tile_rows(rows, hidden, itemsize):
    """Largest tile giving an even (>=2) number of grid steps within VMEM budget."""
    # 2 inputs + 1 output, double-buffered by default pipelining.
    vmem_budget = 16 * 1024 * 1024
    candidates = [tr for tr in range(8, rows + 1, 8) if rows % tr == 0]
    if not candidates:
        return rows  # fall back to a single full-extent block

    def score(tr):
        steps = rows // tr
        fits = 6 * tr * hidden * itemsize <= vmem_budget
        even_split = steps >= 2 and steps % 2 == 0  # v7x megacore balance
        return (fits, even_split, tr)

    return max(candidates, key=score)


def add_layernorm(x194, x190, weight, bias, *, tile_rows=None):
    # x194, x190: (B, S, H); weight, bias: (H,) f32.
    B, S, H = x194.shape
    assert H == HIDDEN
    rows = B * S

    if tile_rows is None:
        tile_rows = _pick_tile_rows(rows, H, jnp.dtype(x194.dtype).itemsize)
    assert rows % tile_rows == 0, "rows must be divisible by tile_rows"

    x2 = x194.reshape(rows, H)
    y2 = x190.reshape(rows, H)
    w2 = weight.astype(jnp.float32).reshape(1, H)
    b2 = bias.astype(jnp.float32).reshape(1, H)

    grid = (rows // tile_rows,)

    out = pl.pallas_call(
        add_layernorm_kernel,
        out_shape=jax.ShapeDtypeStruct((rows, H), x194.dtype),
        grid=grid,
        in_specs=[
            pl.BlockSpec((tile_rows, H), lambda i: (i, 0)),
            pl.BlockSpec((tile_rows, H), lambda i: (i, 0)),
            pl.BlockSpec((1, H), lambda i: (0, 0)),
            pl.BlockSpec((1, H), lambda i: (0, 0)),
        ],
        out_specs=pl.BlockSpec((tile_rows, H), lambda i: (i, 0)),
        compiler_params=pltpu.CompilerParams(
            dimension_semantics=("parallel",),
        ),
    )(x2, y2, w2, b2)

    return out.reshape(B, S, H)


def reference(x194, x190, weight, bias):
    s = (x194 + x190).astype(jnp.float32)
    mean = jnp.mean(s, axis=-1, keepdims=True)
    var = jnp.mean((s - mean) ** 2, axis=-1, keepdims=True)
    return (s - mean) * jax.lax.rsqrt(var + EPS) * weight + bias


if __name__ == "__main__":
    key = jax.random.PRNGKey(0)
    k1, k2 = jax.random.split(key)

    # Shapes implied by the module: (1, 384, 768)
    x194 = jax.random.normal(k1, (1, 384, HIDDEN), dtype=jnp.float32)
    x190 = jax.random.normal(k2, (1, 384, HIDDEN), dtype=jnp.float32)

    # Deterministic LayerNorm params (PyTorch default init: weight=1, bias=0)
    weight = jnp.ones((HIDDEN,), dtype=jnp.float32)
    bias = jnp.zeros((HIDDEN,), dtype=jnp.float32)

    out = add_layernorm(x194, x190, weight, bias)
    out = jax.block_until_ready(out)

    ref = reference(x194, x190, weight, bias)
    assert out.shape == (1, 384, HIDDEN)
    assert jnp.allclose(out, ref, atol=3e-5, rtol=1e-5), "mismatch vs reference"

    print("KERNEL_OK")
</pallas_src>

<mosaic_0001>
module attributes {stable_mosaic.version = 11 : i64} {
  func.func @add_layernorm_kernel(%arg0: i32, %arg1: memref<192x768xf32, #tpu.memory_space<vmem>>, %arg2: memref<192x768xf32, #tpu.memory_space<vmem>>, %arg3: memref<1x768xf32, #tpu.memory_space<vmem>>, %arg4: memref<1x768xf32, #tpu.memory_space<vmem>>, %arg5: memref<192x768xf32, #tpu.memory_space<vmem>>) attributes {dimension_semantics = [#tpu.dimension_semantics<parallel>], iteration_bounds = array<i64: 2>, scalar_prefetch = 0 : i64, scratch_operands = 0 : i64, tpu.core_type = #tpu.core_type<tc>, window_params = [{transform_indices = @transform_0, window_bounds = array<i64: 192, 768>}, {transform_indices = @transform_1, window_bounds = array<i64: 192, 768>}, {pipeline_mode = #tpu.pipeline_mode<synchronous>, transform_indices = @transform_2, window_bounds = array<i64: 1, 768>}, {pipeline_mode = #tpu.pipeline_mode<synchronous>, transform_indices = @transform_3, window_bounds = array<i64: 1, 768>}, {transform_indices = @transform_4, window_bounds = array<i64: 192, 768>}]} {
    %c0 = arith.constant 0 : index
    %c0_0 = arith.constant 0 : index
    %0 = vector.load %arg1[%c0, %c0_0] : memref<192x768xf32, #tpu.memory_space<vmem>>, vector<192x768xf32>
    %c0_1 = arith.constant 0 : index
    %c0_2 = arith.constant 0 : index
    %1 = vector.load %arg2[%c0_1, %c0_2] : memref<192x768xf32, #tpu.memory_space<vmem>>, vector<192x768xf32>
    %2 = arith.addf %0, %1 : vector<192x768xf32>
    %cst = arith.constant dense<0.000000e+00> : vector<192xf32>
    %3 = vector.multi_reduction <add>, %2, %cst [1] : vector<192x768xf32> to vector<192xf32>
    %4 = vector.shape_cast %3 : vector<192xf32> to vector<192x1xf32>
    %5 = arith.mulf %2, %2 : vector<192x768xf32>
    %cst_3 = arith.constant dense<0.000000e+00> : vector<192xf32>
    %6 = vector.multi_reduction <add>, %5, %cst_3 [1] : vector<192x768xf32> to vector<192xf32>
    %7 = vector.shape_cast %6 : vector<192xf32> to vector<192x1xf32>
    %cst_4 = arith.constant 0.00130208337 : f32
    %8 = vector.broadcast %cst_4 : f32 to vector<192x1xf32>
    %9 = arith.mulf %4, %8 : vector<192x1xf32>
    %cst_5 = arith.constant 0.00130208337 : f32
    %10 = vector.broadcast %cst_5 : f32 to vector<192x1xf32>
    %11 = arith.mulf %7, %10 : vector<192x1xf32>
    %12 = arith.mulf %9, %9 : vector<192x1xf32>
    %13 = arith.subf %11, %12 : vector<192x1xf32>
    %cst_6 = arith.constant 0.000000e+00 : f32
    %14 = vector.broadcast %cst_6 : f32 to vector<192x1xf32>
    %15 = arith.maximumf %13, %14 : vector<192x1xf32>
    %cst_7 = arith.constant 9.99999996E-13 : f32
    %16 = vector.broadcast %cst_7 : f32 to vector<192x1xf32>
    %17 = arith.addf %15, %16 : vector<192x1xf32>
    %18 = math.rsqrt %17 : vector<192x1xf32>
    %19 = vector.broadcast %9 : vector<192x1xf32> to vector<192x768xf32>
    %20 = arith.subf %2, %19 : vector<192x768xf32>
    %21 = vector.broadcast %18 : vector<192x1xf32> to vector<192x768xf32>
    %22 = arith.mulf %20, %21 : vector<192x768xf32>
    %c0_8 = arith.constant 0 : index
    %c0_9 = arith.constant 0 : index
    %23 = vector.load %arg3[%c0_8, %c0_9] : memref<1x768xf32, #tpu.memory_space<vmem>>, vector<1x768xf32>
    %24 = vector.broadcast %23 : vector<1x768xf32> to vector<192x768xf32>
    %25 = arith.mulf %22, %24 : vector<192x768xf32>
    %c0_10 = arith.constant 0 : index
    %c0_11 = arith.constant 0 : index
    %26 = vector.load %arg4[%c0_10, %c0_11] : memref<1x768xf32, #tpu.memory_space<vmem>>, vector<1x768xf32>
    %27 = vector.broadcast %26 : vector<1x768xf32> to vector<192x768xf32>
    %28 = arith.addf %25, %27 : vector<192x768xf32>
    %c0_12 = arith.constant 0 : index
    %c0_13 = arith.constant 0 : index
    %29 = vector.load %arg5[%c0_12, %c0_13] : memref<192x768xf32, #tpu.memory_space<vmem>>, vector<192x768xf32>
    tpu.vector_store %arg5[%c0_12, %c0_13], %28 {strides = array<i32>} : memref<192x768xf32, #tpu.memory_space<vmem>>, vector<192x768xf32>,
    return
  }
  func.func @transform_0(%arg0: i32) -> (i32, i32) {
    %c0_i32 = arith.constant 0 : i32
    %c0_i32_0 = arith.constant 0 : i32
    return %arg0, %c0_i32 : i32, i32
  }
  func.func @transform_1(%arg0: i32) -> (i32, i32) {
    %c0_i32 = arith.constant 0 : i32
    %c0_i32_0 = arith.constant 0 : i32
    return %arg0, %c0_i32 : i32, i32
  }
  func.func @transform_2(%arg0: i32) -> (i32, i32) {
    %c0_i32 = arith.constant 0 : i32
    %c0_i32_0 = arith.constant 0 : i32
    %c0_i32_1 = arith.constant 0 : i32
    return %c0_i32, %c0_i32_0 : i32, i32
  }
  func.func @transform_3(%arg0: i32) -> (i32, i32) {
    %c0_i32 = arith.constant 0 : i32
    %c0_i32_0 = arith.constant 0 : i32
    %c0_i32_1 = arith.constant 0 : i32
    return %c0_i32, %c0_i32_0 : i32, i32
  }
  func.func @transform_4(%arg0: i32) -> (i32, i32) {
    %c0_i32 = arith.constant 0 : i32
    %c0_i32_0 = arith.constant 0 : i32
    return %arg0, %c0_i32 : i32, i32
  }
}

</mosaic_0001>

<bundles_post_ra>
// kernel: tpu_custom_call.1
= control target key start
LH: loop header
LB: loop body
LE: loop exit
PB: predicated region body
PF: predicated region fallthrough
CT: control target
= control target key end

     0   :  { %s5634_s0 = inlined_call_operand.hbm [shape: f32[384,768], index: 0, kind: input, shape index: {}]   ;;  %s5635_s1 = inlined_call_operand.hbm [shape: f32[384,768], index: 1, kind: input, shape index: {}]   ;;  %s5636_s2 = inlined_call_operand.hbm [shape: f32[1,768], index: 2, kind: input, shape index: {}]   ;;  %s5637_s3 = inlined_call_operand.hbm [shape: f32[1,768], index: 3, kind: input, shape index: {}]   ;;  %s5638_s4 = inlined_call_operand.hbm [shape: f32[384,768], index: 4, kind: output, shape index: {}]  }
   0x1   :  { %5989 = sst [smem:[#allocation176_spill]] %s5634_s0 }
   0x2   :  { %9 = vsyncpa [#allocation3], 0 }
   0x3   :  { %11 = vsyncpa [#allocation3 + $0x1], 0 }
   0x4   :  { %12 = vsyncpa [#allocation6], 0 }
   0x5   :  { %14 = vsyncpa [#allocation6 + $0x1], 0 }
   0x6   :  { %15 = vsyncpa [#allocation9], 0 }
   0x7   :  { %16 = vsyncpa [#allocation4], 0 }
   0x8   :  { %18 = vsyncpa [#allocation4 + $0x1], 0  ;;  %s2656_s15 = smov 0   ;;  %s2658_s16 = smov 0  }
   0x9   :  { %s2660_s17 = smov 0   ;;  %s2662_s18 = smov 0  }
   0xa LB: > { %s2677_s19 = sadd.s32 4294967295, %s2620_s18   ;;  %s2280_s20 = sadd.s32 4294967294, %s2620_s18   ;;  %s2620_s18 = sphi %s2662_s18, %s6653_s18   ;;  %s2616_s17 = sphi %s2660_s17, %s6652_s17   ;;  %s2612_s16 = sphi %s2658_s16, %s6651_s16   ;;  %s2608_s15 = sphi %s2656_s15, %s6650_s15  }
   0xb   : > { %s2681_s21 = sadd.s32 1, %s2620_s18   ;;  %s31_s22 = sadd.s32 1, %s2616_s17 }
   0xc   : > { %s28_s23 = ssub.s32 %s2620_s18, %s2681_s21  ;;  %p38_p0 = scmp.ne.s32.totalorder %s2616_s17, %s2612_s16 }
   0xd   : > { %p29_p1 = scmp.eq.s32.totalorder %s28_s23, 0  ;;  %p39_p2 = scmp.eq.s32.totalorder %s2620_s18, 0 }
   0xe   : > { %p44_p3 = scmp.ne.s32.totalorder %s2612_s16, %s2608_s15  ;;  %p5639_p4 = scmp.eq.s32.totalorder %s2677_s19, 0 }
   0xf   : > { %s2693_s24 = scalar_select %p29_p1, %s2616_s17, %s31_s22  }
  0x10   : > { %p2695_p5 = por %p39_p2, %p38_p0  ;;  %p2701_p6 = por %p5639_p4, %p44_p3 }
  0x11   : > { %p136_p7 = scmp.eq.s32.totalorder %s2677_s19, 1  ;;  %p142_p8 = scmp.eq.s32.totalorder %s2280_s20, 1 }
  0x12   : > { %s5991_s26 = scalar_select %p2701_p6, 1, 0 }
  0x13   : > { %p2281_p9 = scmp.ge.s32.totalorder %s2620_s18, 1  ;;  %p149_p10 = scmp.lt.s32.totalorder %s2620_s18, 3 }
  0x14   : > { %p2708_p11 = por %p136_p7, %p38_p0  ;;  %p2712_p12 = por %p142_p8, %p44_p3 }
  0x15   : > { %p2716_p13 = pnand %p2281_p9, %p149_p10  ;;  %s2622_s30 = smov [#allocation7]  }
  0x16   : > { %s5992_s27 = scalar_select %p2708_p11, 1, 0 }
  0x17   : > { %s5993_s28 = scalar_select %p2712_p12, 1, 0 }
  0x18   : > { %s5994_s29 = scalar_select %p2716_p13, 1, 0 }
  0x19   : > { %p2313_p2 = pneg %p2716_p13  ;;  %s162_s5 = sshll.u32 %s2622_s30, 4  ;;  %s163_s5 = int_to_ptr.vmem [resolvable:$true] %s162_s5 }
  0x1a   : > { %p2333_p4 = scmp.lt.s32.totalorder %s2620_s18, 2  ;;  %p5995_p0 = scmp.eq.s32.totalorder %s2677_s19, 0 }
  0x1b   : > { %s2623_s8 = smov [#allocation8]   ;;  %s2426_s12 = scalar_lea.hbm %s5636_s2, 96 }
  0x1c   : > { %p2726_p7 = pnand %p2313_p2, %p5995_p0  ;;  %p2732_p3 = pnand %p2333_p4, %p2695_p5 }
  0x1d   : > { %s173_s9 = sshll.u32 %s2623_s8, 4  ;;  %p2427_p8 = scmp.ne.s32.totalorder %s5636_s2, %s2426_s12  ;;  %s174_s9 = int_to_ptr.vmem [resolvable:$true] %s173_s9 }
  0x1e   : > { %s5997_s7 = scalar_select %p2732_p3, 1, 0 }
  0x1f   : > { %p2428_p9 = pneg %p2726_p7  ;;  %p2433_p4 = scmp.lt.u32.totalorder %s2426_s12, %s5636_s2 }
  0x21   : > { %p2429_p10 = pnand %p2428_p9, %p2427_p8 }
  0x23   : > { %p2430_p2 = pneg %p2429_p10 }
  0x25   : > { %p2435_p5 = pnand %p2433_p4, %p2430_p2 }
  0x27   : > { %2438 = shalt.err (!%p2435_p5)
}
  0x28   : > { %s2439_s23 = scalar_lea.vmem %s163_s5, 96  ;;  %p2447_p11 = scmp.lt.s32.totalorder %s163_s5, %s163_s5 }
  0x29   : > { %p2440_p0 = scmp.ne.s32.totalorder %s163_s5, %s2439_s23  ;;  %p2448_p6 = scmp.lt.s32.totalorder %s2439_s23, %s2439_s23 }
  0x2b   : > { %p2442_p1 = pnand %p2440_p0, %p2428_p9  ;;  %p2449_p13 = por %p2448_p6, %p2447_p11 }
  0x2d   : > { %p2443_p12 = pneg %p2442_p1 }
  0x2f   : > { %p2450_p3 = pnand %p2449_p13, %p2443_p12 }
  0x31   : > { %2453 = shalt.err (!%p2450_p3)
}
  0x32   : > { %2316 = dma.hbm_to_vmem [thread:$0]  (!%p2726_p7), %s5636_s2, 96, %s163_s5, [#allocation6]  }
  0x33   : > { %s2454_s11 = scalar_lea.hbm %s5637_s3, 96 }
  0x34   : > { %p2455_p1 = scmp.ne.s32.totalorder %s5637_s3, %s2454_s11  ;;  %p2461_p12 = scmp.lt.u32.totalorder %s2454_s11, %s5637_s3 }
  0x36   : > { %p2457_p6 = pnand %p2455_p1, %p2428_p9 }
  0x38   : > { %p2458_p11 = pneg %p2457_p6 }
  0x3a   : > { %p2463_p13 = pnand %p2461_p12, %p2458_p11 }
  0x3c   : > { %2466 = shalt.err (!%p2463_p13)
}
  0x3d   : > { %s2467_s5 = scalar_lea.vmem %s174_s9, 96  ;;  %p2475_p2 = scmp.lt.s32.totalorder %s174_s9, %s174_s9 }
  0x3e   : > { %p2468_p3 = scmp.ne.s32.totalorder %s174_s9, %s2467_s5  ;;  %p2476_p4 = scmp.lt.s32.totalorder %s2467_s5, %s2467_s5 }
  0x40   : > { %p2470_p8 = pnand %p2468_p3, %p2428_p9  ;;  %p2477_p5 = por %p2476_p4, %p2475_p2 }
  0x42   : > { %p2471_p10 = pneg %p2470_p8 }
  0x44   : > { %p2478_p0 = pnand %p2477_p5, %p2471_p10 }
  0x46   : > { %2481 = shalt.err (!%p2478_p0)
}
  0x47   : > { %2319 = dma.hbm_to_vmem [thread:$0]  (!%p2726_p7), %s5637_s3, 96, %s174_s9, [#allocation9]  }
  0x48   : > { %s184_s25 = sand.u32 1, %s2616_s17   ;;  %s2334_s30 = smul.u32 18432, %s2620_s18 }
  0x49   : > { %s2780_s8 = smul.u32 1152, %s184_s25  ;;  %s5998_s0 = sld [smem:[#allocation176_spill]] }
  0x4a   : > { %s206_s14 = sand.u32 1, %s2620_s18   ;;  %s2793_s9 = scalar_lea.sflag [#allocation3], %s184_s25 }
  0x4b   : > { %s188_s12 = scalar_lea.vmem [#allocation2], %s2780_s8  ;;  %p5999_p9 = scmp.ne.s32.totalorder %s5997_s7, 0 }
  0x4c   : > { %s196_s13 = sshll.u32 %s188_s12, 4  ;;  %s2791_s13 = int_to_ptr.vmem [resolvable:$true] %s196_s13 }
  0x4d   : > { %p2484_p1 = pneg %p5999_p9 }
  0x4f   : > { %s2787_s6 = scalar_lea.hbm %s5998_s0, %s2334_s30  ;;  %s2487_s23 = scalar_lea.hbm %s5998_s0, 36864 }
  0x50   : > { %s2482_s20 = scalar_lea.hbm %s2787_s6, 18432  ;;  %p2488_p12 = scmp.lt.u32.totalorder %s2787_s6, %s5998_s0 }
  0x51   : > { %p2483_p7 = scmp.ne.s32.totalorder %s2787_s6, %s2482_s20  ;;  %p2489_p13 = scmp.lt.u32.totalorder %s2487_s23, %s2482_s20 }
  0x52   : > { %p2491_p8 = scmp.lt.u32.totalorder %s2482_s20, %s2787_s6 }
  0x53   : > { %p2485_p6 = pnand %p2484_p1, %p2483_p7  ;;  %p2490_p3 = por %p2489_p13, %p2488_p12 }
  0x55   : > { %p2486_p11 = pneg %p2485_p6  ;;  %p2492_p10 = por %p2491_p8, %p2490_p3 }
  0x57   : > { %p2493_p2 = pnand %p2492_p10, %p2486_p11 }
  0x59   : > { %2496 = shalt.err (!%p2493_p2)
}
  0x5a   : > { %s2497_s25 = scalar_lea.vmem %s2791_s13, 18432  ;;  %s2624_s12 = smov [#allocation2]  }
  0x5b   : > { %p2498_p4 = scmp.ne.s32.totalorder %s2791_s13, %s2497_s25  ;;  %s2502_s5 = sshll.u32 %s2624_s12, 4  ;;  %s2503_s5 = int_to_ptr.vmem [resolvable:$false] %s2502_s5 }
  0x5c   : > { %s2504_s22 = scalar_lea.vmem %s2503_s5, 36864  ;;  %p2505_p7 = scmp.lt.s32.totalorder %s2791_s13, %s2503_s5 }
  0x5d   : > { %p2500_p5 = pnand %p2498_p4, %p2484_p1  ;;  %p2506_p6 = scmp.lt.s32.totalorder %s2504_s22, %s2497_s25 }
  0x5f   : > { %p2501_p0 = pneg %p2500_p5  ;;  %p2507_p12 = por %p2506_p6, %p2505_p7 }
  0x61   : > { %p2508_p13 = pnand %p2507_p12, %p2501_p0 }
  0x63   : > { %2511 = shalt.err (!%p2508_p13)
}
  0x64   : > { %s2625_s20 = smov 768   ;;  %s2626_s23 = smov 48  }
  0x65   : > { %2323 = dma.hbm_to_vmem [thread:$0]  (!%p5999_p9), %s2787_s6, 18432, %s2791_s13, %s2793_s9, %s2625_s20, %s2625_s20, %s2626_s23  }
  0x66   : > { %s2829_s25 = scalar_lea.hbm %s5635_s1, %s2334_s30  ;;  %s210_s12 = scalar_lea.vmem [#allocation5], %s2780_s8 }
  0x67   : > { %s218_s5 = sshll.u32 %s210_s12, 4  ;;  %s2836_s22 = scalar_lea.sflag [#allocation6], %s206_s14  ;;  %s2832_s5 = int_to_ptr.vmem [resolvable:$true] %s218_s5 }
  0x68   : > { %s2512_s0 = scalar_lea.hbm %s2829_s25, 18432  ;;  %s2517_s13 = scalar_lea.hbm %s5635_s1, 36864 }
  0x69   : > { %p2513_p11 = scmp.ne.s32.totalorder %s2829_s25, %s2512_s0  ;;  %p2518_p10 = scmp.lt.u32.totalorder %s2829_s25, %s5635_s1 }
  0x6a   : > { %p2519_p2 = scmp.lt.u32.totalorder %s2517_s13, %s2512_s0  ;;  %p2521_p5 = scmp.lt.u32.totalorder %s2512_s0, %s2829_s25 }
  0x6b   : > { %p2515_p3 = pnand %p2513_p11, %p2484_p1 }
  0x6c   : > { %p2520_p4 = por %p2519_p2, %p2518_p10 }
  0x6d   : > { %p2516_p8 = pneg %p2515_p3 }
  0x6e   : > { %p2522_p0 = por %p2521_p5, %p2520_p4 }
  0x70   : > { %p2523_p7 = pnand %p2522_p0, %p2516_p8 }
  0x72   : > { %2526 = shalt.err (!%p2523_p7)
}
  0x73   : > { %s2527_s8 = scalar_lea.vmem %s2832_s5, 18432  ;;  %s2627_s14 = smov [#allocation5]  }
  0x74   : > { %p2528_p6 = scmp.ne.s32.totalorder %s2832_s5, %s2527_s8  ;;  %s2532_s11 = sshll.u32 %s2627_s14, 4  ;;  %s2533_s11 = int_to_ptr.vmem [resolvable:$false] %s2532_s11 }
  0x75   : > { %s2534_s12 = scalar_lea.vmem %s2533_s11, 36864  ;;  %p2535_p11 = scmp.lt.s32.totalorder %s2832_s5, %s2533_s11 }
  0x76   : > { %p2530_p12 = pnand %p2528_p6, %p2484_p1  ;;  %p2536_p3 = scmp.lt.s32.totalorder %s2534_s12, %s2527_s8 }
  0x78   : > { %p2531_p13 = pneg %p2530_p12  ;;  %p2537_p10 = por %p2536_p3, %p2535_p11 }
  0x7a   : > { %p2538_p2 = pnand %p2537_p10, %p2531_p13 }
  0x7c   : > { %2541 = shalt.err (!%p2538_p2)
}
  0x7d   : > { %2326 = dma.hbm_to_vmem [thread:$0]  (!%p5999_p9), %s2829_s25, 18432, %s2832_s5, %s2836_s22, %s2625_s20, %s2625_s20, %s2626_s23  }
  0x7e   : > { %p6000_p1 = scmp.ne.s32.totalorder %s5994_s29, 0 }
  0x80   : > { %230 = sbr.rel (%p6000_p1) target bundleno = 628 (0x274), region = 36 }
  0x87   : > { %s2868_s0 = sand.u32 1, %s2612_s16   ;;  %p6001_p8 = scmp.ne.s32.totalorder %s5991_s26, 0 }
  0x88   : > { %s2871_s6 = smul.u32 1152, %s2868_s0  ;;  %s233_s7 = scalar_lea.sflag [#allocation3], %s2868_s0 }
  0x8a   : > { %s2875_s30 = scalar_lea.vmem [#allocation2], %s2871_s6 }
  0x8b   : > { %2587 = dma.done.wait (%p6001_p8), %s233_s7, 18432  }
  0x8c   : > { %2589 = vsyncadd (%p6001_p8), %s233_s7, 4294948864  ;;  %s241_s29 = sand.u32 1, %s2677_s19   ;;  %s2883_s23 = scalar_lea.vmem [#allocation5], %s2871_s6 }
  0x8d   : > { %s242_s20 = scalar_lea.sflag [#allocation6], %s241_s29 }
  0x8e   : > { %2591 = dma.done.wait (%p6001_p8), %s242_s20, 18432  }
  0x8f   : > { %2593 = vsyncadd (%p6001_p8), %s242_s20, 4294948864  ;;  %p6002_p9 = scmp.eq.s32.totalorder %s2677_s19, 0 }
  0x91   : > { %2595 = dma.done.wait (%p6002_p9), [#allocation6], 96   ;;  %p6003_p4 = pmov %p6002_p9 }
  0x93   : > { %2597 = vsyncadd (%p6003_p4), [#allocation6], 4294967200  ;;  %p6004_p5 = pmov %p6003_p4 }
  0x94   : > { %p6005_p0 = pmov %p6003_p4 }
  0x95   : > { %2599 = dma.done.wait (%p6004_p5), [#allocation9], 96  }
  0x96   : > { %2601 = vsyncadd (%p6005_p0), [#allocation9], 4294967200  ;;  %v298_v0 = vld [vmem:[%s2875_s30 + $0x60] sm:$0xff]  ;;  %v299_v1 = vld [vmem:[%s2875_s30 + $0x68] sm:$0xff]  ;;  %s4552_s26 = scalar_lea.vmem [#allocation10], %s2871_s6  ;;  %s2338_s25 = smul.u32 18432, %s2677_s19 }
  0x97   : > { %v300_v2 = vld [vmem:[%s2875_s30 + $0x70] sm:$0xff]  ;;  %v301_v3 = vld [vmem:[%s2875_s30 + $0x78] sm:$0xff]  ;;  %v442_v4 = vld [vmem:[%s2883_s23 + $0x60] sm:$0xff]  ;;  %s2165_s19 = sshll.u32 %s4552_s26, 4  ;;  %s2151_s9 = scalar_lea.sflag [#allocation4], %s2868_s0  ;;  %s5582_s19 = int_to_ptr.vmem [resolvable:$true] %s2165_s19 }
  0x98   : > { %v443_v5 = vld [vmem:[%s2883_s23 + $0x68] sm:$0xff]  ;;  %v444_v6 = vld [vmem:[%s2883_s23 + $0x70] sm:$0xff]  ;;  %v302_v7 = vld [vmem:[%s2875_s30 + $0x80] sm:$0xff]  ;;  %v2907_v10 = vadd.f32 %v442_v4, %v298_v0  ;;  %s5580_s13 = scalar_lea.hbm %s5638_s4, %s2338_s25  ;;  %s2542_s10 = scalar_lea.vmem %s5582_s19, 18432 }
  0x99   : > { %v445_v8 = vld [vmem:[%s2883_s23 + $0x78] sm:$0xff]  ;;  %v446_v9 = vld [vmem:[%s2883_s23 + $0x80] sm:$0xff]  ;;  %v2909_v11 = vadd.f32 %v443_v5, %v299_v1  ;;  %v2911_v12 = vadd.f32 %v444_v6, %v300_v2  ;;  %v303_v13 = vld [vmem:[%s2875_s30 + $0x88] sm:$0xff]  ;;  %p2543_p7 = scmp.ne.s32.totalorder %s5582_s19, %s2542_s10  ;;  %p6647_p6 = scmp.ne.s32.totalorder %s5992_s27, 0 }
  0x9a   : > { %6006 = vst [vmem:[#allocation16_spill] sm:$0xff] %v2907_v10  ;;  %v286_v14 = vld [vmem:[%s2875_s30] sm:$0xff]  ;;  %v287_v15 = vld [vmem:[%s2875_s30 + $0x8] sm:$0xff]  ;;  %v288_v16 = vld [vmem:[%s2875_s30 + $0x10] sm:$0xff]  ;;  %v2918_v18 = vadd.f32 %v445_v8, %v301_v3  ;;  %v2924_v22 = vadd.f32 %v446_v9, %v302_v7  ;;  %v898_v6 = vmul.f32 %v2907_v10, %v2907_v10  ;;  %s2628_s8 = smov [#allocation10]  }
  0x9b   : > { %6007 = vst [vmem:[#allocation17_spill] sm:$0xff] %v2909_v11  ;;  %6008 = vst [vmem:[#allocation18_spill] sm:$0xff] %v2911_v12  ;;  %v447_v17 = vld [vmem:[%s2883_s23 + $0x88] sm:$0xff]  ;;  %v732_v19 = vadd.f32 %v2909_v11, %v2907_v10  ;;  %v289_v20 = vld [vmem:[%s2875_s30 + $0x18] sm:$0xff]  ;;  %p2544_p12 = pnand %p2543_p7, %p6647_p6  ;;  %s2546_s14 = sshll.u32 %s2628_s8, 4  ;;  %s2547_s14 = int_to_ptr.vmem [resolvable:$false] %s2546_s14 }
  0x9c   : > { %6009 = vst [vmem:[#allocation19_spill] sm:$0xff] %v2918_v18  ;;  %v290_v21 = vld [vmem:[%s2875_s30 + $0x20] sm:$0xff]  ;;  %6010 = vst [vmem:[#allocation20_spill] sm:$0xff] %v2924_v22  ;;  %v431_v24 = vld [vmem:[%s2883_s23 + $0x8] sm:$0xff]  ;;  %v2942_v36 = vadd.f32 %v447_v17, %v303_v13  ;;  %s2548_s11 = scalar_lea.vmem %s2547_s14, 36864  ;;  %p2549_p11 = scmp.lt.s32.totalorder %s5582_s19, %s2547_s14 }
  0x9d   : > { %v430_v23 = vld [vmem:[%s2883_s23] sm:$0xff]  ;;  %v432_v25 = vld [vmem:[%s2883_s23 + $0x10] sm:$0xff]  ;;  %v733_v26 = vadd.f32 %v732_v19, %v2911_v12  ;;  %v291_v27 = vld [vmem:[%s2875_s30 + $0x28] sm:$0xff]  ;;  %v2935_v31 = vadd.f32 %v431_v24, %v287_v15  ;;  %v899_v24 = vmul.f32 %v2909_v11, %v2909_v11  ;;  %p2545_p13 = pneg %p2544_p12  ;;  %p2550_p3 = scmp.lt.s32.totalorder %s2548_s11, %s2542_s10 }
  0x9e   : > { %v433_v28 = vld [vmem:[%s2883_s23 + $0x18] sm:$0xff]  ;;  %v434_v29 = vld [vmem:[%s2883_s23 + $0x20] sm:$0xff]  ;;  %v2933_v30 = vadd.f32 %v430_v23, %v286_v14  ;;  %v2937_v32 = vadd.f32 %v432_v25, %v288_v16  ;;  %v435_v33 = vld [vmem:[%s2883_s23 + $0x28] sm:$0xff]  ;;  %6014 = vst [vmem:[#allocation24_spill] sm:$0xff] %v2942_v36  ;;  %v3009_v25 = vmul.f32 %v2911_v12, %v2911_v12 }
  0x9f   : > { %6012 = vst [vmem:[#allocation22_spill] sm:$0xff] %v2935_v31  ;;  %v304_v34 = vld [vmem:[%s2875_s30 + $0x90] sm:$0xff]  ;;  %v305_v35 = vld [vmem:[%s2875_s30 + $0x98] sm:$0xff]  ;;  %v734_v37 = vadd.f32 %v733_v26, %v2918_v18  ;;  %v2945_v38 = vadd.f32 %v433_v28, %v289_v20  ;;  %v306_v40 = vld [vmem:[%s2875_s30 + $0xa0] sm:$0xff]  ;;  %v2952_v43 = vadd.f32 %v434_v29, %v290_v21  ;;  %v2966_v54 = vadd.f32 %v435_v33, %v291_v27  ;;  %p2551_p10 = por %p2550_p3, %p2549_p11 }
  0xa0   : > { %6011 = vst [vmem:[#allocation21_spill] sm:$0xff] %v2933_v30  ;;  %6013 = vst [vmem:[#allocation23_spill] sm:$0xff] %v2937_v32  ;;  %v718_v39 = vadd.f32 %v2935_v31, %v2933_v30  ;;  %v307_v41 = vld [vmem:[%s2875_s30 + $0xa8] sm:$0xff]  ;;  %v308_v42 = vld [vmem:[%s2875_s30 + $0xb0] sm:$0xff] }
  0xa1   : > { %6015 = vst [vmem:[#allocation25_spill] sm:$0xff] %v2945_v38  ;;  %6016 = vst [vmem:[#allocation26_spill] sm:$0xff] %v2952_v43  ;;  %v448_v44 = vld [vmem:[%s2883_s23 + $0x90] sm:$0xff]  ;;  %v449_v45 = vld [vmem:[%s2883_s23 + $0x98] sm:$0xff]  ;;  %v735_v47 = vadd.f32 %v734_v37, %v2924_v22  ;;  %p2552_p2 = pnand %p2551_p10, %p2545_p13 }
  0xa2   : > { %v450_v46 = vld [vmem:[%s2883_s23 + $0xa0] sm:$0xff]  ;;  %v719_v48 = vadd.f32 %v718_v39, %v2937_v32  ;;  %v309_v49 = vld [vmem:[%s2875_s30 + $0xb8] sm:$0xff]  ;;  %v451_v50 = vld [vmem:[%s2883_s23 + $0xa8] sm:$0xff]  ;;  %v2962_v52 = vadd.f32 %v448_v44, %v304_v34  ;;  %v2964_v53 = vadd.f32 %v449_v45, %v305_v35  ;;  %6019 = vst [vmem:[#allocation29_spill] sm:$0xff] %v2966_v54  ;;  %v3031_v44 = vmul.f32 %v2924_v22, %v2924_v22 }
  0xa3   : > { %v452_v51 = vld [vmem:[%s2883_s23 + $0xb0] sm:$0xff]  ;;  %v453_v55 = vld [vmem:[%s2883_s23 + $0xb8] sm:$0xff]  ;;  %v2969_v56 = vadd.f32 %v450_v46, %v306_v40  ;;  %v736_v59 = vadd.f32 %v735_v47, %v2942_v36  ;;  %v2975_v61 = vadd.f32 %v451_v50, %v307_v41  ;;  %v294_v63 = vld [vmem:[%s2875_s30 + $0x40] sm:$0xff]  ;;  %v3035_v45 = vmul.f32 %v2942_v36, %v2942_v36 }
  0xa4   : > { %6017 = vst [vmem:[#allocation27_spill] sm:$0xff] %v2962_v52  ;;  %6018 = vst [vmem:[#allocation28_spill] sm:$0xff] %v2964_v53  ;;  %v292_v57 = vld [vmem:[%s2875_s30 + $0x30] sm:$0xff]  ;;  %v293_v58 = vld [vmem:[%s2875_s30 + $0x38] sm:$0xff]  ;;  %v720_v60 = vadd.f32 %v719_v48, %v2945_v38  ;;  %v739_v62 = vadd.f32 %v2964_v53, %v2962_v52  ;;  %v2982_v2 = vadd.f32 %v452_v51, %v308_v42 }
  0xa5   : > { %6020 = vst [vmem:[#allocation30_spill] sm:$0xff] %v2969_v56  ;;  %6021 = vst [vmem:[#allocation31_spill] sm:$0xff] %v2975_v61  ;;  %v295_v0 = vld [vmem:[%s2875_s30 + $0x48] sm:$0xff]  ;;  %v296_v1 = vld [vmem:[%s2875_s30 + $0x50] sm:$0xff]  ;;  %737 = vadd.xlane.f32.xlu1 %v736_v59  ;;  %v2998_v17 = vadd.f32 %v453_v55, %v309_v49  ;;  %v3027_v42 = vmul.f32 %v2918_v18, %v2918_v18 }
  0xa6   : > { %6022 = vst [vmem:[#allocation32_spill] sm:$0xff] %v2982_v2  ;;  %v436_v3 = vld [vmem:[%s2883_s23 + $0x30] sm:$0xff]  ;;  %v437_v4 = vld [vmem:[%s2883_s23 + $0x38] sm:$0xff]  ;;  %v438_v5 = vld [vmem:[%s2883_s23 + $0x40] sm:$0xff]  ;;  %v721_v7 = vadd.f32 %v720_v60, %v2952_v43  ;;  %v740_v8 = vadd.f32 %v739_v62, %v2969_v56 }
  0xa7   : > { %v297_v9 = vld [vmem:[%s2875_s30 + $0x58] sm:$0xff]  ;;  %v439_v13 = vld [vmem:[%s2883_s23 + $0x48] sm:$0xff]  ;;  %v440_v14 = vld [vmem:[%s2883_s23 + $0x50] sm:$0xff]  ;;  %v2994_v15 = vadd.f32 %v436_v3, %v292_v57  ;;  %v2996_v16 = vadd.f32 %v437_v4, %v293_v58  ;;  %6025 = vst [vmem:[#allocation35_spill] sm:$0xff] %v2998_v17  ;;  %v3001_v20 = vadd.f32 %v438_v5, %v294_v63  ;;  %v886_v63 = vmul.f32 %v2933_v30, %v2933_v30 }
  0xa8   : > { %v441_v19 = vld [vmem:[%s2883_s23 + $0x58] sm:$0xff]  ;;  %v316_v21 = vld [vmem:[%s2875_s30 + $0xf0] sm:$0xff]  ;;  %v722_v26 = vadd.f32 %v721_v7, %v2966_v54  ;;  %v741_v27 = vadd.f32 %v740_v8, %v2975_v61  ;;  %v3013_v28 = vadd.f32 %v439_v13, %v295_v0  ;;  %v318_v33 = vld [vmem:[%s2875_s30 + $0x100] sm:$0xff]  ;;  %v3020_v37 = vadd.f32 %v440_v14, %v296_v1 }
  0xa9   : > { %6023 = vst [vmem:[#allocation33_spill] sm:$0xff] %v2994_v15  ;;  %6024 = vst [vmem:[#allocation34_spill] sm:$0xff] %v2996_v16  ;;  %v317_v23 = vld [vmem:[%s2875_s30 + $0xf8] sm:$0xff]  ;;  %v725_v29 = vadd.f32 %v2996_v16, %v2994_v15  ;;  %v319_v34 = vld [vmem:[%s2875_s30 + $0x108] sm:$0xff]  ;;  %v3046_v57 = vadd.f32 %v441_v19, %v297_v9  ;;  %v3055_v0 = vadd.f32 %v899_v24, %v898_v6 }
  0xaa   : > { %6026 = vst [vmem:[#allocation36_spill] sm:$0xff] %v3001_v20  ;;  %6027 = vst [vmem:[#allocation37_spill] sm:$0xff] %v3013_v28  ;;  %v320_v35 = vld [vmem:[%s2875_s30 + $0x110] sm:$0xff]  ;;  %v461_v40 = vld [vmem:[%s2883_s23 + $0xf8] sm:$0xff]  ;;  %723 = vadd.xlane.f32.xlu0 %v722_v26  ;;  %v742_v46 = vadd.f32 %v741_v27, %v2982_v2  ;;  %v3079_v24 = vmul.f32 %v2945_v38, %v2945_v38  ;;  %v3189_v12 = vmul.f32 %v3013_v28, %v3013_v28 }
  0xab   : > { %6028 = vst [vmem:[#allocation38_spill] sm:$0xff] %v3020_v37  ;;  %v460_v39 = vld [vmem:[%s2883_s23 + $0xf0] sm:$0xff]  ;;  %v462_v41 = vld [vmem:[%s2883_s23 + $0x100] sm:$0xff]  ;;  %v726_v47 = vadd.f32 %v725_v29, %v3001_v20  ;;  %v321_v48 = vld [vmem:[%s2875_s30 + $0x118] sm:$0xff]  ;;  %v3044_v55 = vadd.f32 %v461_v40, %v317_v23  ;;  %v3075_v23 = vmul.f32 %v2937_v32, %v2937_v32  ;;  %v3145_v32 = vmul.f32 %v2969_v56, %v2969_v56 }
  0xac   : > { %v463_v49 = vld [vmem:[%s2883_s23 + $0x108] sm:$0xff]  ;;  %v464_v50 = vld [vmem:[%s2883_s23 + $0x110] sm:$0xff]  ;;  %v3042_v51 = vadd.f32 %v460_v39, %v316_v21  ;;  %6031 = vst [vmem:[#allocation41_spill] sm:$0xff] %v3046_v57  ;;  %v465_v58 = vld [vmem:[%s2883_s23 + $0x118] sm:$0xff]  ;;  %v3049_v59 = vadd.f32 %v462_v41, %v318_v33  ;;  %v743_v1 = vadd.f32 %v742_v46, %v2998_v17  ;;  %v887_v21 = vmul.f32 %v2935_v31, %v2935_v31 }
  0xad   : > { %6030 = vst [vmem:[#allocation40_spill] sm:$0xff] %v3044_v55  ;;  %v310_v60 = vld [vmem:[%s2875_s30 + $0xc0] sm:$0xff]  ;;  %v311_v62 = vld [vmem:[%s2875_s30 + $0xc8] sm:$0xff]  ;;  %v727_v3 = vadd.f32 %v726_v47, %v3013_v28  ;;  %v3059_v4 = vadd.f32 %v463_v49, %v319_v34  ;;  %v312_v7 = vld [vmem:[%s2875_s30 + $0xd0] sm:$0xff]  ;;  %v3066_v13 = vadd.f32 %v464_v50, %v320_v35  ;;  %v3090_v40 = vadd.f32 %v465_v58, %v321_v48 }
  0xae   : > { %6029 = vst [vmem:[#allocation39_spill] sm:$0xff] %v3042_v51  ;;  %6032 = vst [vmem:[#allocation42_spill] sm:$0xff] %v3049_v59  ;;  %v753_v5 = vadd.f32 %v3044_v55, %v3042_v51  ;;  %v313_v8 = vld [vmem:[%s2875_s30 + $0xd8] sm:$0xff]  ;;  %v314_v9 = vld [vmem:[%s2875_s30 + $0xe0] sm:$0xff]  ;;  %744 = vadd.xlane.f32.xlu1 %v743_v1  ;;  %v3099_v50 = vmul.f32 %v2952_v43, %v2952_v43 }
  0xaf   : > { %6033 = vst [vmem:[#allocation43_spill] sm:$0xff] %v3059_v4  ;;  %6034 = vst [vmem:[#allocation44_spill] sm:$0xff] %v3066_v13  ;;  %v454_v6 = vld [vmem:[%s2883_s23 + $0xc0] sm:$0xff]  ;;  %v455_v14 = vld [vmem:[%s2883_s23 + $0xc8] sm:$0xff]  ;;  %v728_v26 = vadd.f32 %v727_v3, %v3020_v37 }
  0xb0   : > { %v456_v19 = vld [vmem:[%s2883_s23 + $0xd0] sm:$0xff]  ;;  %v754_v27 = vadd.f32 %v753_v5, %v3049_v59  ;;  %v315_v29 = vld [vmem:[%s2875_s30 + $0xe8] sm:$0xff]  ;;  %v457_v33 = vld [vmem:[%s2883_s23 + $0xd8] sm:$0xff]  ;;  %v3086_v35 = vadd.f32 %v454_v6, %v310_v60  ;;  %v3088_v39 = vadd.f32 %v455_v14, %v311_v62  ;;  %6037 = vst [vmem:[#allocation47_spill] sm:$0xff] %v3090_v40  ;;  %v3103_v60 = vmul.f32 %v2966_v54, %v2966_v54 }
  0xb1   : > { %v458_v34 = vld [vmem:[%s2883_s23 + $0xe0] sm:$0xff]  ;;  %v459_v41 = vld [vmem:[%s2883_s23 + $0xe8] sm:$0xff]  ;;  %v3093_v46 = vadd.f32 %v456_v19, %v312_v7  ;;  %v328_v47 = vld [vmem:[%s2875_s30 + $0x150] sm:$0xff]  ;;  %v729_v62 = vadd.f32 %v728_v26, %v3046_v57  ;;  %v3107_v58 = vadd.f32 %v457_v33, %v313_v8  ;;  %v3121_v8 = vmul.f32 %v2962_v52, %v2962_v52 }
  0xb2   : > { %6035 = vst [vmem:[#allocation45_spill] sm:$0xff] %v3086_v35  ;;  %6036 = vst [vmem:[#allocation46_spill] sm:$0xff] %v3088_v39  ;;  %v329_v49 = vld [vmem:[%s2875_s30 + $0x158] sm:$0xff]  ;;  %v755_v48 = vadd.f32 %v754_v27, %v3059_v4  ;;  %v746_v1 = vadd.f32 %v3088_v39, %v3086_v35  ;;  %v330_v3 = vld [vmem:[%s2875_s30 + $0x160] sm:$0xff]  ;;  %v3114_v6 = vadd.f32 %v458_v34, %v314_v9 }
  0xb3   : > { %6038 = vst [vmem:[#allocation48_spill] sm:$0xff] %v3093_v46  ;;  %6039 = vst [vmem:[#allocation49_spill] sm:$0xff] %v3107_v58  ;;  %v331_v5 = vld [vmem:[%s2875_s30 + $0x168] sm:$0xff]  ;;  %v332_v7 = vld [vmem:[%s2875_s30 + $0x170] sm:$0xff]  ;;  %v1030_v27 = vadd.f32 %v887_v21, %v886_v63  ;;  %v3125_v33 = vmul.f32 %v2964_v53, %v2964_v53  ;;  %730 = vadd.xlane.f32.xlu0 %v729_v62  ;;  %v3136_v52 = vadd.f32 %v459_v41, %v315_v29 }
  0xb4   : > { %6040 = vst [vmem:[#allocation50_spill] sm:$0xff] %v3114_v6  ;;  %v472_v14 = vld [vmem:[%s2883_s23 + $0x150] sm:$0xff]  ;;  %v473_v19 = vld [vmem:[%s2883_s23 + $0x158] sm:$0xff]  ;;  %v474_v26 = vld [vmem:[%s2883_s23 + $0x160] sm:$0xff]  ;;  %v756_v54 = vadd.f32 %v755_v48, %v3066_v13  ;;  %v747_v9 = vadd.f32 %v746_v1, %v3093_v46 }
  0xb5   : > { %v333_v34 = vld [vmem:[%s2875_s30 + $0x178] sm:$0xff]  ;;  %v475_v43 = vld [vmem:[%s2883_s23 + $0x168] sm:$0xff]  ;;  %v476_v38 = vld [vmem:[%s2883_s23 + $0x170] sm:$0xff]  ;;  %v3132_v63 = vadd.f32 %v472_v14, %v328_v47  ;;  %v3134_v21 = vadd.f32 %v473_v19, %v329_v49  ;;  %6043 = vst [vmem:[#allocation53_spill] sm:$0xff] %v3136_v52  ;;  %v3139_v62 = vadd.f32 %v474_v26, %v330_v3  ;;  %v3149_v47 = vmul.f32 %v2975_v61, %v2975_v61 }
  0xb6   : > { %v477_v53 = vld [vmem:[%s2883_s23 + $0x178] sm:$0xff]  ;;  %v322_v48 = vld [vmem:[%s2875_s30 + $0x120] sm:$0xff]  ;;  %v323_v1 = vld [vmem:[%s2875_s30 + $0x128] sm:$0xff]  ;;  %v757_v49 = vadd.f32 %v756_v54, %v3090_v40  ;;  %v748_v29 = vadd.f32 %v747_v9, %v3107_v58  ;;  %v3153_v41 = vadd.f32 %v475_v43, %v331_v5  ;;  %v3160_v56 = vadd.f32 %v476_v38, %v332_v7 }
  0xb7   : > { %6041 = vst [vmem:[#allocation51_spill] sm:$0xff] %v3132_v63  ;;  %6042 = vst [vmem:[#allocation52_spill] sm:$0xff] %v3134_v21  ;;  %v767_v3 = vadd.f32 %v3134_v21, %v3132_v63  ;;  %v324_v14 = vld [vmem:[%s2875_s30 + $0x130] sm:$0xff]  ;;  %v325_v19 = vld [vmem:[%s2875_s30 + $0x138] sm:$0xff]  ;;  %v892_v43 = vmul.f32 %v2994_v15, %v2994_v15  ;;  %v893_v5 = vmul.f32 %v2996_v16, %v2996_v16 }
  0xb8   : > { %6044 = vst [vmem:[#allocation54_spill] sm:$0xff] %v3139_v62  ;;  %6045 = vst [vmem:[#allocation55_spill] sm:$0xff] %v3153_v41  ;;  %v326_v26 = vld [vmem:[%s2875_s30 + $0x140] sm:$0xff]  ;;  %v467_v31 = vld [vmem:[%s2883_s23 + $0x128] sm:$0xff]  ;;  %v894_v9 = vmul.f32 %v3001_v20, %v3001_v20  ;;  %758 = vadd.xlane.f32.xlu1 %v757_v49  ;;  %v749_v30 = vadd.f32 %v748_v29, %v3114_v6  ;;  %v3180_v16 = vadd.f32 %v477_v53, %v333_v34 }
  0xb9   : > { %6046 = vst [vmem:[#allocation56_spill] sm:$0xff] %v3160_v56  ;;  %v466_v61 = vld [vmem:[%s2883_s23 + $0x120] sm:$0xff]  ;;  %v468_v54 = vld [vmem:[%s2883_s23 + $0x130] sm:$0xff]  ;;  %v768_v38 = vadd.f32 %v767_v3, %v3139_v62  ;;  %v327_v7 = vld [vmem:[%s2875_s30 + $0x148] sm:$0xff]  ;;  %v3178_v15 = vadd.f32 %v467_v31, %v323_v1 }
  0xba   : > { %v469_v36 = vld [vmem:[%s2883_s23 + $0x138] sm:$0xff]  ;;  %v470_v22 = vld [vmem:[%s2883_s23 + $0x140] sm:$0xff]  ;;  %v3176_v18 = vadd.f32 %v466_v61, %v322_v48  ;;  %6049 = vst [vmem:[#allocation59_spill] sm:$0xff] %v3180_v16  ;;  %v471_v20 = vld [vmem:[%s2883_s23 + $0x148] sm:$0xff]  ;;  %v3183_v49 = vadd.f32 %v468_v54, %v324_v14  ;;  %v3193_v61 = vmul.f32 %v3020_v37, %v3020_v37  ;;  %v750_v31 = vadd.f32 %v749_v30, %v3136_v52 }
  0xbb   : > { %6048 = vst [vmem:[#allocation58_spill] sm:$0xff] %v3178_v15  ;;  %v340_v29 = vld [vmem:[%s2875_s30 + $0x1b0] sm:$0xff]  ;;  %v341_v3 = vld [vmem:[%s2875_s30 + $0x1b8] sm:$0xff]  ;;  %v769_v53 = vadd.f32 %v768_v38, %v3153_v41  ;;  %v3197_v34 = vadd.f32 %v469_v36, %v325_v19  ;;  %v342_v1 = vld [vmem:[%s2875_s30 + $0x1c0] sm:$0xff]  ;;  %v3204_v28 = vadd.f32 %v470_v22, %v326_v26  ;;  %v3211_v36 = vmul.f32 %v3046_v57, %v3046_v57 }
  0xbc   : > { %6047 = vst [vmem:[#allocation57_spill] sm:$0xff] %v3176_v18  ;;  %6050 = vst [vmem:[#allocation60_spill] sm:$0xff] %v3183_v49  ;;  %v760_v48 = vadd.f32 %v3178_v15, %v3176_v18  ;;  %v343_v14 = vld [vmem:[%s2875_s30 + $0x1c8] sm:$0xff]  ;;  %v344_v54 = vld [vmem:[%s2875_s30 + $0x1d0] sm:$0xff]  ;;  %v1037_v19 = vadd.f32 %v893_v5, %v892_v43  ;;  %v1031_v38 = vadd.f32 %v1030_v27, %v3075_v23  ;;  %751 = vadd.xlane.f32.xlu0 %v750_v31 }
  0xbd   : > { %6051 = vst [vmem:[#allocation61_spill] sm:$0xff] %v3197_v34  ;;  %6052 = vst [vmem:[#allocation62_spill] sm:$0xff] %v3204_v28  ;;  %v484_v37 = vld [vmem:[%s2883_s23 + $0x1b0] sm:$0xff]  ;;  %v485_v11 = vld [vmem:[%s2883_s23 + $0x1b8] sm:$0xff]  ;;  %v770_v10 = vadd.f32 %v769_v53, %v3160_v56  ;;  %v3223_v57 = vadd.f32 %v471_v20, %v327_v7  ;;  %v3232_v31 = vmul.f32 %v2982_v2, %v2982_v2 }
  0xbe   : > { %v486_v30 = vld [vmem:[%s2883_s23 + $0x1c0] sm:$0xff]  ;;  %v761_v15 = vadd.f32 %v760_v48, %v3183_v49  ;;  %v345_v22 = vld [vmem:[%s2875_s30 + $0x1d8] sm:$0xff]  ;;  %v487_v26 = vld [vmem:[%s2883_s23 + $0x1c8] sm:$0xff]  ;;  %v3219_v41 = vadd.f32 %v484_v37, %v340_v29  ;;  %v3221_v62 = vadd.f32 %v485_v11, %v341_v3  ;;  %v3236_v37 = vmul.f32 %v2998_v17, %v2998_v17 }
  0xbf   : > { %v488_v18 = vld [vmem:[%s2883_s23 + $0x1d0] sm:$0xff]  ;;  %6055 = vst [vmem:[#allocation65_spill] sm:$0xff] %v3223_v57  ;;  %v489_v23 = vld [vmem:[%s2883_s23 + $0x1d8] sm:$0xff]  ;;  %v3226_v27 = vadd.f32 %v486_v30, %v342_v1  ;;  %v334_v43 = vld [vmem:[%s2875_s30 + $0x180] sm:$0xff]  ;;  %v771_v11 = vadd.f32 %v770_v10, %v3180_v16  ;;  %v3240_v7 = vadd.f32 %v487_v26, %v343_v14  ;;  %v1051_v14 = vadd.f32 %v3125_v33, %v3121_v8 }
  0xc0   : > { %6053 = vst [vmem:[#allocation63_spill] sm:$0xff] %v3219_v41  ;;  %6054 = vst [vmem:[#allocation64_spill] sm:$0xff] %v3221_v62  ;;  %v335_v5 = vld [vmem:[%s2875_s30 + $0x188] sm:$0xff]  ;;  %v762_v20 = vadd.f32 %v761_v15, %v3197_v34  ;;  %v781_v29 = vadd.f32 %v3221_v62, %v3219_v41  ;;  %v336_v3 = vld [vmem:[%s2875_s30 + $0x190] sm:$0xff]  ;;  %v3247_v1 = vadd.f32 %v488_v18, %v344_v54 }
  0xc1   : > { %6056 = vst [vmem:[#allocation66_spill] sm:$0xff] %v3226_v27  ;;  %6057 = vst [vmem:[#allocation67_spill] sm:$0xff] %v3240_v7  ;;  %v337_v53 = vld [vmem:[%s2875_s30 + $0x198] sm:$0xff]  ;;  %v338_v48 = vld [vmem:[%s2875_s30 + $0x1a0] sm:$0xff]  ;;  %v1038_v15 = vadd.f32 %v1037_v19, %v894_v9  ;;  %v1045_v26 = vadd.f32 %v3055_v0, %v3009_v25  ;;  %772 = vadd.xlane.f32.xlu1 %v771_v11  ;;  %v3265_v8 = vadd.f32 %v489_v23, %v345_v22 }
  0xc2   : > { %6058 = vst [vmem:[#allocation68_spill] sm:$0xff] %v3247_v1  ;;  %v478_v30 = vld [vmem:[%s2883_s23 + $0x180] sm:$0xff]  ;;  %v479_v17 = vld [vmem:[%s2883_s23 + $0x188] sm:$0xff]  ;;  %v480_v10 = vld [vmem:[%s2883_s23 + $0x190] sm:$0xff]  ;;  %v763_v2 = vadd.f32 %v762_v20, %v3204_v28  ;;  %v782_v62 = vadd.f32 %v781_v29, %v3226_v27  ;;  %v1032_v11 = vadd.f32 %v1031_v38, %v3079_v24  ;;  %v3275_v20 = vmul.f32 %v3042_v51, %v3042_v51 }
  0xc3   : > { %v339_v18 = vld [vmem:[%s2875_s30 + $0x1a8] sm:$0xff]  ;;  %v481_v54 = vld [vmem:[%s2883_s23 + $0x198] sm:$0xff]  ;;  %v482_v41 = vld [vmem:[%s2883_s23 + $0x1a0] sm:$0xff]  ;;  %v3261_v34 = vadd.f32 %v478_v30, %v334_v43  ;;  %v3263_v9 = vadd.f32 %v479_v17, %v335_v5  ;;  %6061 = vst [vmem:[#allocation71_spill] sm:$0xff] %v3265_v8  ;;  %v3268_v0 = vadd.f32 %v480_v10, %v336_v3  ;;  %v1046_v10 = vadd.f32 %v1045_v26, %v3027_v42 }
  0xc4   : > { %v483_v25 = vld [vmem:[%s2883_s23 + $0x1a8] sm:$0xff]  ;;  %v352_v33 = vld [vmem:[%s2875_s30 + $0x210] sm:$0xff]  ;;  %v353_v19 = vld [vmem:[%s2875_s30 + $0x218] sm:$0xff]  ;;  %v764_v43 = vadd.f32 %v763_v2, %v3223_v57  ;;  %v783_v17 = vadd.f32 %v782_v62, %v3240_v7  ;;  %v3279_v22 = vadd.f32 %v481_v54, %v337_v53  ;;  %v3286_v24 = vadd.f32 %v482_v41, %v338_v48 }
  0xc5   : > { %6059 = vst [vmem:[#allocation69_spill] sm:$0xff] %v3261_v34  ;;  %6060 = vst [vmem:[#allocation70_spill] sm:$0xff] %v3263_v9  ;;  %v774_v23 = vadd.f32 %v3263_v9, %v3261_v34  ;;  %v354_v5 = vld [vmem:[%s2875_s30 + $0x220] sm:$0xff]  ;;  %v355_v29 = vld [vmem:[%s2875_s30 + $0x228] sm:$0xff]  ;;  %v1039_v62 = vadd.f32 %v1038_v15, %v3189_v12  ;;  %v1052_v53 = vadd.f32 %v1051_v14, %v3145_v32 }
  0xc6   : > { %6062 = vst [vmem:[#allocation72_spill] sm:$0xff] %v3268_v0  ;;  %6063 = vst [vmem:[#allocation73_spill] sm:$0xff] %v3279_v22  ;;  %v356_v3 = vld [vmem:[%s2875_s30 + $0x230] sm:$0xff]  ;;  %v497_v30 = vld [vmem:[%s2883_s23 + $0x218] sm:$0xff]  ;;  %765 = vadd.xlane.f32.xlu0 %v764_v43  ;;  %v784_v54 = vadd.f32 %v783_v17, %v3247_v1  ;;  %v3303_v12 = vadd.f32 %v483_v25, %v339_v18  ;;  %v1033_v26 = vadd.f32 %v1032_v11, %v3099_v50 }
  0xc7   : > { %6064 = vst [vmem:[#allocation74_spill] sm:$0xff] %v3286_v24  ;;  %v496_v38 = vld [vmem:[%s2883_s23 + $0x210] sm:$0xff]  ;;  %v498_v2 = vld [vmem:[%s2883_s23 + $0x220] sm:$0xff]  ;;  %v775_v51 = vadd.f32 %v774_v23, %v3268_v0  ;;  %v357_v9 = vld [vmem:[%s2875_s30 + $0x238] sm:$0xff]  ;;  %v3301_v7 = vadd.f32 %v497_v30, %v353_v19  ;;  %v3313_v43 = vmul.f32 %v3044_v55, %v3044_v55 }
  0xc8   : > { %v499_v41 = vld [vmem:[%s2883_s23 + $0x228] sm:$0xff]  ;;  %v500_v48 = vld [vmem:[%s2883_s23 + $0x230] sm:$0xff]  ;;  %v3299_v34 = vadd.f32 %v496_v38, %v352_v33  ;;  %6067 = vst [vmem:[#allocation77_spill] sm:$0xff] %v3303_v12  ;;  %v501_v32 = vld [vmem:[%s2883_s23 + $0x238] sm:$0xff]  ;;  %v3306_v42 = vadd.f32 %v498_v2, %v354_v5  ;;  %v785_v33 = vadd.f32 %v784_v54, %v3265_v8  ;;  %v1047_v2 = vadd.f32 %v1046_v10, %v3031_v44 }
  0xc9   : > { %6066 = vst [vmem:[#allocation76_spill] sm:$0xff] %v3301_v7  ;;  %v346_v15 = vld [vmem:[%s2875_s30 + $0x1e0] sm:$0xff]  ;;  %v347_v14 = vld [vmem:[%s2875_s30 + $0x1e8] sm:$0xff]  ;;  %v776_v19 = vadd.f32 %v775_v51, %v3279_v22  ;;  %v3317_v18 = vadd.f32 %v499_v41, %v355_v29  ;;  %v348_v17 = vld [vmem:[%s2875_s30 + $0x1f0] sm:$0xff]  ;;  %v3324_v50 = vadd.f32 %v500_v48, %v356_v3  ;;  %v1040_v51 = vadd.f32 %v1039_v62, %v3193_v61 }
  0xca   : > { %6065 = vst [vmem:[#allocation75_spill] sm:$0xff] %v3299_v34  ;;  %6068 = vst [vmem:[#allocation78_spill] sm:$0xff] %v3306_v42  ;;  %v795_v25 = vadd.f32 %v3301_v7, %v3299_v34  ;;  %v349_v23 = vld [vmem:[%s2875_s30 + $0x1f8] sm:$0xff]  ;;  %v350_v5 = vld [vmem:[%s2875_s30 + $0x200] sm:$0xff]  ;;  %v1053_v29 = vadd.f32 %v1052_v53, %v3149_v47  ;;  %786 = vadd.xlane.f32.xlu1 %v785_v33  ;;  %v3341_v61 = vadd.f32 %v501_v32, %v357_v9 }
  0xcb   : > { %6069 = vst [vmem:[#allocation79_spill] sm:$0xff] %v3317_v18  ;;  %6070 = vst [vmem:[#allocation80_spill] sm:$0xff] %v3324_v50  ;;  %v490_v11 = vld [vmem:[%s2883_s23 + $0x1e0] sm:$0xff]  ;;  %v491_v38 = vld [vmem:[%s2883_s23 + $0x1e8] sm:$0xff]  ;;  %v777_v54 = vadd.f32 %v776_v19, %v3286_v24  ;;  %v3349_v10 = vadd.f32 %v1033_v26, %v3103_v60  ;;  %v3353_v33 = vmul.f32 %v3049_v59, %v3049_v59 }
  0xcc   : > { %v492_v30 = vld [vmem:[%s2883_s23 + $0x1f0] sm:$0xff]  ;;  %v796_v41 = vadd.f32 %v795_v25, %v3306_v42  ;;  %v351_v55 = vld [vmem:[%s2875_s30 + $0x208] sm:$0xff]  ;;  %v493_v3 = vld [vmem:[%s2883_s23 + $0x1f8] sm:$0xff]  ;;  %v3337_v8 = vadd.f32 %v490_v11, %v346_v15  ;;  %v3339_v22 = vadd.f32 %v491_v38, %v347_v14  ;;  %6073 = vst [vmem:[#allocation83_spill] sm:$0xff] %v3341_v61 }
  0xcd   : > { %v494_v48 = vld [vmem:[%s2883_s23 + $0x200] sm:$0xff]  ;;  %v495_v44 = vld [vmem:[%s2883_s23 + $0x208] sm:$0xff]  ;;  %v3344_v47 = vadd.f32 %v492_v30, %v348_v17  ;;  %v364_v62 = vld [vmem:[%s2875_s30 + $0x270] sm:$0xff]  ;;  %6075 = vst [vmem:[#allocation85_spill] sm:$0xff] %v3349_v10  ;;  %v778_v15 = vadd.f32 %v777_v54, %v3303_v12  ;;  %v3357_v9 = vadd.f32 %v493_v3, %v349_v23  ;;  %v3370_v30 = vadd.f32 %v1040_v51, %v3211_v36 }
  0xce   : > { %6071 = vst [vmem:[#allocation81_spill] sm:$0xff] %v3337_v8  ;;  %6072 = vst [vmem:[#allocation82_spill] sm:$0xff] %v3339_v22  ;;  %v365_v53 = vld [vmem:[%s2875_s30 + $0x278] sm:$0xff]  ;;  %v797_v14 = vadd.f32 %v796_v41, %v3317_v18  ;;  %v788_v32 = vadd.f32 %v3339_v22, %v3337_v8  ;;  %v366_v19 = vld [vmem:[%s2875_s30 + $0x280] sm:$0xff]  ;;  %v3364_v26 = vadd.f32 %v494_v48, %v350_v5 }
  0xcf   : > { %6074 = vst [vmem:[#allocation84_spill] sm:$0xff] %v3344_v47  ;;  %6076 = vst [vmem:[#allocation86_spill] sm:$0xff] %v3357_v9  ;;  %v367_v25 = vld [vmem:[%s2875_s30 + $0x288] sm:$0xff]  ;;  %v368_v60 = vld [vmem:[%s2875_s30 + $0x290] sm:$0xff]  ;;  %v1054_v23 = vadd.f32 %v1053_v29, %v3232_v31  ;;  %v3374_v54 = vadd.f32 %v1047_v2, %v3035_v45  ;;  %779 = vadd.xlane.f32.xlu0 %v778_v15  ;;  %v3385_v31 = vadd.f32 %v495_v44, %v351_v55 }
  0xd0   : > { %6077 = vst [vmem:[#allocation87_spill] sm:$0xff] %v3364_v26  ;;  %v508_v17 = vld [vmem:[%s2883_s23 + $0x270] sm:$0xff]  ;;  %v509_v11 = vld [vmem:[%s2883_s23 + $0x278] sm:$0xff]  ;;  %v510_v38 = vld [vmem:[%s2883_s23 + $0x280] sm:$0xff]  ;;  %v798_v41 = vadd.f32 %v797_v14, %v3324_v50  ;;  %v789_v5 = vadd.f32 %v788_v32, %v3344_v47  ;;  %v3394_v15 = vmul.f32 %v3059_v4, %v3059_v4 }
  0xd1   : > { %6078 = vst [vmem:[#allocation88_spill] sm:$0xff] %v3370_v30  ;;  %6079 = vst [vmem:[#allocation89_spill] sm:$0xff] %v3374_v54  ;;  %v369_v3 = vld [vmem:[%s2875_s30 + $0x298] sm:$0xff]  ;;  %v511_v48 = vld [vmem:[%s2883_s23 + $0x288] sm:$0xff]  ;;  %v3381_v10 = vadd.f32 %v508_v17, %v364_v62  ;;  %v3383_v36 = vadd.f32 %v509_v11, %v365_v53  ;;  %v3388_v51 = vadd.f32 %v510_v38, %v366_v19 }
  0xd2   : > { %v512_v59 = vld [vmem:[%s2883_s23 + $0x290] sm:$0xff]  ;;  %6082 = vst [vmem:[#allocation92_spill] sm:$0xff] %v3385_v31  ;;  %v513_v45 = vld [vmem:[%s2883_s23 + $0x298] sm:$0xff]  ;;  %v358_v29 = vld [vmem:[%s2875_s30 + $0x240] sm:$0xff]  ;;  %v3398_v62 = vmul.f32 %v3066_v13, %v3066_v13  ;;  %v799_v53 = vadd.f32 %v798_v41, %v3341_v61  ;;  %v790_v55 = vadd.f32 %v789_v5, %v3357_v9  ;;  %v3402_v44 = vadd.f32 %v511_v48, %v367_v25 }
  0xd3   : > { %6080 = vst [vmem:[#allocation90_spill] sm:$0xff] %v3381_v10  ;;  %6081 = vst [vmem:[#allocation91_spill] sm:$0xff] %v3383_v36  ;;  %v359_v2 = vld [vmem:[%s2875_s30 + $0x248] sm:$0xff]  ;;  %v809_v14 = vadd.f32 %v3383_v36, %v3381_v10  ;;  %v360_v32 = vld [vmem:[%s2875_s30 + $0x250] sm:$0xff]  ;;  %v3409_v11 = vadd.f32 %v512_v59, %v368_v60  ;;  %v3415_v5 = vadd.f32 %v1054_v23, %v3236_v37 }
  0xd4   : > { %6083 = vst [vmem:[#allocation93_spill] sm:$0xff] %v3388_v51  ;;  %6084 = vst [vmem:[#allocation94_spill] sm:$0xff] %v3402_v44  ;;  %v361_v19 = vld [vmem:[%s2875_s30 + $0x258] sm:$0xff]  ;;  %v362_v17 = vld [vmem:[%s2875_s30 + $0x260] sm:$0xff]  ;;  %v3419_v25 = vmul.f32 %v3090_v40, %v3090_v40  ;;  %v1065_v48 = vadd.f32 %v3313_v43, %v3275_v20  ;;  %800 = vadd.xlane.f32.xlu1 %v799_v53  ;;  %v791_v59 = vadd.f32 %v790_v55, %v3364_v26 }
  0xd5   : > { %6085 = vst [vmem:[#allocation95_spill] sm:$0xff] %v3409_v11  ;;  %v502_v38 = vld [vmem:[%s2883_s23 + $0x240] sm:$0xff]  ;;  %v503_v13 = vld [vmem:[%s2883_s23 + $0x248] sm:$0xff]  ;;  %v504_v41 = vld [vmem:[%s2883_s23 + $0x250] sm:$0xff]  ;;  %v810_v60 = vadd.f32 %v809_v14, %v3388_v51  ;;  %v3432_v40 = vadd.f32 %v513_v45, %v369_v3  ;;  %v910_v14 = vmul.f32 %v3086_v35, %v3086_v35 }
  0xd6   : > { %6086 = vst [vmem:[#allocation96_spill] sm:$0xff] %v3415_v5  ;;  %v363_v4 = vld [vmem:[%s2875_s30 + $0x268] sm:$0xff]  ;;  %v505_v54 = vld [vmem:[%s2883_s23 + $0x258] sm:$0xff]  ;;  %v506_v61 = vld [vmem:[%s2883_s23 + $0x260] sm:$0xff]  ;;  %v3428_v37 = vadd.f32 %v502_v38, %v358_v29  ;;  %v3430_v23 = vadd.f32 %v503_v13, %v359_v2  ;;  %v3435_v43 = vadd.f32 %v504_v41, %v360_v32  ;;  %v911_v5 = vmul.f32 %v3088_v39, %v3088_v39 }
  0xd7   : > { %6089 = vst [vmem:[#allocation99_spill] sm:$0xff] %v3432_v40  ;;  %v507_v20 = vld [vmem:[%s2883_s23 + $0x268] sm:$0xff]  ;;  %v376_v53 = vld [vmem:[%s2875_s30 + $0x2d0] sm:$0xff]  ;;  %v377_v55 = vld [vmem:[%s2875_s30 + $0x2d8] sm:$0xff]  ;;  %v792_v29 = vadd.f32 %v791_v59, %v3385_v31  ;;  %v811_v13 = vadd.f32 %v810_v60, %v3402_v44  ;;  %v3445_v3 = vadd.f32 %v505_v54, %v361_v19  ;;  %v3452_v41 = vadd.f32 %v506_v61, %v362_v17 }
  0xd8   : > { %6087 = vst [vmem:[#allocation97_spill] sm:$0xff] %v3428_v37  ;;  %6088 = vst [vmem:[#allocation98_spill] sm:$0xff] %v3430_v23  ;;  %v802_v45 = vadd.f32 %v3430_v23, %v3428_v37  ;;  %v378_v2 = vld [vmem:[%s2875_s30 + $0x2e0] sm:$0xff]  ;;  %v379_v32 = vld [vmem:[%s2875_s30 + $0x2e8] sm:$0xff]  ;;  %v1066_v60 = vadd.f32 %v1065_v48, %v3353_v33  ;;  %v912_v54 = vmul.f32 %v3093_v46, %v3093_v46 }
  0xd9   : > { %6090 = vst [vmem:[#allocation100_spill] sm:$0xff] %v3435_v43  ;;  %6091 = vst [vmem:[#allocation101_spill] sm:$0xff] %v3445_v3  ;;  %v380_v38 = vld [vmem:[%s2875_s30 + $0x2f0] sm:$0xff]  ;;  %v521_v39 = vld [vmem:[%s2883_s23 + $0x2d8] sm:$0xff]  ;;  %v3462_v19 = vmul.f32 %v3107_v58, %v3107_v58  ;;  %793 = vadd.xlane.f32.xlu0 %v792_v29  ;;  %v812_v31 = vadd.f32 %v811_v13, %v3409_v11  ;;  %v3473_v48 = vadd.f32 %v507_v20, %v363_v4 }
  0xda   : > { %6092 = vst [vmem:[#allocation102_spill] sm:$0xff] %v3452_v41  ;;  %v520_v35 = vld [vmem:[%s2883_s23 + $0x2d0] sm:$0xff]  ;;  %v522_v59 = vld [vmem:[%s2883_s23 + $0x2e0] sm:$0xff]  ;;  %v803_v61 = vadd.f32 %v802_v45, %v3435_v43  ;;  %v381_v17 = vld [vmem:[%s2875_s30 + $0x2f8] sm:$0xff]  ;;  %v3471_v33 = vadd.f32 %v521_v39, %v377_v55  ;;  %v3482_v46 = vmul.f32 %v3114_v6, %v3114_v6 }
  0xdb   : > { %v523_v26 = vld [vmem:[%s2883_s23 + $0x2e8] sm:$0xff]  ;;  %v524_v12 = vld [vmem:[%s2883_s23 + $0x2f0] sm:$0xff]  ;;  %v3469_v30 = vadd.f32 %v520_v35, %v376_v53  ;;  %6095 = vst [vmem:[#allocation105_spill] sm:$0xff] %v3473_v48  ;;  %v525_v58 = vld [vmem:[%s2883_s23 + $0x2f8] sm:$0xff]  ;;  %v3476_v29 = vadd.f32 %v522_v59, %v378_v2  ;;  %v3486_v35 = vmul.f32 %v3136_v52, %v3136_v52  ;;  %v813_v39 = vadd.f32 %v812_v31, %v3432_v40 }
  0xdc   : > { %6094 = vst [vmem:[#allocation104_spill] sm:$0xff] %v3471_v33  ;;  %v370_v13 = vld [vmem:[%s2875_s30 + $0x2a0] sm:$0xff]  ;;  %v371_v45 = vld [vmem:[%s2875_s30 + $0x2a8] sm:$0xff]  ;;  %v804_v4 = vadd.f32 %v803_v61, %v3445_v3  ;;  %v3490_v20 = vadd.f32 %v523_v26, %v379_v32  ;;  %v372_v55 = vld [vmem:[%s2875_s30 + $0x2b0] sm:$0xff]  ;;  %v3497_v6 = vadd.f32 %v524_v12, %v380_v38  ;;  %v1067_v61 = vadd.f32 %v1066_v60, %v3394_v15 }
  0xdd   : > { %6093 = vst [vmem:[#allocation103_spill] sm:$0xff] %v3469_v30  ;;  %6096 = vst [vmem:[#allocation106_spill] sm:$0xff] %v3476_v29  ;;  %v823_v53 = vadd.f32 %v3471_v33, %v3469_v30  ;;  %v373_v2 = vld [vmem:[%s2875_s30 + $0x2b8] sm:$0xff]  ;;  %v374_v59 = vld [vmem:[%s2875_s30 + $0x2c0] sm:$0xff]  ;;  %v1058_v26 = vadd.f32 %v911_v5, %v910_v14  ;;  %v928_v32 = vmul.f32 %v3132_v63, %v3132_v63  ;;  %814 = vadd.xlane.f32.xlu1 %v813_v39 }
  0xde   : > { %6097 = vst [vmem:[#allocation107_spill] sm:$0xff] %v3490_v20  ;;  %6098 = vst [vmem:[#allocation108_spill] sm:$0xff] %v3497_v6  ;;  %v514_v52 = vld [vmem:[%s2883_s23 + $0x2a0] sm:$0xff]  ;;  %v515_v11 = vld [vmem:[%s2883_s23 + $0x2a8] sm:$0xff]  ;;  %v805_v40 = vadd.f32 %v804_v4, %v3452_v41  ;;  %v3514_v15 = vadd.f32 %v525_v58, %v381_v17  ;;  %v929_v4 = vmul.f32 %v3134_v21, %v3134_v21 }
  0xdf   : > { %v516_v31 = vld [vmem:[%s2883_s23 + $0x2b0] sm:$0xff]  ;;  %v824_v3 = vadd.f32 %v823_v53, %v3476_v29  ;;  %v375_v33 = vld [vmem:[%s2875_s30 + $0x2c8] sm:$0xff]  ;;  %v517_v12 = vld [vmem:[%s2883_s23 + $0x2b8] sm:$0xff]  ;;  %v3510_v30 = vadd.f32 %v514_v52, %v370_v13  ;;  %v3512_v43 = vadd.f32 %v515_v11, %v371_v45 }
  0xe0   : > { %v518_v38 = vld [vmem:[%s2883_s23 + $0x2c0] sm:$0xff]  ;;  %6101 = vst [vmem:[#allocation111_spill] sm:$0xff] %v3514_v15  ;;  %v519_v5 = vld [vmem:[%s2883_s23 + $0x2c8] sm:$0xff]  ;;  %v3517_v14 = vadd.f32 %v516_v31, %v372_v55  ;;  %v388_v60 = vld [vmem:[%s2875_s30 + $0x330] sm:$0xff]  ;;  %v806_v52 = vadd.f32 %v805_v40, %v3473_v48  ;;  %v3529_v58 = vadd.f32 %v517_v12, %v373_v2  ;;  %v1059_v2 = vadd.f32 %v1058_v26, %v912_v54 }
  0xe1   : > { %6099 = vst [vmem:[#allocation109_spill] sm:$0xff] %v3510_v30  ;;  %6100 = vst [vmem:[#allocation110_spill] sm:$0xff] %v3512_v43  ;;  %v389_v39 = vld [vmem:[%s2875_s30 + $0x338] sm:$0xff]  ;;  %v825_v11 = vadd.f32 %v824_v3, %v3490_v20  ;;  %v816_v17 = vadd.f32 %v3512_v43, %v3510_v30  ;;  %v390_v13 = vld [vmem:[%s2875_s30 + $0x340] sm:$0xff]  ;;  %v3536_v31 = vadd.f32 %v518_v38, %v374_v59 }
  0xe2   : > { %6102 = vst [vmem:[#allocation112_spill] sm:$0xff] %v3517_v14  ;;  %v6103_v53 = vld [vmem:[#allocation54_spill] sm:$0xff]  ;;  %6104 = vst [vmem:[#allocation113_spill] sm:$0xff] %v3529_v58  ;;  %v391_v45 = vld [vmem:[%s2875_s30 + $0x348] sm:$0xff]  ;;  %v1068_v3 = vadd.f32 %v1067_v61, %v3398_v62  ;;  %807 = vadd.xlane.f32.xlu0 %v806_v52  ;;  %v3555_v62 = vadd.f32 %v519_v5, %v375_v33 }
  0xe3   : > { %v3525_v63 = vmul.f32 %v6103_v53, %v6103_v53  ;;  %v392_v55 = vld [vmem:[%s2875_s30 + $0x350] sm:$0xff]  ;;  %6105 = vst [vmem:[#allocation114_spill] sm:$0xff] %v3536_v31  ;;  %v533_v21 = vld [vmem:[%s2883_s23 + $0x338] sm:$0xff]  ;;  %v534_v40 = vld [vmem:[%s2883_s23 + $0x340] sm:$0xff]  ;;  %v826_v20 = vadd.f32 %v825_v11, %v3497_v6  ;;  %v817_v41 = vadd.f32 %v816_v17, %v3517_v14  ;;  %v3564_v11 = vmul.f32 %v3160_v56, %v3160_v56 }
  0xe4   : > { %v532_v53 = vld [vmem:[%s2883_s23 + $0x330] sm:$0xff]  ;;  %v6106_v12 = vld [vmem:[#allocation55_spill] sm:$0xff]  ;;  %v393_v59 = vld [vmem:[%s2875_s30 + $0x358] sm:$0xff]  ;;  %v3553_v30 = vadd.f32 %v533_v21, %v389_v39  ;;  %6109 = vst [vmem:[#allocation117_spill] sm:$0xff] %v3555_v62  ;;  %v3558_v61 = vadd.f32 %v534_v40, %v390_v13 }
  0xe5   : > { %v3544_v48 = vmul.f32 %v6106_v12, %v6106_v12  ;;  %v535_v38 = vld [vmem:[%s2883_s23 + $0x348] sm:$0xff]  ;;  %v536_v29 = vld [vmem:[%s2883_s23 + $0x350] sm:$0xff]  ;;  %v3551_v43 = vadd.f32 %v532_v53, %v388_v60  ;;  %v537_v54 = vld [vmem:[%s2883_s23 + $0x358] sm:$0xff]  ;;  %v3568_v60 = vmul.f32 %v3180_v16, %v3180_v16  ;;  %v827_v21 = vadd.f32 %v826_v20, %v3514_v15 }
  0xe6   : > { %6108 = vst [vmem:[#allocation116_spill] sm:$0xff] %v3553_v30  ;;  %6110 = vst [vmem:[#allocation118_spill] sm:$0xff] %v3558_v61  ;;  %v382_v26 = vld [vmem:[%s2875_s30 + $0x300] sm:$0xff]  ;;  %v383_v52 = vld [vmem:[%s2875_s30 + $0x308] sm:$0xff]  ;;  %v818_v33 = vadd.f32 %v817_v41, %v3529_v58  ;;  %v3572_v5 = vadd.f32 %v535_v38, %v391_v45  ;;  %v3579_v40 = vadd.f32 %v536_v29, %v392_v55 }
  0xe7   : > { %6107 = vst [vmem:[#allocation115_spill] sm:$0xff] %v3551_v43  ;;  %v837_v39 = vadd.f32 %v3553_v30, %v3551_v43  ;;  %v384_v53 = vld [vmem:[%s2875_s30 + $0x310] sm:$0xff]  ;;  %v385_v17 = vld [vmem:[%s2875_s30 + $0x318] sm:$0xff]  ;;  %v386_v13 = vld [vmem:[%s2875_s30 + $0x320] sm:$0xff]  ;;  %v3585_v41 = vadd.f32 %v1068_v3, %v3419_v25  ;;  %v1060_v45 = vadd.f32 %v1059_v2, %v3462_v19  ;;  %v1079_v38 = vadd.f32 %v929_v4, %v928_v32 }
  0xe8   : > { %6111 = vst [vmem:[#allocation119_spill] sm:$0xff] %v3572_v5  ;;  %6112 = vst [vmem:[#allocation120_spill] sm:$0xff] %v3579_v40  ;;  %v526_v16 = vld [vmem:[%s2883_s23 + $0x300] sm:$0xff]  ;;  %v527_v56 = vld [vmem:[%s2883_s23 + $0x308] sm:$0xff]  ;;  %828 = vadd.xlane.f32.xlu1 %v827_v21  ;;  %v819_v12 = vadd.f32 %v818_v33, %v3536_v31  ;;  %v3597_v25 = vadd.f32 %v537_v54, %v393_v59 }
  0xe9   : > { %v528_v20 = vld [vmem:[%s2883_s23 + $0x310] sm:$0xff]  ;;  %v838_v15 = vadd.f32 %v837_v39, %v3558_v61  ;;  %v387_v6 = vld [vmem:[%s2875_s30 + $0x328] sm:$0xff]  ;;  %v529_v29 = vld [vmem:[%s2883_s23 + $0x318] sm:$0xff]  ;;  %v3593_v58 = vadd.f32 %v526_v16, %v382_v26  ;;  %v3595_v30 = vadd.f32 %v527_v56, %v383_v52 }
  0xea   : > { %v530_v55 = vld [vmem:[%s2883_s23 + $0x320] sm:$0xff]  ;;  %6115 = vst [vmem:[#allocation123_spill] sm:$0xff] %v3597_v25  ;;  %v531_v19 = vld [vmem:[%s2883_s23 + $0x328] sm:$0xff]  ;;  %v3600_v32 = vadd.f32 %v528_v20, %v384_v53  ;;  %v400_v4 = vld [vmem:[%s2875_s30 + $0x390] sm:$0xff]  ;;  %v820_v16 = vadd.f32 %v819_v12, %v3555_v62  ;;  %v3610_v59 = vadd.f32 %v529_v29, %v385_v17  ;;  %v1080_v17 = vadd.f32 %v1079_v38, %v3525_v63 }
  0xeb   : > { %6113 = vst [vmem:[#allocation121_spill] sm:$0xff] %v3593_v58  ;;  %6114 = vst [vmem:[#allocation122_spill] sm:$0xff] %v3595_v30  ;;  %v401_v3 = vld [vmem:[%s2875_s30 + $0x398] sm:$0xff]  ;;  %v839_v56 = vadd.f32 %v838_v15, %v3572_v5  ;;  %v830_v54 = vadd.f32 %v3595_v30, %v3593_v58  ;;  %v402_v26 = vld [vmem:[%s2875_s30 + $0x3a0] sm:$0xff]  ;;  %v3617_v20 = vadd.f32 %v530_v55, %v386_v13 }
  0xec   : > { %6116 = vst [vmem:[#allocation124_spill] sm:$0xff] %v3600_v32  ;;  %v6117_v2 = vld [vmem:[#allocation57_spill] sm:$0xff]  ;;  %v6118_v33 = vld [vmem:[#allocation58_spill] sm:$0xff]  ;;  %6119 = vst [vmem:[#allocation125_spill] sm:$0xff] %v3610_v59  ;;  %v1061_v15 = vadd.f32 %v1060_v45, %v3482_v46  ;;  %v924_v29 = vmul.f32 %v3183_v49, %v3183_v49  ;;  %821 = vadd.xlane.f32.xlu0 %v820_v16  ;;  %v3635_v46 = vadd.f32 %v531_v19, %v387_v6 }
  0xed   : > { %v922_v21 = vmul.f32 %v6117_v2, %v6117_v2  ;;  %v923_v39 = vmul.f32 %v6118_v33, %v6118_v33  ;;  %v403_v52 = vld [vmem:[%s2875_s30 + $0x3a8] sm:$0xff]  ;;  %v404_v53 = vld [vmem:[%s2875_s30 + $0x3b0] sm:$0xff]  ;;  %6120 = vst [vmem:[#allocation126_spill] sm:$0xff] %v3617_v20  ;;  %v545_v33 = vld [vmem:[%s2883_s23 + $0x398] sm:$0xff]  ;;  %v840_v62 = vadd.f32 %v839_v56, %v3579_v40  ;;  %v831_v5 = vadd.f32 %v830_v54, %v3600_v32 }
  0xee   : > { %v544_v2 = vld [vmem:[%s2883_s23 + $0x390] sm:$0xff]  ;;  %v546_v12 = vld [vmem:[%s2883_s23 + $0x3a0] sm:$0xff]  ;;  %v405_v13 = vld [vmem:[%s2875_s30 + $0x3b8] sm:$0xff]  ;;  %v3633_v58 = vadd.f32 %v545_v33, %v401_v3  ;;  %6123 = vst [vmem:[#allocation129_spill] sm:$0xff] %v3635_v46 }
  0xef   : > { %v547_v55 = vld [vmem:[%s2883_s23 + $0x3a8] sm:$0xff]  ;;  %v548_v31 = vld [vmem:[%s2883_s23 + $0x3b0] sm:$0xff]  ;;  %v3631_v30 = vadd.f32 %v544_v2, %v400_v4  ;;  %v549_v63 = vld [vmem:[%s2883_s23 + $0x3b8] sm:$0xff]  ;;  %v3638_v45 = vadd.f32 %v546_v12, %v402_v26  ;;  %v1072_v49 = vadd.f32 %v923_v39, %v922_v21  ;;  %v841_v40 = vadd.f32 %v840_v62, %v3597_v25 }
  0xf0   : > { %6122 = vst [vmem:[#allocation128_spill] sm:$0xff] %v3633_v58  ;;  %v394_v38 = vld [vmem:[%s2875_s30 + $0x360] sm:$0xff]  ;;  %v395_v16 = vld [vmem:[%s2875_s30 + $0x368] sm:$0xff]  ;;  %v6125_v56 = vld [vmem:[#allocation61_spill] sm:$0xff]  ;;  %v832_v4 = vadd.f32 %v831_v5, %v3610_v59  ;;  %v3646_v3 = vadd.f32 %v547_v55, %v403_v52  ;;  %v3653_v26 = vadd.f32 %v548_v31, %v404_v53  ;;  %v3659_v5 = vadd.f32 %v1061_v15, %v3486_v35 }
  0xf1   : > { %6121 = vst [vmem:[#allocation127_spill] sm:$0xff] %v3631_v30  ;;  %6124 = vst [vmem:[#allocation130_spill] sm:$0xff] %v3638_v45  ;;  %v925_v54 = vmul.f32 %v6125_v56, %v6125_v56  ;;  %v851_v6 = vadd.f32 %v3633_v58, %v3631_v30  ;;  %v396_v19 = vld [vmem:[%s2875_s30 + $0x370] sm:$0xff]  ;;  %v397_v2 = vld [vmem:[%s2875_s30 + $0x378] sm:$0xff]  ;;  %v1081_v39 = vadd.f32 %v1080_v17, %v3544_v48  ;;  %842 = vadd.xlane.f32.xlu1 %v841_v40 }
  0xf2   : > { %6126 = vst [vmem:[#allocation131_spill] sm:$0xff] %v3646_v3  ;;  %v398_v33 = vld [vmem:[%s2875_s30 + $0x380] sm:$0xff]  ;;  %6127 = vst [vmem:[#allocation132_spill] sm:$0xff] %v3653_v26  ;;  %v539_v21 = vld [vmem:[%s2883_s23 + $0x368] sm:$0xff]  ;;  %v3664_v52 = vmul.f32 %v3204_v28, %v3204_v28  ;;  %v833_v55 = vadd.f32 %v832_v4, %v3617_v20  ;;  %v3675_v48 = vadd.f32 %v549_v63, %v405_v13 }
  0xf3   : > { %v538_v12 = vld [vmem:[%s2883_s23 + $0x360] sm:$0xff]  ;;  %v540_v62 = vld [vmem:[%s2883_s23 + $0x370] sm:$0xff]  ;;  %v852_v31 = vadd.f32 %v851_v6, %v3638_v45  ;;  %v399_v53 = vld [vmem:[%s2875_s30 + $0x388] sm:$0xff]  ;;  %v3673_v35 = vadd.f32 %v539_v21, %v395_v16  ;;  %v3684_v6 = vmul.f32 %v3223_v57, %v3223_v57  ;;  %v1073_v28 = vadd.f32 %v1072_v49, %v924_v29 }
  0xf4   : > { %v541_v56 = vld [vmem:[%s2883_s23 + $0x378] sm:$0xff]  ;;  %v542_v59 = vld [vmem:[%s2883_s23 + $0x380] sm:$0xff]  ;;  %v3671_v25 = vadd.f32 %v538_v12, %v394_v38  ;;  %6130 = vst [vmem:[#allocation135_spill] sm:$0xff] %v3675_v48  ;;  %v543_v15 = vld [vmem:[%s2883_s23 + $0x388] sm:$0xff]  ;;  %v3678_v40 = vadd.f32 %v540_v62, %v396_v19  ;;  %v834_v38 = vadd.f32 %v833_v55, %v3635_v46  ;;  %v1082_v55 = vadd.f32 %v1081_v39, %v3564_v11 }
  0xf5   : > { %6129 = vst [vmem:[#allocation134_spill] sm:$0xff] %v3673_v35  ;;  %v412_v17 = vld [vmem:[%s2875_s30 + $0x3f0] sm:$0xff]  ;;  %v413_v4 = vld [vmem:[%s2875_s30 + $0x3f8] sm:$0xff]  ;;  %v853_v16 = vadd.f32 %v852_v31, %v3646_v3  ;;  %v3688_v12 = vadd.f32 %v541_v56, %v397_v2  ;;  %v414_v63 = vld [vmem:[%s2875_s30 + $0x400] sm:$0xff]  ;;  %v3695_v62 = vadd.f32 %v542_v59, %v398_v33  ;;  %v3714_v39 = vadd.f32 %v543_v15, %v399_v53 }
  0xf6   : > { %6128 = vst [vmem:[#allocation133_spill] sm:$0xff] %v3671_v25  ;;  %6131 = vst [vmem:[#allocation136_spill] sm:$0xff] %v3678_v40  ;;  %v844_v13 = vadd.f32 %v3673_v35, %v3671_v25  ;;  %v415_v19 = vld [vmem:[%s2875_s30 + $0x408] sm:$0xff]  ;;  %v416_v21 = vld [vmem:[%s2875_s30 + $0x410] sm:$0xff]  ;;  %835 = vadd.xlane.f32.xlu0 %v834_v38 }
  0xf7   : > { %6132 = vst [vmem:[#allocation137_spill] sm:$0xff] %v3688_v12  ;;  %6133 = vst [vmem:[#allocation138_spill] sm:$0xff] %v3695_v62  ;;  %v556_v57 = vld [vmem:[%s2883_s23 + $0x3f0] sm:$0xff]  ;;  %v557_v49 = vld [vmem:[%s2883_s23 + $0x3f8] sm:$0xff]  ;;  %v854_v3 = vadd.f32 %v853_v16, %v3653_v26  ;;  %v3723_v26 = vmul.f32 %v3226_v27, %v3226_v27  ;;  %v3748_v27 = vmul.f32 %v3247_v1, %v3247_v1 }
  0xf8   : > { %v558_v29 = vld [vmem:[%s2883_s23 + $0x400] sm:$0xff]  ;;  %v6135_v31 = vld [vmem:[#allocation64_spill] sm:$0xff]  ;;  %v845_v59 = vadd.f32 %v844_v13, %v3678_v40  ;;  %v417_v33 = vld [vmem:[%s2875_s30 + $0x418] sm:$0xff]  ;;  %v3710_v25 = vadd.f32 %v556_v57, %v412_v17  ;;  %v3712_v11 = vadd.f32 %v557_v49, %v413_v4  ;;  %6138 = vst [vmem:[#allocation141_spill] sm:$0xff] %v3714_v39 }
  0xf9   : > { %v6134_v56 = vld [vmem:[#allocation63_spill] sm:$0xff]  ;;  %v941_v46 = vmul.f32 %v6135_v31, %v6135_v31  ;;  %v560_v35 = vld [vmem:[%s2883_s23 + $0x410] sm:$0xff]  ;;  %v561_v31 = vld [vmem:[%s2883_s23 + $0x418] sm:$0xff]  ;;  %v3717_v38 = vadd.f32 %v558_v29, %v414_v63  ;;  %v855_v57 = vadd.f32 %v854_v3, %v3675_v48 }
  0xfa   : > { %v940_v2 = vmul.f32 %v6134_v56, %v6134_v56  ;;  %v559_v20 = vld [vmem:[%s2883_s23 + $0x408] sm:$0xff]  ;;  %6136 = vst [vmem:[#allocation139_spill] sm:$0xff] %v3710_v25  ;;  %6137 = vst [vmem:[#allocation140_spill] sm:$0xff] %v3712_v11  ;;  %v406_v16 = vld [vmem:[%s2875_s30 + $0x3c0] sm:$0xff]  ;;  %v1074_v56 = vadd.f32 %v1073_v28, %v925_v54  ;;  %v846_v17 = vadd.f32 %v845_v59, %v3688_v12 }
  0xfb   : > { %6139 = vst [vmem:[#allocation142_spill] sm:$0xff] %v3717_v38  ;;  %v407_v13 = vld [vmem:[%s2875_s30 + $0x3c8] sm:$0xff]  ;;  %v3727_v4 = vadd.f32 %v559_v20, %v415_v19  ;;  %v865_v53 = vadd.f32 %v3712_v11, %v3710_v25  ;;  %v408_v15 = vld [vmem:[%s2875_s30 + $0x3d0] sm:$0xff]  ;;  %v409_v63 = vld [vmem:[%s2875_s30 + $0x3d8] sm:$0xff]  ;;  %v3734_v54 = vadd.f32 %v560_v35, %v416_v21  ;;  %v3740_v59 = vadd.f32 %v1082_v55, %v3568_v60 }
  0xfc   : > { %v410_v28 = vld [vmem:[%s2875_s30 + $0x3e0] sm:$0xff]  ;;  %v551_v29 = vld [vmem:[%s2883_s23 + $0x3c8] sm:$0xff]  ;;  %v552_v3 = vld [vmem:[%s2883_s23 + $0x3d0] sm:$0xff]  ;;  %856 = vadd.xlane.f32.xlu1 %v855_v57  ;;  %v847_v35 = vadd.f32 %v846_v17, %v3695_v62  ;;  %v3760_v11 = vadd.f32 %v561_v31, %v417_v33  ;;  %v3768_v62 = vadd.f32 %v1074_v56, %v3664_v52 }
  0xfd   : > { %6140 = vst [vmem:[#allocation143_spill] sm:$0xff] %v3727_v4  ;;  %6141 = vst [vmem:[#allocation144_spill] sm:$0xff] %v3734_v54  ;;  %v550_v49 = vld [vmem:[%s2883_s23 + $0x3c0] sm:$0xff]  ;;  %v866_v21 = vadd.f32 %v865_v53, %v3717_v38  ;;  %v411_v48 = vld [vmem:[%s2875_s30 + $0x3e8] sm:$0xff]  ;;  %v3762_v57 = vadd.f32 %v552_v3, %v408_v15  ;;  %v1093_v38 = vadd.f32 %v941_v46, %v940_v2 }
  0xfe   : > { %v6142_v20 = vld [vmem:[#allocation67_spill] sm:$0xff]  ;;  %v553_v12 = vld [vmem:[%s2883_s23 + $0x3d8] sm:$0xff]  ;;  %v3756_v55 = vadd.f32 %v550_v49, %v406_v16  ;;  %6145 = vst [vmem:[#allocation147_spill] sm:$0xff] %v3760_v11  ;;  %v424_v17 = vld [vmem:[%s2875_s30 + $0x450] sm:$0xff]  ;;  %v848_v25 = vadd.f32 %v847_v35, %v3714_v39  ;;  %v936_v35 = vmul.f32 %v3268_v0, %v3268_v0 }
  0xff   : > { %v3744_v19 = vmul.f32 %v6142_v20, %v6142_v20  ;;  %v554_v40 = vld [vmem:[%s2883_s23 + $0x3e0] sm:$0xff]  ;;  %v555_v60 = vld [vmem:[%s2883_s23 + $0x3e8] sm:$0xff]  ;;  %v3758_v20 = vadd.f32 %v551_v29, %v407_v13  ;;  %6146 = vst [vmem:[#allocation148_spill] sm:$0xff] %v3762_v57  ;;  %v425_v53 = vld [vmem:[%s2875_s30 + $0x458] sm:$0xff]  ;;  %v867_v16 = vadd.f32 %v866_v21, %v3727_v4  ;;  %v3772_v13 = vadd.f32 %v553_v12, %v409_v63 }
 0x100   : > { %6143 = vst [vmem:[#allocation145_spill] sm:$0xff] %v3756_v55  ;;  %v426_v1 = vld [vmem:[%s2875_s30 + $0x460] sm:$0xff]  ;;  %v427_v33 = vld [vmem:[%s2875_s30 + $0x468] sm:$0xff]  ;;  %v428_v15 = vld [vmem:[%s2875_s30 + $0x470] sm:$0xff]  ;;  %v3779_v29 = vadd.f32 %v554_v40, %v410_v28  ;;  %849 = vadd.xlane.f32.xlu0 %v848_v25 }
 0x101   : > { %6144 = vst [vmem:[#allocation146_spill] sm:$0xff] %v3758_v20  ;;  %6147 = vst [vmem:[#allocation149_spill] sm:$0xff] %v3772_v13  ;;  %v858_v31 = vadd.f32 %v3758_v20, %v3756_v55  ;;  %v429_v49 = vld [vmem:[%s2875_s30 + $0x478] sm:$0xff]  ;;  %v568_v52 = vld [vmem:[%s2883_s23 + $0x450] sm:$0xff]  ;;  %v868_v21 = vadd.f32 %v867_v16, %v3734_v54  ;;  %v953_v54 = vmul.f32 %v3301_v7, %v3301_v7 }
 0x102   : > { %6148 = vst [vmem:[#allocation150_spill] sm:$0xff] %v3779_v29  ;;  %v569_v46 = vld [vmem:[%s2883_s23 + $0x458] sm:$0xff]  ;;  %v570_v56 = vld [vmem:[%s2883_s23 + $0x460] sm:$0xff]  ;;  %v571_v28 = vld [vmem:[%s2883_s23 + $0x468] sm:$0xff]  ;;  %v3795_v20 = vadd.f32 %v568_v52, %v424_v17 }
 0x103   : > { %v6149_v2 = vld [vmem:[#allocation69_spill] sm:$0xff]  ;;  %v6150_v12 = vld [vmem:[#allocation70_spill] sm:$0xff]  ;;  %v859_v40 = vadd.f32 %v858_v31, %v3762_v57  ;;  %v3801_v0 = vadd.f32 %v570_v56, %v426_v1  ;;  %v419_v16 = vld [vmem:[%s2875_s30 + $0x428] sm:$0xff]  ;;  %v952_v31 = vmul.f32 %v3299_v34, %v3299_v34  ;;  %v869_v17 = vadd.f32 %v868_v21, %v3760_v11 }
 0x104   : > { %v934_v3 = vmul.f32 %v6149_v2, %v6149_v2  ;;  %v935_v63 = vmul.f32 %v6150_v12, %v6150_v12  ;;  %v572_v39 = vld [vmem:[%s2883_s23 + $0x470] sm:$0xff]  ;;  %v573_v4 = vld [vmem:[%s2883_s23 + $0x478] sm:$0xff]  ;;  %6151 = vst [vmem:[#allocation151_spill] sm:$0xff] %v3795_v20  ;;  %v3797_v2 = vadd.f32 %v569_v46, %v425_v53  ;;  %v3799_v12 = vadd.f32 %v555_v60, %v411_v48  ;;  %v418_v25 = vld [vmem:[%s2875_s30 + $0x420] sm:$0xff] }
 0x105   : > { %6154 = vst [vmem:[#allocation154_spill] sm:$0xff] %v3801_v0  ;;  %v860_v53 = vadd.f32 %v859_v40, %v3772_v13  ;;  %v3811_v52 = vadd.f32 %v571_v28, %v427_v33  ;;  %v420_v1 = vld [vmem:[%s2875_s30 + $0x430] sm:$0xff]  ;;  %v421_v60 = vld [vmem:[%s2875_s30 + $0x438] sm:$0xff]  ;;  %v3817_v46 = vadd.f32 %v572_v39, %v428_v15  ;;  %v3819_v56 = vadd.f32 %v573_v4, %v429_v49  ;;  %v562_v34 = vld [vmem:[%s2883_s23 + $0x420] sm:$0xff] }
 0x106   : > { %6152 = vst [vmem:[#allocation152_spill] sm:$0xff] %v3797_v2  ;;  %6153 = vst [vmem:[#allocation153_spill] sm:$0xff] %v3799_v12  ;;  %v879_v48 = vadd.f32 %v3797_v2, %v3795_v20  ;;  %v563_v7 = vld [vmem:[%s2883_s23 + $0x428] sm:$0xff]  ;;  %v564_v57 = vld [vmem:[%s2883_s23 + $0x430] sm:$0xff]  ;;  %v1086_v21 = vadd.f32 %v935_v63, %v934_v3  ;;  %v954_v33 = vmul.f32 %v3306_v42, %v3306_v42  ;;  %870 = vadd.xlane.f32.xlu1 %v869_v17 }
 0x107   : > { %6155 = vst [vmem:[#allocation155_spill] sm:$0xff] %v3811_v52  ;;  %6156 = vst [vmem:[#allocation156_spill] sm:$0xff] %v3817_v46  ;;  %v861_v40 = vadd.f32 %v860_v53, %v3779_v29  ;;  %v565_v11 = vld [vmem:[%s2883_s23 + $0x438] sm:$0xff]  ;;  %v3829_v13 = vadd.f32 %v562_v34, %v418_v25  ;;  %v3831_v39 = vadd.f32 %v563_v7, %v419_v16  ;;  %v422_v4 = vld [vmem:[%s2875_s30 + $0x440] sm:$0xff] }
 0x108   : > { %6157 = vst [vmem:[#allocation157_spill] sm:$0xff] %v3819_v56  ;;  %v880_v28 = vadd.f32 %v879_v48, %v3801_v0  ;;  %v566_v15 = vld [vmem:[%s2883_s23 + $0x440] sm:$0xff]  ;;  %v3835_v49 = vadd.f32 %v564_v57, %v420_v1  ;;  %v1107_v3 = vadd.f32 %v953_v54, %v952_v31  ;;  %v946_v63 = vmul.f32 %v3337_v8, %v3337_v8  ;;  %v423_v42 = vld [vmem:[%s2875_s30 + $0x448] sm:$0xff]  ;;  %v6162_v54 = vld [vmem:[#allocation73_spill] sm:$0xff] }
 0x109   : > { %6158 = vst [vmem:[#allocation158_spill] sm:$0xff] %v3829_v13  ;;  %6159 = vst [vmem:[#allocation159_spill] sm:$0xff] %v3831_v39  ;;  %v947_v17 = vmul.f32 %v3339_v22, %v3339_v22  ;;  %v862_v53 = vadd.f32 %v861_v40, %v3799_v12  ;;  %v567_v34 = vld [vmem:[%s2883_s23 + $0x448] sm:$0xff]  ;;  %v3845_v25 = vadd.f32 %v565_v11, %v421_v60 }
 0x10a   : > { %6160 = vst [vmem:[#allocation160_spill] sm:$0xff] %v3835_v49  ;;  %v881_v48 = vadd.f32 %v880_v28, %v3811_v52  ;;  %v872_v7 = vadd.f32 %v3831_v39, %v3829_v13  ;;  %v1094_v57 = vadd.f32 %v1093_v38, %v3723_v26  ;;  %v937_v16 = vmul.f32 %v6162_v54, %v6162_v54  ;;  %v6179_v8 = vld [vmem:[#allocation96_spill] sm:$0xff] }
 0x10b   : > { %6161 = vst [vmem:[#allocation161_spill] sm:$0xff] %v3845_v25  ;;  %v1087_v31 = vadd.f32 %v1086_v21, %v936_v35  ;;  %v955_v1 = vmul.f32 %v3317_v18, %v3317_v18  ;;  %863 = vadd.xlane.f32.xlu0 %v862_v53  ;;  %v3855_v28 = vadd.f32 %v566_v15, %v422_v4 }
 0x10c   : > { %v882_v40 = vadd.f32 %v881_v48, %v3817_v46  ;;  %v873_v11 = vadd.f32 %v872_v7, %v3835_v49  ;;  %v948_v60 = vmul.f32 %v3344_v47, %v3344_v47  ;;  %v3860_v22 = vadd.f32 %v567_v34, %v423_v42  ;;  %v6165_v48 = vld [vmem:[#allocation71_spill] sm:$0xff]  ;;  %v6177_v47 = vld [vmem:[#allocation106_spill] sm:$0xff] }
 0x10d   : > { %6163 = vst [vmem:[#allocation162_spill] sm:$0xff] %v3855_v28  ;;  %v1108_v26 = vadd.f32 %v1107_v3, %v954_v33  ;;  %v964_v38 = vmul.f32 %v3381_v10, %v3381_v10  ;;  %v965_v35 = vmul.f32 %v3383_v36, %v3383_v36  ;;  %v1100_v4 = vadd.f32 %v947_v17, %v946_v63  ;;  %v6174_v10 = vld [vmem:[#allocation109_spill] sm:$0xff] }
 0x10e   : > { %6164 = vst [vmem:[#allocation163_spill] sm:$0xff] %v3860_v22  ;;  %v883_v21 = vadd.f32 %v882_v40, %v3819_v56  ;;  %v874_v53 = vadd.f32 %v873_v11, %v3845_v25  ;;  %v966_v15 = vmul.f32 %v3388_v51, %v3388_v51  ;;  %v945_v7 = vmul.f32 %v6165_v48, %v6165_v48 }
 0x10f   : > { %v1095_v42 = vadd.f32 %v1094_v57, %v3744_v19  ;;  %v938_v33 = vmul.f32 %v3286_v24, %v3286_v24  ;;  %v1121_v3 = vadd.f32 %v965_v35, %v964_v38  ;;  %v1088_v36 = vadd.f32 %v1087_v31, %v937_v16 }
 0x110   : > { %884 = vadd.xlane.f32.xlu1 %v883_v21  ;;  %v875_v34 = vadd.f32 %v874_v53, %v3855_v28  ;;  %v958_v40 = vmul.f32 %v3428_v37, %v3428_v37  ;;  %v959_v63 = vmul.f32 %v3430_v23, %v3430_v23  ;;  %v3882_v17 = vadd.f32 %v3768_v62, %v3684_v6  ;;  %v6166_v21 = vld [vmem:[#allocation100_spill] sm:$0xff]  ;;  %v6167_v6 = vld [vmem:[#allocation103_spill] sm:$0xff] }
 0x111   : > { %v956_v19 = vmul.f32 %v3324_v50, %v3324_v50  ;;  %v1109_v57 = vadd.f32 %v1108_v26, %v955_v1  ;;  %v949_v11 = vmul.f32 %v3357_v9, %v3357_v9  ;;  %v1101_v16 = vadd.f32 %v1100_v4, %v948_v60  ;;  %v6168_v37 = vld [vmem:[#allocation104_spill] sm:$0xff]  ;;  %v6170_v60 = vld [vmem:[#allocation77_spill] sm:$0xff] }
 0x112   : > { %v876_v38 = vadd.f32 %v875_v34, %v3860_v22  ;;  %v967_v31 = vmul.f32 %v3402_v44, %v3402_v44  ;;  %v1122_v35 = vadd.f32 %v1121_v3, %v966_v15  ;;  %v960_v53 = vmul.f32 %v6166_v21, %v6166_v21  ;;  %v6169_v26 = vld [vmem:[#allocation88_spill] sm:$0xff]  ;;  %v6171_v15 = vld [vmem:[#allocation83_spill] sm:$0xff]  ;;  %v6176_v9 = vld [vmem:[#allocation101_spill] sm:$0xff] }
 0x113   : > { %v1114_v23 = vadd.f32 %v959_v63, %v958_v40  ;;  %v976_v62 = vmul.f32 %v6167_v6, %v6167_v6  ;;  %v977_v1 = vmul.f32 %v6168_v37, %v6168_v37  ;;  %v1096_v34 = vadd.f32 %v1095_v42, %v3748_v27  ;;  %v6172_v40 = vld [vmem:[#allocation87_spill] sm:$0xff]  ;;  %v6175_v27 = vld [vmem:[#allocation110_spill] sm:$0xff] }
 0x114   : > { %877 = vadd.xlane.f32.xlu0 %v876_v38  ;;  %1042 = vadd.xlane.f32.xlu1 %v6169_v26  ;;  %v939_v4 = vmul.f32 %v6170_v60, %v6170_v60  ;;  %v1089_v44 = vadd.f32 %v1088_v36, %v938_v33  ;;  %v957_v3 = vmul.f32 %v6171_v15, %v6171_v15  ;;  %v6173_v6 = vld [vmem:[#allocation95_spill] sm:$0xff] }
 0x115   : > { %v1110_v21 = vadd.f32 %v1109_v57, %v956_v19  ;;  %v950_v63 = vmul.f32 %v6172_v40, %v6172_v40  ;;  %v968_v51 = vmul.f32 %v6173_v6, %v6173_v6  ;;  %v1102_v37 = vadd.f32 %v1101_v16, %v949_v11  ;;  %v6178_v40 = vld [vmem:[#allocation85_spill] sm:$0xff] }
 0x116   : > { %v1123_v38 = vadd.f32 %v1122_v35, %v967_v31  ;;  %v970_v26 = vmul.f32 %v6174_v10, %v6174_v10  ;;  %v971_v42 = vmul.f32 %v6175_v27, %v6175_v27  ;;  %v961_v36 = vmul.f32 %v6176_v9, %v6176_v9  ;;  %v6180_v31 = vld [vmem:[#allocation92_spill] sm:$0xff]  ;;  %v6184_v9 = vld [vmem:[#allocation107_spill] sm:$0xff] }
 0x117   : > { %v1115_v33 = vadd.f32 %v1114_v23, %v960_v53  ;;  %v978_v19 = vmul.f32 %v6177_v47, %v6177_v47  ;;  %v1135_v57 = vadd.f32 %v977_v1, %v976_v62  ;;  %v1097_v11 = vadd.f32 %v1096_v34, %v945_v7  ;;  %v6181_v53 = vld [vmem:[#allocation116_spill] sm:$0xff]  ;;  %v6182_v47 = vld [vmem:[#allocation99_spill] sm:$0xff]  ;;  %v6183_v7 = vld [vmem:[#allocation102_spill] sm:$0xff] }
 0x118   : > { %1035 = vadd.xlane.f32.xlu0 %v6178_v40  ;;  %1056 = vadd.xlane.f32.xlu1 %v6179_v8  ;;  %v3917_v16 = vadd.f32 %v1089_v44, %v939_v4  ;;  %v951_v35 = vmul.f32 %v6180_v31, %v6180_v31  ;;  %v972_v27 = vmul.f32 %v3517_v14, %v3517_v14 }
 0x119   : > { %v1128_v10 = vadd.f32 %v971_v42, %v970_v26  ;;  %v988_v23 = vmul.f32 %v3551_v43, %v3551_v43  ;;  %v989_v62 = vmul.f32 %v6181_v53, %v6181_v53  ;;  %v1111_v1 = vadd.f32 %v1110_v21, %v957_v3  ;;  %v6185_v42 = vld [vmem:[#allocation89_spill] sm:$0xff]  ;;  %v6189_v53 = vld [vmem:[#allocation122_spill] sm:$0xff] }
 0x11a   : > { %v1103_v40 = vadd.f32 %v1102_v37, %v950_v63  ;;  %v969_v8 = vmul.f32 %v6182_v47, %v6182_v47  ;;  %v1124_v44 = vadd.f32 %v1123_v38, %v968_v51  ;;  %v962_v34 = vmul.f32 %v6183_v7, %v6183_v7  ;;  %v6186_v43 = vld [vmem:[#allocation105_spill] sm:$0xff] }
 0x11b   : > { %v1116_v4 = vadd.f32 %v1115_v33, %v961_v36  ;;  %v979_v14 = vmul.f32 %v6184_v9, %v6184_v9  ;;  %v1136_v26 = vadd.f32 %v1135_v57, %v978_v19  ;;  %v963_v21 = vmul.f32 %v6186_v43, %v6186_v43  ;;  %v6187_v51 = vld [vmem:[#allocation113_spill] sm:$0xff]  ;;  %v6191_v43 = vld [vmem:[#allocation111_spill] sm:$0xff] }
 0x11c   : > { %1049 = vadd.xlane.f32.xlu0 %v6185_v42  ;;  %1070 = vadd.xlane.f32.xlu1 %v3585_v41  ;;  %v990_v37 = vmul.f32 %v3558_v61, %v3558_v61  ;;  %v1149_v3 = vadd.f32 %v989_v62, %v988_v23  ;;  %v973_v63 = vmul.f32 %v6187_v51, %v6187_v51  ;;  %v6188_v36 = vld [vmem:[#allocation121_spill] sm:$0xff]  ;;  %v6190_v41 = vld [vmem:[#allocation108_spill] sm:$0xff] }
 0x11d   : > { %v1129_v38 = vadd.f32 %v1128_v10, %v972_v27  ;;  %v982_v33 = vmul.f32 %v6188_v36, %v6188_v36  ;;  %v983_v19 = vmul.f32 %v6189_v53, %v6189_v53  ;;  %v1104_v57 = vadd.f32 %v1103_v40, %v951_v35  ;;  %v6192_v27 = vld [vmem:[#allocation114_spill] sm:$0xff]  ;;  %v6193_v40 = vld [vmem:[#allocation119_spill] sm:$0xff]  ;;  %v6194_v53 = vld [vmem:[#allocation117_spill] sm:$0xff] }
 0x11e   : > { %v1125_v42 = vadd.f32 %v1124_v44, %v969_v8  ;;  %v980_v9 = vmul.f32 %v6190_v41, %v6190_v41  ;;  %v981_v7 = vmul.f32 %v6191_v43, %v6191_v43  ;;  %v1117_v61 = vadd.f32 %v1116_v4, %v962_v34  ;;  %v6196_v36 = vld [vmem:[#allocation134_spill] sm:$0xff] }
 0x11f   : > { %v1137_v23 = vadd.f32 %v1136_v26, %v979_v14  ;;  %v1000_v62 = vmul.f32 %v3631_v30, %v3631_v30  ;;  %v1001_v10 = vmul.f32 %v3633_v58, %v3633_v58  ;;  %v974_v35 = vmul.f32 %v6192_v27, %v6192_v27 }
 0x120   : > { %1063 = vadd.xlane.f32.xlu0 %v3659_v5  ;;  %1084 = vadd.xlane.f32.xlu1 %v3740_v59  ;;  %v991_v8 = vmul.f32 %v6193_v40, %v6193_v40  ;;  %v1150_v44 = vadd.f32 %v1149_v3, %v990_v37  ;;  %v975_v14 = vmul.f32 %v6194_v53, %v6194_v53  ;;  %v6195_v59 = vld [vmem:[#allocation133_spill] sm:$0xff]  ;;  %v6197_v3 = vld [vmem:[#allocation120_spill] sm:$0xff] }
 0x121   : > { %v1130_v34 = vadd.f32 %v1129_v38, %v973_v63  ;;  %v984_v4 = vmul.f32 %v3600_v32, %v3600_v32  ;;  %v1142_v26 = vadd.f32 %v983_v19, %v982_v33  ;;  %v1002_v5 = vmul.f32 %v3638_v45, %v3638_v45  ;;  %v6198_v63 = vld [vmem:[#allocation123_spill] sm:$0xff]  ;;  %v6199_v19 = vld [vmem:[#allocation125_spill] sm:$0xff] }
 0x122   : > { %v1163_v58 = vadd.f32 %v1001_v10, %v1000_v62  ;;  %v994_v30 = vmul.f32 %v6195_v59, %v6195_v59  ;;  %v995_v27 = vmul.f32 %v6196_v36, %v6196_v36  ;;  %v1118_v40 = vadd.f32 %v1117_v61, %v963_v21  ;;  %v6200_v10 = vld [vmem:[#allocation126_spill] sm:$0xff]  ;;  %v6201_v61 = vld [vmem:[#allocation139_spill] sm:$0xff]  ;;  %v6202_v21 = vld [vmem:[#allocation140_spill] sm:$0xff] }
 0x123   : > { %v1138_v37 = vadd.f32 %v1137_v23, %v980_v9  ;;  %v992_v53 = vmul.f32 %v6197_v3, %v6197_v3  ;;  %v993_v38 = vmul.f32 %v6198_v63, %v6198_v63  ;;  %v1151_v33 = vadd.f32 %v1150_v44, %v991_v8  ;;  %v6203_v32 = vld [vmem:[#allocation131_spill] sm:$0xff]  ;;  %v6205_v3 = vld [vmem:[#allocation142_spill] sm:$0xff] }
 0x124   : > { %1077 = vadd.xlane.f32.xlu0 %v3882_v17  ;;  %1098 = vadd.xlane.f32.xlu1 %v1097_v11  ;;  %v985_v62 = vmul.f32 %v6199_v19, %v6199_v19  ;;  %v986_v59 = vmul.f32 %v6200_v10, %v6200_v10  ;;  %v1131_v45 = vadd.f32 %v1130_v34, %v974_v35  ;;  %v6204_v11 = vld [vmem:[#allocation136_spill] sm:$0xff] }
 0x125   : > { %v1143_v36 = vadd.f32 %v1142_v26, %v984_v4  ;;  %v1012_v9 = vmul.f32 %v6201_v61, %v6201_v61  ;;  %v1013_v23 = vmul.f32 %v6202_v21, %v6202_v21  ;;  %v1003_v63 = vmul.f32 %v6203_v32, %v6203_v32  ;;  %v6206_v26 = vld [vmem:[#allocation129_spill] sm:$0xff]  ;;  %v6361_v32 = vld [vmem:[#allocation23_spill] sm:$0xff] }
 0x126   : > { %v1164_v17 = vadd.f32 %v1163_v58, %v1002_v5  ;;  %v996_v8 = vmul.f32 %v6204_v11, %v6204_v11  ;;  %v1156_v44 = vadd.f32 %v995_v27, %v994_v30  ;;  %v1139_v19 = vadd.f32 %v1138_v37, %v981_v7  ;;  %v6207_v58 = vld [vmem:[#allocation146_spill] sm:$0xff]  ;;  %v6208_v7 = vld [vmem:[#allocation132_spill] sm:$0xff]  ;;  %v6209_v37 = vld [vmem:[#allocation137_spill] sm:$0xff] }
 0x127   : > { %v1014_v10 = vmul.f32 %v6205_v3, %v6205_v3  ;;  %v1177_v35 = vadd.f32 %v1013_v23, %v1012_v9  ;;  %v1006_v34 = vmul.f32 %v3756_v55, %v3756_v55  ;;  %v1152_v4 = vadd.f32 %v1151_v33, %v992_v53  ;;  %v6210_v3 = vld [vmem:[#allocation143_spill] sm:$0xff]  ;;  %v6211_v33 = vld [vmem:[#allocation148_spill] sm:$0xff] }
 0x128   : > { %1091 = vadd.xlane.f32.xlu0 %v3917_v16  ;;  %1112 = vadd.xlane.f32.xlu1 %v1111_v1  ;;  %v987_v21 = vmul.f32 %v6206_v26, %v6206_v26  ;;  %v1007_v5 = vmul.f32 %v6207_v58, %v6207_v58  ;;  %v1132_v61 = vadd.f32 %v1131_v45, %v975_v14 }
 0x129   : > { %v1144_v30 = vadd.f32 %v1143_v36, %v985_v62  ;;  %v1004_v27 = vmul.f32 %v6208_v7, %v6208_v7  ;;  %v997_v9 = vmul.f32 %v6209_v37, %v6209_v37  ;;  %v1165_v23 = vadd.f32 %v1164_v17, %v1003_v63  ;;  %v6212_v62 = vld [vmem:[#allocation135_spill] sm:$0xff] }
 0x12a   : > { %v1157_v55 = vadd.f32 %v1156_v44, %v996_v8  ;;  %v1015_v16 = vmul.f32 %v6210_v3, %v6210_v3  ;;  %v1024_v53 = vmul.f32 %v3795_v20, %v3795_v20  ;;  %v1178_v1 = vadd.f32 %v1177_v35, %v1014_v10  ;;  %v6213_v44 = vld [vmem:[#allocation138_spill] sm:$0xff] }
 0x12b   : > { %v1008_v58 = vmul.f32 %v6211_v33, %v6211_v33  ;;  %v1170_v45 = vadd.f32 %v1007_v5, %v1006_v34  ;;  %v1025_v36 = vmul.f32 %v3797_v2, %v3797_v2  ;;  %v1153_v14 = vadd.f32 %v1152_v4, %v993_v38  ;;  %v6214_v2 = vld [vmem:[#allocation144_spill] sm:$0xff]  ;;  %v6215_v4 = vld [vmem:[#allocation149_spill] sm:$0xff] }
 0x12c   : > { %1105 = vadd.xlane.f32.xlu0 %v1104_v57  ;;  %1126 = vadd.xlane.f32.xlu1 %v1125_v42  ;;  %v1005_v63 = vmul.f32 %v6212_v62, %v6212_v62  ;;  %v1026_v17 = vmul.f32 %v3801_v0, %v3801_v0  ;;  %v1145_v8 = vadd.f32 %v1144_v30, %v986_v59 }
 0x12d   : > { %v998_v10 = vmul.f32 %v6213_v44, %v6213_v44  ;;  %v1191_v35 = vadd.f32 %v1025_v36, %v1024_v53  ;;  %v1018_v34 = vmul.f32 %v3829_v13, %v3829_v13  ;;  %v1166_v5 = vadd.f32 %v1165_v23, %v1004_v27 }
 0x12e   : > { %v1158_v20 = vadd.f32 %v1157_v55, %v997_v9  ;;  %v1016_v57 = vmul.f32 %v6214_v2, %v6214_v2  ;;  %v1019_v42 = vmul.f32 %v3831_v39, %v3831_v39  ;;  %v1179_v38 = vadd.f32 %v1178_v1, %v1015_v16  ;;  %v6216_v9 = vld [vmem:[#allocation141_spill] sm:$0xff]  ;;  %v6217_v16 = vld [vmem:[#allocation147_spill] sm:$0xff] }
 0x12f   : > { %v1009_v0 = vmul.f32 %v6215_v4, %v6215_v4  ;;  %v1171_v59 = vadd.f32 %v1170_v45, %v1008_v58  ;;  %v1027_v30 = vmul.f32 %v3811_v52, %v3811_v52  ;;  %v1192_v53 = vadd.f32 %v1191_v35, %v1026_v17 }
 0x130   : > { %1119 = vadd.xlane.f32.xlu0 %v1118_v40  ;;  %1140 = vadd.xlane.f32.xlu1 %v1139_v19  ;;  %v1020_v55 = vmul.f32 %v3835_v49, %v3835_v49  ;;  %v1184_v27 = vadd.f32 %v1019_v42, %v1018_v34  ;;  %v999_v23 = vmul.f32 %v6216_v9, %v6216_v9  ;;  %v6350_v9 = vld [vmem:[#allocation21_spill] sm:$0xff] }
 0x131   : > { %v1146_v36 = vadd.f32 %v1145_v8, %v987_v21  ;;  %v1167_v39 = vadd.f32 %v1166_v5, %v1005_v63  ;;  %v1017_v1 = vmul.f32 %v6217_v16, %v6217_v16  ;;  %v1010_v58 = vmul.f32 %v3779_v29, %v3779_v29 }
 0x132   : > { %v1159_v45 = vadd.f32 %v1158_v20, %v998_v10  ;;  %v1180_v13 = vadd.f32 %v1179_v38, %v1016_v57  ;;  %v1172_v40 = vadd.f32 %v1171_v59, %v1009_v0  ;;  %v1028_v19 = vmul.f32 %v3817_v46, %v3817_v46  ;;  %v738_v59 = vpop.xlane.xlu1 %737 }
 0x133   : > { %v1193_v17 = vadd.f32 %v1192_v53, %v1027_v30  ;;  %v1021_v35 = vmul.f32 %v3845_v25, %v3845_v25  ;;  %v1185_v21 = vadd.f32 %v1184_v27, %v1020_v55  ;;  %v1011_v63 = vmul.f32 %v3799_v12, %v3799_v12 }
 0x134   : > { %1133 = vadd.xlane.f32.xlu0 %v1132_v61  ;;  %1154 = vadd.xlane.f32.xlu1 %v1153_v14  ;;  %v1160_v8 = vadd.f32 %v1159_v45, %v999_v23  ;;  %v1181_v34 = vadd.f32 %v1180_v13, %v1017_v1  ;;  %v1029_v20 = vmul.f32 %v3819_v56, %v3819_v56 }
 0x135   : > { %v1022_v0 = vmul.f32 %v3855_v28, %v3855_v28  ;;  %v1173_v61 = vadd.f32 %v1172_v40, %v1010_v58  ;;  %v1194_v14 = vadd.f32 %v1193_v17, %v1028_v19  ;;  %v1186_v10 = vadd.f32 %v1185_v21, %v1021_v35  ;;  %v1654_v21 = vld [vmem:[#allocation7] sm:$0x3f] }
 0x136   : > { %v1023_v5 = vmul.f32 %v3860_v22, %v3860_v22  ;;  %v1656_v58 = vlaneseq }
 0x137   : > { %v1174_v57 = vadd.f32 %v1173_v61, %v1011_v63  ;;  %v1195_v42 = vadd.f32 %v1194_v14, %v1029_v20  ;;  %v1187_v38 = vadd.f32 %v1186_v10, %v1022_v0  ;;  %v724_v30 = vpop.xlane.xlu0 %723  ;;  %v1830_v14 = vld [vmem:[#allocation8] sm:$0x3f]  ;;  %v4057_v10 = vmul.f32 0.0013020834, %v738_v59 }
 0x138   : > { %1147 = vadd.xlane.f32.xlu0 %v1146_v36  ;;  %1168 = vadd.xlane.f32.xlu1 %v1167_v39  ;;  %v1657_v40 = vshrl.u32 %v1656_v58, 7  ;;  %v4069_v58 = vmul.f32 0.0013020834, %v724_v30 }
 0x139   : > { %v1188_v13 = vadd.f32 %v1187_v38, %v1023_v5  ;;  %6218 = vst [vmem:[#allocation88_spill] sm:$0xff] %v4057_v10  ;;  %v4105_v30 = vmul.f32 %v4057_v10, %v4057_v10 }
 0x13a   : > { %v1658_v17 = vsub.s32 0, %v1657_v40  ;;  %v1662_v63 = vsub.s32 1, %v1657_v40  ;;  %v1674_v20 = vsub.s32 4, %v1657_v40  ;;  %v1678_v61 = vsub.s32 5, %v1657_v40  ;;  %6220 = vst [vmem:[#allocation96_spill] sm:$0xff] %v4069_v58 }
 0x13b   : > { %v745_v53 = vpop.xlane.xlu1 %744 }
 0x13c   : > { %1161 = vadd.xlane.f32.xlu0 %v1160_v8  ;;  %1182 = vadd.xlane.f32.xlu1 %v1181_v34  ;;  %v1666_v8 = vsub.s32 2, %v1657_v40  ;;  %v1670_v34 = vsub.s32 3, %v1657_v40  ;;  %v4059_v5 = vrot.slane %v1654_v21, %v1658_v17  ;;  %v4071_v22 = vrot.slane %v1830_v14, %v1658_v17 }
 0x13d   : > { %v4073_v28 = vrot.slane %v1830_v14, %v1662_v63  ;;  %v4079_v25 = vrot.slane %v1654_v21, %v1678_v61  ;;  %v4083_v56 = vrot.slane %v1830_v14, %v1674_v20  ;;  %v4085_v46 = vrot.slane %v1830_v14, %v1678_v61  ;;  %v6250_v61 = vld [vmem:[#allocation36_spill] sm:$0xff] }
 0x13e   : > { %v4065_v38 = vrot.slane %v1654_v21, %v1670_v34  ;;  %6221 = vst [vmem:[#allocation89_spill] sm:$0xff] %v4071_v22  ;;  %v4075_v40 = vrot.slane %v1830_v14, %v1666_v8  ;;  %v4081_v49 = vrot.slane %v1830_v14, %v1670_v34  ;;  %v4093_v29 = vmul.f32 0.0013020834, %v745_v53  ;;  %v6281_v22 = vld [vmem:[#allocation63_spill] sm:$0xff]  ;;  %v6287_v53 = vld [vmem:[#allocation69_spill] sm:$0xff] }
 0x13f   : > { %6222 = vst [vmem:[#allocation164_spill] sm:$0xff] %v4073_v28  ;;  %6224 = vst [vmem:[#allocation166_spill] sm:$0xff] %v4079_v25 }
 0x140   : > { %1175 = vadd.xlane.f32.xlu0 %v1174_v57  ;;  %1196 = vadd.xlane.f32.xlu1 %v1195_v42  ;;  %v731_v55 = vpop.xlane.xlu0 %730  ;;  %v4061_v57 = vrot.slane %v1654_v21, %v1662_v63  ;;  %v4063_v42 = vrot.slane %v1654_v21, %v1666_v8  ;;  %6223 = vst [vmem:[#allocation165_spill] sm:$0xff] %v4075_v40  ;;  %6225 = vst [vmem:[#allocation167_spill] sm:$0xff] %v4081_v49 }
 0x141   : > { %6226 = vst [vmem:[#allocation168_spill] sm:$0xff] %v4083_v56  ;;  %6227 = vst [vmem:[#allocation169_spill] sm:$0xff] %v4085_v46  ;;  %v4113_v3 = vmul.f32 0.0013020834, %v731_v55  ;;  %v4123_v8 = vmul.f32 %v4069_v58, %v4069_v58  ;;  %v4143_v17 = vmul.f32 %v4093_v29, %v4093_v29  ;;  %v6248_v55 = vld [vmem:[#allocation33_spill] sm:$0xff] }
 0x142   : > { %6231 = vst [vmem:[#allocation170_spill] sm:$0xff] %v4093_v29  ;;  %v6254_v29 = vld [vmem:[#allocation41_spill] sm:$0xff] }
 0x143   : > { %v4163_v52 = vmul.f32 %v4113_v3, %v4113_v3 }
 0x144   : > { %1189 = vadd.xlane.f32.xlu0 %v1188_v13  ;;  %v4067_v13 = vrot.slane %v1654_v21, %v1674_v20  ;;  %v6252_v21 = vld [vmem:[#allocation37_spill] sm:$0xff]  ;;  %v6253_v20 = vld [vmem:[#allocation38_spill] sm:$0xff] }
 0x145   : > { %v759_v39 = vpop.xlane.xlu1 %758  ;;  %v6355_v44 = vld [vmem:[#allocation89_spill] sm:$0xff] }
 0x146   : > { %6219 = vst [vmem:[#allocation85_spill] sm:$0xff] %v4067_v13  ;;  %v4131_v14 = vmul.f32 0.0013020834, %v759_v39  ;;  %v6249_v39 = vld [vmem:[#allocation34_spill] sm:$0xff]  ;;  %v6356_v37 = vld [vmem:[#allocation164_spill] sm:$0xff] }
 0x148   : > { %6244 = vst [vmem:[#allocation171_spill] sm:$0xff] %v4131_v14  ;;  %v4182_v34 = vmul.f32 %v4131_v14, %v4131_v14 }
 0x149   : > { %v752_v27 = vpop.xlane.xlu0 %751 }
 0x14a   : > { %v4151_v2 = vmul.f32 0.0013020834, %v752_v27 }
 0x14c   : > { %6251 = vst [vmem:[#allocation33_spill] sm:$0xff] %v4151_v2 }
 0x14e   : > { %v4043_v23 = vpop.xlane.xlu1 %772 }
 0x14f   : > { %v4172_v63 = vmul.f32 0.0013020834, %v4043_v23  ;;  %v4203_v23 = vmul.f32 %v4151_v2, %v4151_v2 }
 0x151   : > { %6258 = vst [vmem:[#allocation34_spill] sm:$0xff] %v4172_v63  ;;  %v4224_v4 = vmul.f32 %v4172_v63, %v4172_v63 }
 0x153   : > { %v4045_v36 = vpop.xlane.xlu0 %765 }
 0x154   : > { %v4191_v28 = vmul.f32 0.0013020834, %v4045_v36 }
 0x156   : > { %6265 = vst [vmem:[#allocation36_spill] sm:$0xff] %v4191_v28  ;;  %v4243_v27 = vmul.f32 %v4191_v28, %v4191_v28 }
 0x157   : > { %v4047_v1 = vpop.xlane.xlu1 %786 }
 0x158   : > { %v4212_v58 = vmul.f32 0.0013020834, %v4047_v1 }
 0x15c   : > { %v4049_v45 = vpop.xlane.xlu0 %779 }
 0x15d   : > { %v4233_v40 = vmul.f32 0.0013020834, %v4049_v45  ;;  %v4264_v45 = vmul.f32 %v4212_v58, %v4212_v58 }
 0x15f   : > { %v4285_v16 = vmul.f32 %v4233_v40, %v4233_v40 }
 0x161   : > { %v4051_v19 = vpop.xlane.xlu1 %800 }
 0x162   : > { %v4252_v2 = vmul.f32 0.0013020834, %v4051_v19  ;;  %v6288_v19 = vld [vmem:[#allocation70_spill] sm:$0xff] }
 0x164   : > { %6284 = vst [vmem:[#allocation37_spill] sm:$0xff] %v4252_v2  ;;  %v4304_v1 = vmul.f32 %v4252_v2, %v4252_v2 }
 0x166   : > { %v4053_v35 = vpop.xlane.xlu0 %793 }
 0x167   : > { %v4273_v63 = vmul.f32 0.0013020834, %v4053_v35 }
 0x169   : > { %6290 = vst [vmem:[#allocation38_spill] sm:$0xff] %v4273_v63 }
 0x16a   : > { %v4055_v0 = vpop.xlane.xlu1 %814 }
 0x16b   : > { %v4294_v48 = vmul.f32 0.0013020834, %v4055_v0  ;;  %v4325_v0 = vmul.f32 %v4273_v63, %v4273_v63 }
 0x16d   : > { %6294 = vst [vmem:[#allocation41_spill] sm:$0xff] %v4294_v48  ;;  %v4346_v49 = vmul.f32 %v4294_v48, %v4294_v48 }
 0x16f   : > { %v4077_v59 = vpop.xlane.xlu0 %807 }
 0x170   : > { %v4313_v10 = vmul.f32 0.0013020834, %v4077_v59 }
 0x172   : > { %6298 = vst [vmem:[#allocation63_spill] sm:$0xff] %v4313_v10  ;;  %v4365_v35 = vmul.f32 %v4313_v10, %v4313_v10 }
 0x175   : > { %v4101_v33 = vpop.xlane.xlu1 %828 }
 0x176   : > { %v4334_v15 = vmul.f32 0.0013020834, %v4101_v33 }
 0x178   : > { %6304 = vst [vmem:[#allocation69_spill] sm:$0xff] %v4334_v15 }
 0x179   : > { %v4139_v46 = vpop.xlane.xlu0 %821 }
 0x17a   : > { %v4355_v24 = vmul.f32 0.0013020834, %v4139_v46  ;;  %v4386_v46 = vmul.f32 %v4334_v15, %v4334_v15 }
 0x17c   : > { %6309 = vst [vmem:[#allocation70_spill] sm:$0xff] %v4355_v24  ;;  %v4411_v48 = vmul.f32 %v4355_v24, %v4355_v24 }
 0x17e   : > { %v4159_v56 = vpop.xlane.xlu1 %842 }
 0x17f   : > { %v4374_v47 = vmul.f32 0.0013020834, %v4159_v56 }
 0x181   : > { %6316 = vst [vmem:[#allocation172_spill] sm:$0xff] %v4374_v47  ;;  %v4425_v6 = vmul.f32 %v4374_v47, %v4374_v47 }
 0x183   : > { %v4199_v25 = vpop.xlane.xlu0 %835 }
 0x184   : > { %v4401_v10 = vmul.f32 0.0013020834, %v4199_v25 }
 0x189   : > { %v4220_v13 = vpop.xlane.xlu1 %856 }
 0x18a   : > { %v4418_v50 = vmul.f32 0.0013020834, %v4220_v13 }
 0x18c   : > { %6328 = vst [vmem:[#allocation173_spill] sm:$0xff] %v4418_v50 }
 0x18d   : > { %v4260_v28 = vpop.xlane.xlu0 %849 }
 0x18e   : > { %v4452_v41 = vmul.f32 0.0013020834, %v4260_v28  ;;  %v4464_v28 = vmul.f32 %v4418_v50, %v4418_v50 }
 0x190   : > { %6338 = vst [vmem:[#allocation174_spill] sm:$0xff] %v4452_v41 }
 0x193   : > { %v4281_v14 = vpop.xlane.xlu1 %870 }
 0x198   : > { %v4321_v2 = vpop.xlane.xlu0 %863 }
 0x19d   : > { %v4342_v63 = vpop.xlane.xlu1 %884 }
 0x1a1   : > { %v4382_v54 = vpop.xlane.xlu0 %877  ;;  %v1043_v33 = vpop.xlane.xlu1 %1042 }
 0x1a2   : > { %v1223_v36 = vmul.f32 0.0013020834, %v1043_v33 }
 0x1a4   : > { %v1271_v60 = vsub.f32 %v1223_v36, %v4163_v52 }
 0x1a5   : > { %v1036_v56 = vpop.xlane.xlu0 %1035  ;;  %v1057_v31 = vpop.xlane.xlu1 %1056 }
 0x1a6   : > { %v1222_v33 = vmul.f32 0.0013020834, %v1036_v56  ;;  %v1225_v51 = vmul.f32 0.0013020834, %v1057_v31  ;;  %v1295_v36 = vmax.f32 %v1271_v60, 0.0  ;;  %v4445_v60 = vmul.f32 %v4401_v10, %v4401_v10 }
 0x1a8   : > { %v1270_v59 = vsub.f32 %v1222_v33, %v4123_v8  ;;  %v1273_v18 = vsub.f32 %v1225_v51, %v4143_v17  ;;  %v1319_v25 = vadd.f32 1e-12, %v1295_v36  ;;  %v6363_v17 = vld [vmem:[#allocation25_spill] sm:$0xff]  ;;  %v6380_v8 = vld [vmem:[#allocation35_spill] sm:$0xff] }
 0x1a9   : > { %v1050_v47 = vpop.xlane.xlu0 %1049  ;;  %v1071_v52 = vpop.xlane.xlu1 %1070 }
 0x1aa   : > { %v1294_v12 = vmax.f32 %v1270_v59, 0.0  ;;  %v1297_v24 = vmax.f32 %v1273_v18, 0.0  ;;  %v1224_v31 = vmul.f32 0.0013020834, %v1050_v47  ;;  %v1227_v56 = vmul.f32 0.0013020834, %v1071_v52 }
 0x1ab   : > { %2378 = vrsqrt.f32 %v1319_v25  ;;  %v4471_v47 = vmul.f32 0.0013020834, %v4281_v14 }
 0x1ac   : > { %v1318_v36 = vadd.f32 1e-12, %v1294_v12  ;;  %v1321_v13 = vadd.f32 1e-12, %v1297_v24  ;;  %v1272_v43 = vsub.f32 %v1224_v31, %v4105_v30  ;;  %v1275_v26 = vsub.f32 %v1227_v56, %v4182_v34 }
 0x1ad   : > { %v1064_v52 = vpop.xlane.xlu0 %1063  ;;  %v1085_v33 = vpop.xlane.xlu1 %1084  ;;  %6341 = vst [vmem:[#allocation175_spill] sm:$0xff] %v4471_v47 }
 0x1ae   : > { %2380 = vrsqrt.f32 %v1318_v36  ;;  %v1296_v24 = vmax.f32 %v1272_v43, 0.0  ;;  %v1299_v12 = vmax.f32 %v1275_v26, 0.0  ;;  %v1226_v30 = vmul.f32 0.0013020834, %v1064_v52 }
 0x1af   : > { %v1229_v59 = vmul.f32 0.0013020834, %v1085_v33  ;;  %2382 = vrsqrt.f32 %v1321_v13  ;;  %v6342_v33 = vsub.f32 %v6248_v55, %v4113_v3  ;;  %v6347_v55 = vsub.f32 %v6254_v29, %v4113_v3  ;;  %v6351_v29 = vld [vmem:[#allocation96_spill] sm:$0xff] }
 0x1b0   : > { %v1320_v51 = vadd.f32 1e-12, %v1296_v24  ;;  %v1274_v36 = vsub.f32 %v1226_v30, %v4203_v23  ;;  %v1323_v52 = vadd.f32 1e-12, %v1299_v12  ;;  %v4486_v23 = vmul.f32 0.0013020834, %v4321_v2 }
 0x1b1   : > { %v1277_v31 = vsub.f32 %v1229_v59, %v4224_v4  ;;  %v1078_v25 = vpop.xlane.xlu0 %1077  ;;  %v1099_v14 = vpop.xlane.xlu1 %1098  ;;  %v4490_v30 = vmul.f32 %v4452_v41, %v4452_v41  ;;  %v4494_v4 = vmul.f32 %v4471_v47, %v4471_v47  ;;  %v4497_v59 = vmul.f32 0.0013020834, %v4342_v63  ;;  %v6393_v47 = vld [vmem:[#allocation24_spill] sm:$0xff] }
 0x1b2   : > { %v1298_v56 = vmax.f32 %v1274_v36, 0.0  ;;  %v1228_v18 = vmul.f32 0.0013020834, %v1078_v25  ;;  %v4483_v13 = vmul.f32 0.0013020834, %v1099_v14  ;;  %2384 = vrsqrt.f32 %v1320_v51 }
 0x1b3   : > { %v1301_v24 = vmax.f32 %v1277_v31, 0.0  ;;  %v4501_v2 = vmul.f32 0.0013020834, %v4382_v54  ;;  %2386 = vrsqrt.f32 %v1323_v52  ;;  %v6343_v63 = vsub.f32 %v6249_v39, %v4113_v3 }
 0x1b4   : > { %v1322_v12 = vadd.f32 1e-12, %v1298_v56  ;;  %v1276_v25 = vsub.f32 %v1228_v18, %v4243_v27  ;;  %v6344_v27 = vsub.f32 %v6250_v61, %v4113_v3  ;;  %v6345_v54 = vsub.f32 %v6252_v21, %v4113_v3 }
 0x1b5   : > { %v2379_v36 = vpop.eup %2378  ;;  %v4503_v31 = vadd.f32 1e-12, %v1301_v24  ;;  %v6346_v52 = vsub.f32 %v6253_v20, %v4113_v3  ;;  %v6352_v3 = vsub.f32 %v6350_v9, %v6351_v29  ;;  %v6362_v9 = vsub.f32 %v6361_v32, %v6351_v29  ;;  %v4600_v50 = vpop.xlane.xlu0 %1091 }
 0x1b6   : > { %v1516_v26 = vmul.f32 %v2379_v36, %v6342_v33  ;;  %v1517_v51 = vmul.f32 %v2379_v36, %v6343_v63  ;;  %v1518_v18 = vmul.f32 %v2379_v36, %v6344_v27  ;;  %v1519_v56 = vmul.f32 %v2379_v36, %v6345_v54  ;;  %v6348_v54 = vld [vmem:[#allocation85_spill] sm:$0xff] }
 0x1b7   : > { %v1520_v24 = vmul.f32 %v2379_v36, %v6346_v52  ;;  %v1521_v33 = vmul.f32 %v2379_v36, %v6347_v55  ;;  %2388 = vrsqrt.f32 %v1322_v12  ;;  %v4525_v43 = vmax.f32 %v1276_v25, 0.0  ;;  %v6349_v52 = vld [vmem:[#allocation166_spill] sm:$0xff] }
 0x1b8   : > { %v2381_v39 = vpop.eup %2380  ;;  %v1692_v63 = vmul.f32 %v4059_v5, %v1516_v26  ;;  %v1693_v61 = vmul.f32 %v4061_v57, %v1517_v51  ;;  %v1694_v21 = vmul.f32 %v4063_v42, %v1518_v18  ;;  %v1695_v27 = vmul.f32 %v4065_v38, %v1519_v56  ;;  %v6353_v25 = vld [vmem:[#allocation22_spill] sm:$0xff]  ;;  %v6357_v18 = vld [vmem:[#allocation165_spill] sm:$0xff]  ;;  %v6358_v56 = vld [vmem:[#allocation167_spill] sm:$0xff] }
 0x1b9   : > { %v1696_v20 = vmul.f32 %v6348_v54, %v1520_v24  ;;  %v1697_v14 = vmul.f32 %v6349_v52, %v1521_v33  ;;  %v1510_v12 = vmul.f32 %v2381_v39, %v6352_v3  ;;  %v6354_v36 = vsub.f32 %v6353_v25, %v6351_v29  ;;  %v2383_v26 = vpop.eup %2382  ;;  %v6359_v24 = vld [vmem:[#allocation168_spill] sm:$0xff]  ;;  %v6360_v33 = vld [vmem:[#allocation169_spill] sm:$0xff] }
 0x1ba   : > { %v1868_v51 = vadd.f32 %v6355_v44, %v1692_v63  ;;  %v1869_v11 = vadd.f32 %v6356_v37, %v1693_v61  ;;  %v1870_v41 = vadd.f32 %v6357_v18, %v1694_v21  ;;  %v1871_v34 = vadd.f32 %v6358_v56, %v1695_v27  ;;  %v6367_v61 = vld [vmem:[#allocation29_spill] sm:$0xff] }
 0x1bb   : > { %v1511_v55 = vmul.f32 %v2381_v39, %v6354_v36  ;;  %v1872_v62 = vadd.f32 %v6359_v24, %v1696_v20  ;;  %v1873_v7 = vadd.f32 %v6360_v33, %v1697_v14  ;;  %v1512_v3 = vmul.f32 %v2381_v39, %v6362_v9  ;;  %v6365_v14 = vld [vmem:[#allocation26_spill] sm:$0xff] }
 0x1bc   : > { %v6364_v25 = vsub.f32 %v6363_v17, %v6351_v29  ;;  %2012 = vst [vmem:[%s4552_s26 + $0x30] sm:$0xff] %v1868_v51  ;;  %2013 = vst [vmem:[%s4552_s26 + $0x38] sm:$0xff] %v1869_v11  ;;  %v6366_v32 = vsub.f32 %v6365_v14, %v6351_v29  ;;  %v6368_v17 = vsub.f32 %v6367_v61, %v6351_v29  ;;  %v6369_v11 = vld [vmem:[#allocation27_spill] sm:$0xff]  ;;  %v6372_v14 = vld [vmem:[#allocation28_spill] sm:$0xff]  ;;  %2390 = vrsqrt.f32 %v4503_v31 }
 0x1bd   : > { %2014 = vst [vmem:[%s4552_s26 + $0x40] sm:$0xff] %v1870_v41  ;;  %2015 = vst [vmem:[%s4552_s26 + $0x48] sm:$0xff] %v1871_v34  ;;  %v1686_v27 = vmul.f32 %v4059_v5, %v1510_v12  ;;  %v1687_v20 = vmul.f32 %v4061_v57, %v1511_v55  ;;  %v1688_v9 = vmul.f32 %v4063_v42, %v1512_v3  ;;  %v6370_v34 = vld [vmem:[#allocation170_spill] sm:$0xff] }
 0x1be   : > { %v1513_v36 = vmul.f32 %v2381_v39, %v6364_v25  ;;  %v1514_v63 = vmul.f32 %v2381_v39, %v6366_v32  ;;  %v1515_v21 = vmul.f32 %v2381_v39, %v6368_v17  ;;  %2016 = vst [vmem:[%s4552_s26 + $0x50] sm:$0xff] %v1872_v62  ;;  %2017 = vst [vmem:[%s4552_s26 + $0x58] sm:$0xff] %v1873_v7  ;;  %v2385_v32 = vpop.eup %2384  ;;  %v6374_v17 = vld [vmem:[#allocation30_spill] sm:$0xff] }
 0x1bf   : > { %v6371_v51 = vsub.f32 %v6369_v11, %v6370_v34  ;;  %v6373_v29 = vsub.f32 %v6372_v14, %v6370_v34  ;;  %v1862_v7 = vadd.f32 %v6355_v44, %v1686_v27  ;;  %v1863_v55 = vadd.f32 %v6356_v37, %v1687_v20  ;;  %v4580_v3 = vpop.eup %2386  ;;  %v6376_v14 = vld [vmem:[#allocation31_spill] sm:$0xff] }
 0x1c0   : > { %v1689_v41 = vmul.f32 %v4065_v38, %v1513_v36  ;;  %v1690_v12 = vmul.f32 %v6348_v54, %v1514_v63  ;;  %v1691_v62 = vmul.f32 %v6349_v52, %v1515_v21  ;;  %v1864_v36 = vadd.f32 %v6357_v18, %v1688_v9 }
 0x1c1   : > { %v1528_v25 = vmul.f32 %v2383_v26, %v6371_v51  ;;  %v1529_v39 = vmul.f32 %v2383_v26, %v6373_v29  ;;  %v6375_v11 = vsub.f32 %v6374_v17, %v6370_v34  ;;  %v6377_v63 = vsub.f32 %v6376_v14, %v6370_v34  ;;  %2006 = vst [vmem:[%s4552_s26] sm:$0xff] %v1862_v7  ;;  %v6378_v29 = vld [vmem:[#allocation32_spill] sm:$0xff]  ;;  %v4602_v14 = vpop.eup %2388 }
 0x1c2   : > { %v1865_v61 = vadd.f32 %v6358_v56, %v1689_v41  ;;  %v1866_v27 = vadd.f32 %v6359_v24, %v1690_v12  ;;  %v1867_v20 = vadd.f32 %v6360_v33, %v1691_v62  ;;  %2007 = vst [vmem:[%s4552_s26 + $0x8] sm:$0xff] %v1863_v55  ;;  %v6379_v9 = vsub.f32 %v6378_v29, %v6370_v34  ;;  %v4620_v29 = vpop.xlane.xlu1 %1112 }
 0x1c3   : > { %v1530_v51 = vmul.f32 %v2383_v26, %v6375_v11  ;;  %v1531_v21 = vmul.f32 %v2383_v26, %v6377_v63  ;;  %v6381_v17 = vsub.f32 %v6380_v8, %v6370_v34  ;;  %2008 = vst [vmem:[%s4552_s26 + $0x10] sm:$0xff] %v1864_v36  ;;  %v1704_v12 = vmul.f32 %v4059_v5, %v1528_v25  ;;  %v6382_v34 = vld [vmem:[#allocation16_spill] sm:$0xff]  ;;  %v6385_v63 = vld [vmem:[#allocation17_spill] sm:$0xff] }
 0x1c4   : > { %v1532_v41 = vmul.f32 %v2383_v26, %v6379_v9  ;;  %2009 = vst [vmem:[%s4552_s26 + $0x18] sm:$0xff] %v1865_v61  ;;  %v1705_v62 = vmul.f32 %v4061_v57, %v1529_v39  ;;  %2010 = vst [vmem:[%s4552_s26 + $0x20] sm:$0xff] %v1866_v27  ;;  %v6383_v36 = vld [vmem:[#allocation88_spill] sm:$0xff]  ;;  %v6421_v31 = vsub.f32 %v4483_v13, %v4264_v45 }
 0x1c5   : > { %v1533_v11 = vmul.f32 %v2383_v26, %v6381_v17  ;;  %v1706_v7 = vmul.f32 %v4063_v42, %v1530_v51  ;;  %v1707_v55 = vmul.f32 %v4065_v38, %v1531_v21  ;;  %2011 = vst [vmem:[%s4552_s26 + $0x28] sm:$0xff] %v1867_v20  ;;  %v6384_v61 = vsub.f32 %v6382_v34, %v6383_v36 }
 0x1c6   : > { %v1708_v8 = vmul.f32 %v6348_v54, %v1532_v41  ;;  %v6386_v39 = vsub.f32 %v6385_v63, %v6383_v36  ;;  %v1880_v21 = vadd.f32 %v6355_v44, %v1704_v12  ;;  %v1881_v27 = vadd.f32 %v6356_v37, %v1705_v62  ;;  %v6389_v63 = vld [vmem:[#allocation19_spill] sm:$0xff]  ;;  %v6391_v62 = vld [vmem:[#allocation20_spill] sm:$0xff] }
 0x1c7   : > { %v1709_v26 = vmul.f32 %v6349_v52, %v1533_v11  ;;  %v1522_v25 = vmul.f32 %v2385_v32, %v6384_v61  ;;  %v1882_v20 = vadd.f32 %v6357_v18, %v1706_v7  ;;  %v1883_v9 = vadd.f32 %v6358_v56, %v1707_v55  ;;  %v6387_v11 = vld [vmem:[#allocation18_spill] sm:$0xff] }
 0x1c8   : > { %v1523_v51 = vmul.f32 %v2385_v32, %v6386_v39  ;;  %v1884_v41 = vadd.f32 %v6359_v24, %v1708_v8  ;;  %v6388_v34 = vsub.f32 %v6387_v11, %v6383_v36  ;;  %v6390_v39 = vsub.f32 %v6389_v63, %v6383_v36  ;;  %2024 = vst [vmem:[%s4552_s26 + $0x90] sm:$0xff] %v1880_v21 }
 0x1c9   : > { %v1885_v17 = vadd.f32 %v6360_v33, %v1709_v26  ;;  %2025 = vst [vmem:[%s4552_s26 + $0x98] sm:$0xff] %v1881_v27  ;;  %2026 = vst [vmem:[%s4552_s26 + $0xa0] sm:$0xff] %v1882_v20  ;;  %v6392_v7 = vsub.f32 %v6391_v62, %v6383_v36  ;;  %v6394_v8 = vsub.f32 %v6393_v47, %v6383_v36  ;;  %v6395_v27 = vld [vmem:[#allocation39_spill] sm:$0xff]  ;;  %v4658_v36 = vpop.xlane.xlu0 %1105  ;;  %v6400_v62 = vld [vmem:[#allocation42_spill] sm:$0xff] }
 0x1ca   : > { %v1524_v61 = vmul.f32 %v2385_v32, %v6388_v34  ;;  %v1525_v12 = vmul.f32 %v2385_v32, %v6390_v39  ;;  %2027 = vst [vmem:[%s4552_s26 + $0xa8] sm:$0xff] %v1883_v9  ;;  %v1698_v15 = vmul.f32 %v4059_v5, %v1522_v25  ;;  %v1699_v11 = vmul.f32 %v4061_v57, %v1523_v51  ;;  %v6396_v20 = vld [vmem:[#allocation171_spill] sm:$0xff]  ;;  %v6398_v39 = vld [vmem:[#allocation40_spill] sm:$0xff] }
 0x1cb   : > { %v1526_v55 = vmul.f32 %v2385_v32, %v6392_v7  ;;  %v1527_v26 = vmul.f32 %v2385_v32, %v6394_v8  ;;  %2028 = vst [vmem:[%s4552_s26 + $0xb0] sm:$0xff] %v1884_v41  ;;  %2029 = vst [vmem:[%s4552_s26 + $0xb8] sm:$0xff] %v1885_v17  ;;  %v6397_v9 = vsub.f32 %v6395_v27, %v6396_v20  ;;  %v6402_v27 = vld [vmem:[#allocation43_spill] sm:$0xff] }
 0x1cc   : > { %v1700_v34 = vmul.f32 %v4063_v42, %v1524_v61  ;;  %v1701_v21 = vmul.f32 %v4065_v38, %v1525_v12  ;;  %v6399_v47 = vsub.f32 %v6398_v39, %v6396_v20  ;;  %v1874_v41 = vadd.f32 %v6355_v44, %v1698_v15 }
 0x1cd   : > { %v1540_v63 = vmul.f32 %v4580_v3, %v6397_v9  ;;  %v1702_v25 = vmul.f32 %v6348_v54, %v1526_v55  ;;  %v1703_v51 = vmul.f32 %v6349_v52, %v1527_v26  ;;  %v1875_v17 = vadd.f32 %v6356_v37, %v1699_v11  ;;  %v1127_v9 = vpop.xlane.xlu1 %1126 }
 0x1ce   : > { %v1541_v32 = vmul.f32 %v4580_v3, %v6399_v47  ;;  %v1876_v61 = vadd.f32 %v6357_v18, %v1700_v34  ;;  %v1877_v12 = vadd.f32 %v6358_v56, %v1701_v21  ;;  %v6401_v7 = vsub.f32 %v6400_v62, %v6396_v20  ;;  %2018 = vst [vmem:[%s4552_s26 + $0x60] sm:$0xff] %v1874_v41  ;;  %v6404_v34 = vld [vmem:[#allocation44_spill] sm:$0xff]  ;;  %v6406_v47 = vld [vmem:[#allocation47_spill] sm:$0xff] }
 0x1cf   : > { %v6403_v55 = vsub.f32 %v6402_v27, %v6396_v20  ;;  %v1878_v15 = vadd.f32 %v6359_v24, %v1702_v25  ;;  %v1879_v11 = vadd.f32 %v6360_v33, %v1703_v51  ;;  %2019 = vst [vmem:[%s4552_s26 + $0x68] sm:$0xff] %v1875_v17  ;;  %v6405_v21 = vsub.f32 %v6404_v34, %v6396_v20 }
 0x1d0   : > { %v1542_v8 = vmul.f32 %v4580_v3, %v6401_v7  ;;  %v6407_v62 = vsub.f32 %v6406_v47, %v6396_v20  ;;  %2020 = vst [vmem:[%s4552_s26 + $0x70] sm:$0xff] %v1876_v61  ;;  %2021 = vst [vmem:[%s4552_s26 + $0x78] sm:$0xff] %v1877_v12  ;;  %v1716_v27 = vmul.f32 %v4059_v5, %v1540_v63  ;;  %v6408_v20 = vld [vmem:[#allocation45_spill] sm:$0xff] }
 0x1d1   : > { %v1543_v26 = vmul.f32 %v4580_v3, %v6403_v55  ;;  %v1544_v39 = vmul.f32 %v4580_v3, %v6405_v21  ;;  %v1717_v25 = vmul.f32 %v4061_v57, %v1541_v32  ;;  %2022 = vst [vmem:[%s4552_s26 + $0x80] sm:$0xff] %v1878_v15  ;;  %2023 = vst [vmem:[%s4552_s26 + $0x88] sm:$0xff] %v1879_v11  ;;  %v6409_v61 = vld [vmem:[#allocation33_spill] sm:$0xff]  ;;  %v6411_v32 = vld [vmem:[#allocation46_spill] sm:$0xff]  ;;  %v1120_v21 = vpop.xlane.xlu0 %1119 }
 0x1d2   : > { %v1545_v7 = vmul.f32 %v4580_v3, %v6407_v62  ;;  %v1718_v51 = vmul.f32 %v4063_v42, %v1542_v8  ;;  %v6410_v12 = vsub.f32 %v6408_v20, %v6409_v61  ;;  %v6412_v8 = vsub.f32 %v6411_v32, %v6409_v61  ;;  %v6413_v62 = vld [vmem:[#allocation48_spill] sm:$0xff] }
 0x1d3   : > { %v1719_v41 = vmul.f32 %v4065_v38, %v1543_v26  ;;  %v1720_v17 = vmul.f32 %v6348_v54, %v1544_v39  ;;  %v1892_v26 = vadd.f32 %v6355_v44, %v1716_v27  ;;  %v1893_v15 = vadd.f32 %v6356_v37, %v1717_v25 }
 0x1d4   : > { %v1721_v3 = vmul.f32 %v6349_v52, %v1545_v7  ;;  %v1534_v63 = vmul.f32 %v4602_v14, %v6410_v12  ;;  %v1535_v55 = vmul.f32 %v4602_v14, %v6412_v8  ;;  %v1894_v11 = vadd.f32 %v6357_v18, %v1718_v51  ;;  %v6415_v12 = vld [vmem:[#allocation49_spill] sm:$0xff]  ;;  %v6417_v51 = vld [vmem:[#allocation50_spill] sm:$0xff] }
 0x1d5   : > { %v1895_v34 = vadd.f32 %v6358_v56, %v1719_v41  ;;  %v1896_v39 = vadd.f32 %v6359_v24, %v1720_v17  ;;  %v6414_v7 = vsub.f32 %v6413_v62, %v6409_v61  ;;  %v6416_v27 = vsub.f32 %v6415_v12, %v6409_v61  ;;  %2036 = vst [vmem:[%s4552_s26 + $0xf0] sm:$0xff] %v1892_v26  ;;  %v1141_v12 = vpop.xlane.xlu1 %1140 }
 0x1d6   : > { %v1897_v47 = vadd.f32 %v6360_v33, %v1721_v3  ;;  %2037 = vst [vmem:[%s4552_s26 + $0xf8] sm:$0xff] %v1893_v15  ;;  %2038 = vst [vmem:[%s4552_s26 + $0x100] sm:$0xff] %v1894_v11  ;;  %v6418_v41 = vsub.f32 %v6417_v51, %v6409_v61  ;;  %v6419_v3 = vld [vmem:[#allocation53_spill] sm:$0xff]  ;;  %v1710_v62 = vmul.f32 %v4059_v5, %v1534_v63  ;;  %v1324_v11 = vadd.f32 1e-12, %v4525_v43  ;;  %v1134_v51 = vpop.xlane.xlu0 %1133 }
 0x1d7   : > { %v1536_v20 = vmul.f32 %v4602_v14, %v6414_v7  ;;  %v1537_v25 = vmul.f32 %v4602_v14, %v6416_v27  ;;  %2039 = vst [vmem:[%s4552_s26 + $0x108] sm:$0xff] %v1895_v34  ;;  %v6420_v32 = vsub.f32 %v6419_v3, %v6409_v61  ;;  %v1711_v7 = vmul.f32 %v4061_v57, %v1535_v55 }
 0x1d8   : > { %v1538_v17 = vmul.f32 %v4602_v14, %v6418_v41  ;;  %2040 = vst [vmem:[%s4552_s26 + $0x110] sm:$0xff] %v1896_v39  ;;  %2041 = vst [vmem:[%s4552_s26 + $0x118] sm:$0xff] %v1897_v47  ;;  %v1886_v63 = vadd.f32 %v6355_v44, %v1710_v62  ;;  %2392 = vrsqrt.f32 %v1324_v11  ;;  %v1303_v43 = vmax.f32 %v6421_v31, 0.0 }
 0x1d9   : > { %v1539_v8 = vmul.f32 %v4602_v14, %v6420_v32  ;;  %v1712_v26 = vmul.f32 %v4063_v42, %v1536_v20  ;;  %v1713_v15 = vmul.f32 %v4065_v38, %v1537_v25  ;;  %v1887_v55 = vadd.f32 %v6356_v37, %v1711_v7 }
 0x1da   : > { %v1714_v14 = vmul.f32 %v6348_v54, %v1538_v17  ;;  %2030 = vst [vmem:[%s4552_s26 + $0xc0] sm:$0xff] %v1886_v63  ;;  %v1230_v27 = vmul.f32 0.0013020834, %v4600_v50  ;;  %v1233_v25 = vmul.f32 0.0013020834, %v4620_v29  ;;  %v4758_v45 = vmul.f32 %v4486_v23, %v4486_v23  ;;  %v1155_v29 = vpop.xlane.xlu1 %1154 }
 0x1db   : > { %v1715_v61 = vmul.f32 %v6349_v52, %v1539_v8  ;;  %v1888_v34 = vadd.f32 %v6357_v18, %v1712_v26  ;;  %v1889_v39 = vadd.f32 %v6358_v56, %v1713_v15  ;;  %2031 = vst [vmem:[%s4552_s26 + $0xc8] sm:$0xff] %v1887_v55  ;;  %v1327_v41 = vadd.f32 1e-12, %v1303_v43 }
 0x1dc   : > { %v1890_v47 = vadd.f32 %v6359_v24, %v1714_v14  ;;  %v1232_v17 = vmul.f32 0.0013020834, %v4658_v36  ;;  %v1235_v3 = vmul.f32 0.0013020834, %v1127_v9  ;;  %v1278_v13 = vsub.f32 %v1230_v27, %v4285_v16 }
 0x1dd   : > { %v1891_v20 = vadd.f32 %v6360_v33, %v1715_v61  ;;  %2032 = vst [vmem:[%s4552_s26 + $0xd0] sm:$0xff] %v1888_v34  ;;  %2033 = vst [vmem:[%s4552_s26 + $0xd8] sm:$0xff] %v1889_v39  ;;  %v1281_v32 = vsub.f32 %v1233_v25, %v4304_v1  ;;  %v1234_v50 = vmul.f32 0.0013020834, %v1120_v21  ;;  %v1237_v8 = vmul.f32 0.0013020834, %v1141_v12 }
 0x1de   : > { %2034 = vst [vmem:[%s4552_s26 + $0xe0] sm:$0xff] %v1890_v47  ;;  %2394 = vrsqrt.f32 %v1327_v41  ;;  %v1280_v62 = vsub.f32 %v1232_v17, %v4325_v0  ;;  %v1283_v7 = vsub.f32 %v1235_v3, %v4346_v49  ;;  %v1236_v36 = vmul.f32 0.0013020834, %v1134_v51  ;;  %v2391_v0 = vpop.eup %2390  ;;  %v6423_v39 = vld [vmem:[#allocation34_spill] sm:$0xff]  ;;  %v6425_v47 = vld [vmem:[#allocation52_spill] sm:$0xff]  ;;  %v6429_v17 = vld [vmem:[#allocation55_spill] sm:$0xff] }
 0x1df   : > { %2035 = vst [vmem:[%s4552_s26 + $0xe8] sm:$0xff] %v1891_v20  ;;  %v1302_v9 = vmax.f32 %v1278_v13, 0.0  ;;  %v1305_v26 = vmax.f32 %v1281_v32, 0.0  ;;  %v1282_v15 = vsub.f32 %v1234_v50, %v4365_v35  ;;  %v1285_v11 = vsub.f32 %v1237_v8, %v4386_v46  ;;  %v6427_v25 = vld [vmem:[#allocation54_spill] sm:$0xff]  ;;  %v6431_v50 = vld [vmem:[#allocation56_spill] sm:$0xff] }
 0x1e0   : > { %v1304_v14 = vmax.f32 %v1280_v62, 0.0  ;;  %v1307_v61 = vmax.f32 %v1283_v7, 0.0  ;;  %v1284_v16 = vsub.f32 %v1236_v36, %v4411_v48  ;;  %v4769_v1 = vmul.f32 0.0013020834, %v1155_v29  ;;  %v6422_v48 = vld [vmem:[#allocation51_spill] sm:$0xff] }
 0x1e1   : > { %v1326_v21 = vadd.f32 1e-12, %v1302_v9  ;;  %v4771_v12 = vadd.f32 1e-12, %v1305_v26  ;;  %v4773_v63 = vmax.f32 %v1282_v15, 0.0  ;;  %v4777_v49 = vmul.f32 %v4497_v59, %v4497_v59  ;;  %v6433_v62 = vld [vmem:[#allocation59_spill] sm:$0xff] }
 0x1e2   : > { %v4779_v55 = vadd.f32 1e-12, %v1304_v14  ;;  %v4781_v35 = vadd.f32 1e-12, %v1307_v61  ;;  %v4783_v46 = vmax.f32 %v1285_v11, 0.0  ;;  %v4785_v34 = vmax.f32 %v1284_v16, 0.0  ;;  %v2393_v32 = vpop.eup %2392 }
 0x1e3   : > { %v6424_v31 = vsub.f32 %v6422_v48, %v6423_v39  ;;  %v6426_v20 = vsub.f32 %v6425_v47, %v6423_v39  ;;  %v6428_v51 = vsub.f32 %v6427_v25, %v6423_v39  ;;  %v6430_v3 = vsub.f32 %v6429_v17, %v6423_v39 }
 0x1e4   : > { %v6432_v8 = vsub.f32 %v6431_v50, %v6423_v39  ;;  %v6434_v7 = vsub.f32 %v6433_v62, %v6423_v39  ;;  %2396 = vrsqrt.f32 %v1326_v21  ;;  %v1287_v9 = vsub.f32 %v4769_v1, %v4425_v6  ;;  %v6436_v21 = vld [vmem:[#allocation36_spill] sm:$0xff]  ;;  %v6442_v62 = vld [vmem:[#allocation61_spill] sm:$0xff] }
 0x1e5   : > { %v1552_v43 = vmul.f32 %v2391_v0, %v6424_v31  ;;  %v1553_v27 = vmul.f32 %v2391_v0, %v6426_v20  ;;  %v1554_v41 = vmul.f32 %v2391_v0, %v6428_v51  ;;  %v1555_v13 = vmul.f32 %v2391_v0, %v6430_v3  ;;  %v6438_v31 = vld [vmem:[#allocation58_spill] sm:$0xff]  ;;  %v4819_v20 = vpop.xlane.xlu0 %1147  ;;  %v6440_v50 = vld [vmem:[#allocation60_spill] sm:$0xff] }
 0x1e6   : > { %v1556_v29 = vmul.f32 %v2391_v0, %v6432_v8  ;;  %v1557_v36 = vmul.f32 %v2391_v0, %v6434_v7  ;;  %v6435_v0 = vld [vmem:[#allocation57_spill] sm:$0xff]  ;;  %v6441_v8 = vsub.f32 %v6440_v50, %v6436_v21  ;;  %v6443_v7 = vsub.f32 %v6442_v62, %v6436_v21 }
 0x1e7   : > { %v1728_v26 = vmul.f32 %v4059_v5, %v1552_v43  ;;  %v1729_v15 = vmul.f32 %v4061_v57, %v1553_v27  ;;  %v1730_v11 = vmul.f32 %v4063_v42, %v1554_v41  ;;  %v1731_v14 = vmul.f32 %v4065_v38, %v1555_v13 }
 0x1e8   : > { %v1732_v61 = vmul.f32 %v6348_v54, %v1556_v29  ;;  %v1733_v16 = vmul.f32 %v6349_v52, %v1557_v36  ;;  %v6437_v48 = vsub.f32 %v6435_v0, %v6436_v21  ;;  %v6439_v43 = vsub.f32 %v6438_v31, %v6436_v21  ;;  %v2395_v17 = vpop.eup %2394 }
 0x1e9   : > { %v1904_v27 = vadd.f32 %v6355_v44, %v1728_v26  ;;  %v1905_v25 = vadd.f32 %v6356_v37, %v1729_v15  ;;  %v1906_v51 = vadd.f32 %v6357_v18, %v1730_v11  ;;  %v1907_v41 = vadd.f32 %v6358_v56, %v1731_v14  ;;  %v6444_v26 = vld [vmem:[#allocation62_spill] sm:$0xff]  ;;  %v6446_v14 = vld [vmem:[#allocation65_spill] sm:$0xff] }
 0x1ea   : > { %v1546_v39 = vmul.f32 %v2393_v32, %v6437_v48  ;;  %v1547_v47 = vmul.f32 %v2393_v32, %v6439_v43  ;;  %v1908_v3 = vadd.f32 %v6359_v24, %v1732_v61  ;;  %v1909_v13 = vadd.f32 %v6360_v33, %v1733_v16 }
 0x1eb   : > { %v1548_v29 = vmul.f32 %v2393_v32, %v6441_v8  ;;  %v1549_v36 = vmul.f32 %v2393_v32, %v6443_v7  ;;  %2048 = vst [vmem:[%s4552_s26 + $0x150] sm:$0xff] %v1904_v27  ;;  %2049 = vst [vmem:[%s4552_s26 + $0x158] sm:$0xff] %v1905_v25  ;;  %v6445_v15 = vsub.f32 %v6444_v26, %v6436_v21  ;;  %v6451_v8 = vld [vmem:[#allocation66_spill] sm:$0xff]  ;;  %v6453_v7 = vld [vmem:[#allocation67_spill] sm:$0xff]  ;;  %2398 = vrsqrt.f32 %v4771_v12 }
 0x1ec   : > { %2050 = vst [vmem:[%s4552_s26 + $0x160] sm:$0xff] %v1906_v51  ;;  %2051 = vst [vmem:[%s4552_s26 + $0x168] sm:$0xff] %v1907_v41  ;;  %v6447_v61 = vsub.f32 %v6446_v14, %v6436_v21  ;;  %v1722_v0 = vmul.f32 %v4059_v5, %v1546_v39  ;;  %v1723_v48 = vmul.f32 %v4061_v57, %v1547_v47  ;;  %v6449_v51 = vld [vmem:[#allocation64_spill] sm:$0xff]  ;;  %2400 = vrsqrt.f32 %v4779_v55 }
 0x1ed   : > { %v1550_v11 = vmul.f32 %v2393_v32, %v6445_v15  ;;  %2052 = vst [vmem:[%s4552_s26 + $0x170] sm:$0xff] %v1908_v3  ;;  %2053 = vst [vmem:[%s4552_s26 + $0x178] sm:$0xff] %v1909_v13  ;;  %v1724_v31 = vmul.f32 %v4063_v42, %v1548_v29  ;;  %v1725_v43 = vmul.f32 %v4065_v38, %v1549_v36  ;;  %v4859_v13 = vpop.xlane.xlu1 %1168  ;;  %v1162_v15 = vpop.xlane.xlu0 %1161  ;;  %v1333_v12 = vadd.f32 1e-12, %v4783_v46 }
 0x1ee   : > { %v1551_v16 = vmul.f32 %v2393_v32, %v6447_v61  ;;  %v6448_v27 = vsub.f32 %v6281_v22, %v4212_v58  ;;  %v6450_v21 = vsub.f32 %v6449_v51, %v4212_v58  ;;  %v1898_v41 = vadd.f32 %v6355_v44, %v1722_v0  ;;  %v6455_v61 = vld [vmem:[#allocation68_spill] sm:$0xff] }
 0x1ef   : > { %v1726_v39 = vmul.f32 %v6348_v54, %v1550_v11  ;;  %v1899_v3 = vadd.f32 %v6356_v37, %v1723_v48  ;;  %v1900_v22 = vadd.f32 %v6357_v18, %v1724_v31  ;;  %v1901_v50 = vadd.f32 %v6358_v56, %v1725_v43  ;;  %v6457_v48 = vld [vmem:[#allocation71_spill] sm:$0xff] }
 0x1f0   : > { %v1564_v25 = vmul.f32 %v2395_v17, %v6448_v27  ;;  %v1565_v32 = vmul.f32 %v2395_v17, %v6450_v21  ;;  %v1727_v47 = vmul.f32 %v6349_v52, %v1551_v16  ;;  %v6452_v29 = vsub.f32 %v6451_v8, %v4212_v58  ;;  %2042 = vst [vmem:[%s4552_s26 + $0x120] sm:$0xff] %v1898_v41  ;;  %v2397_v27 = vpop.eup %2396 }
 0x1f1   : > { %v6454_v36 = vsub.f32 %v6453_v7, %v4212_v58  ;;  %v1902_v11 = vadd.f32 %v6359_v24, %v1726_v39  ;;  %2043 = vst [vmem:[%s4552_s26 + $0x128] sm:$0xff] %v1899_v3  ;;  %v6456_v16 = vsub.f32 %v6455_v61, %v4212_v58  ;;  %v6458_v31 = vsub.f32 %v6457_v48, %v4212_v58  ;;  %v1183_v61 = vpop.xlane.xlu1 %1182 }
 0x1f2   : > { %v1566_v62 = vmul.f32 %v2395_v17, %v6452_v29  ;;  %v1903_v14 = vadd.f32 %v6360_v33, %v1727_v47  ;;  %2044 = vst [vmem:[%s4552_s26 + $0x130] sm:$0xff] %v1900_v22  ;;  %2045 = vst [vmem:[%s4552_s26 + $0x138] sm:$0xff] %v1901_v50  ;;  %v1740_v51 = vmul.f32 %v4059_v5, %v1564_v25  ;;  %2402 = vrsqrt.f32 %v4781_v35 }
 0x1f3   : > { %v1567_v26 = vmul.f32 %v2395_v17, %v6454_v36  ;;  %v1568_v0 = vmul.f32 %v2395_v17, %v6456_v16  ;;  %v1569_v43 = vmul.f32 %v2395_v17, %v6458_v31  ;;  %v1741_v21 = vmul.f32 %v4061_v57, %v1565_v32  ;;  %2046 = vst [vmem:[%s4552_s26 + $0x140] sm:$0xff] %v1902_v11  ;;  %v6465_v16 = vld [vmem:[#allocation74_spill] sm:$0xff]  ;;  %v6467_v31 = vld [vmem:[#allocation77_spill] sm:$0xff] }
 0x1f4   : > { %v1742_v39 = vmul.f32 %v4063_v42, %v1566_v62  ;;  %2047 = vst [vmem:[%s4552_s26 + $0x148] sm:$0xff] %v1903_v14  ;;  %v6459_v17 = vsub.f32 %v6287_v53, %v4233_v40  ;;  %v6460_v32 = vsub.f32 %v6288_v19, %v4233_v40  ;;  %v1916_v22 = vadd.f32 %v6355_v44, %v1740_v51  ;;  %v6461_v53 = vld [vmem:[#allocation72_spill] sm:$0xff]  ;;  %v6463_v19 = vld [vmem:[#allocation73_spill] sm:$0xff] }
 0x1f5   : > { %v1743_v47 = vmul.f32 %v4065_v38, %v1567_v26  ;;  %v1744_v41 = vmul.f32 %v6348_v54, %v1568_v0  ;;  %v1745_v58 = vmul.f32 %v6349_v52, %v1569_v43  ;;  %v1917_v50 = vadd.f32 %v6356_v37, %v1741_v21 }
 0x1f6   : > { %v1558_v25 = vmul.f32 %v2397_v27, %v6459_v17  ;;  %v1559_v3 = vmul.f32 %v2397_v27, %v6460_v32  ;;  %v1918_v8 = vadd.f32 %v6357_v18, %v1742_v39  ;;  %v6462_v36 = vsub.f32 %v6461_v53, %v4233_v40  ;;  %2060 = vst [vmem:[%s4552_s26 + $0x1b0] sm:$0xff] %v1916_v22 }
 0x1f7   : > { %v1919_v29 = vadd.f32 %v6358_v56, %v1743_v47  ;;  %v1920_v62 = vadd.f32 %v6359_v24, %v1744_v41  ;;  %v1921_v7 = vadd.f32 %v6360_v33, %v1745_v58  ;;  %v6464_v11 = vsub.f32 %v6463_v19, %v4233_v40  ;;  %2061 = vst [vmem:[%s4552_s26 + $0x1b8] sm:$0xff] %v1917_v50  ;;  %v1176_v47 = vpop.xlane.xlu0 %1175 }
 0x1f8   : > { %v1560_v26 = vmul.f32 %v2397_v27, %v6462_v36  ;;  %2062 = vst [vmem:[%s4552_s26 + $0x1c0] sm:$0xff] %v1918_v8  ;;  %v6466_v0 = vsub.f32 %v6465_v16, %v4233_v40  ;;  %v6468_v43 = vsub.f32 %v6467_v31, %v4233_v40  ;;  %v1734_v21 = vmul.f32 %v4059_v5, %v1558_v25  ;;  %v6470_v31 = vld [vmem:[#allocation37_spill] sm:$0xff] }
 0x1f9   : > { %v1561_v14 = vmul.f32 %v2397_v27, %v6464_v11  ;;  %2063 = vst [vmem:[%s4552_s26 + $0x1c8] sm:$0xff] %v1919_v29  ;;  %v1735_v39 = vmul.f32 %v4061_v57, %v1559_v3  ;;  %2064 = vst [vmem:[%s4552_s26 + $0x1d0] sm:$0xff] %v1920_v62  ;;  %v1330_v17 = vadd.f32 1e-12, %v4773_v63  ;;  %v1332_v8 = vadd.f32 1e-12, %v4785_v34 }
 0x1fa   : > { %v1562_v48 = vmul.f32 %v2397_v27, %v6466_v0  ;;  %v1563_v51 = vmul.f32 %v2397_v27, %v6468_v43  ;;  %2065 = vst [vmem:[%s4552_s26 + $0x1d8] sm:$0xff] %v1921_v7  ;;  %v1736_v41 = vmul.f32 %v4063_v42, %v1560_v26  ;;  %v1910_v25 = vadd.f32 %v6355_v44, %v1734_v21  ;;  %v1197_v7 = vpop.xlane.xlu1 %1196  ;;  %v6472_v21 = vld [vmem:[#allocation76_spill] sm:$0xff] }
 0x1fb   : > { %v1737_v58 = vmul.f32 %v4065_v38, %v1561_v14  ;;  %v1911_v32 = vadd.f32 %v6356_v37, %v1735_v39  ;;  %v1311_v29 = vmax.f32 %v1287_v9, 0.0  ;;  %v1238_v55 = vmul.f32 0.0013020834, %v4819_v20  ;;  %v1190_v26 = vpop.xlane.xlu0 %1189 }
 0x1fc   : > { %v1738_v40 = vmul.f32 %v6348_v54, %v1562_v48  ;;  %v1739_v27 = vmul.f32 %v6349_v52, %v1563_v51  ;;  %v1912_v3 = vadd.f32 %v6357_v18, %v1736_v41  ;;  %2054 = vst [vmem:[%s4552_s26 + $0x180] sm:$0xff] %v1910_v25  ;;  %v1241_v46 = vmul.f32 0.0013020834, %v4859_v13  ;;  %v6469_v48 = vld [vmem:[#allocation75_spill] sm:$0xff]  ;;  %v6474_v41 = vld [vmem:[#allocation78_spill] sm:$0xff] }
 0x1fd   : > { %v1913_v22 = vadd.f32 %v6358_v56, %v1737_v58  ;;  %2055 = vst [vmem:[%s4552_s26 + $0x188] sm:$0xff] %v1911_v32  ;;  %v1240_v62 = vmul.f32 0.0013020834, %v1162_v15  ;;  %2404 = vrsqrt.f32 %v1330_v17  ;;  %v1335_v53 = vadd.f32 1e-12, %v1311_v29 }
 0x1fe   : > { %v1914_v63 = vadd.f32 %v6359_v24, %v1738_v40  ;;  %v1915_v50 = vadd.f32 %v6360_v33, %v1739_v27  ;;  %2056 = vst [vmem:[%s4552_s26 + $0x190] sm:$0xff] %v1912_v3  ;;  %v1243_v36 = vmul.f32 0.0013020834, %v1183_v61  ;;  %v1242_v34 = vmul.f32 0.0013020834, %v1176_v47  ;;  %v6476_v40 = vld [vmem:[#allocation79_spill] sm:$0xff] }
 0x1ff   : > { %2057 = vst [vmem:[%s4552_s26 + $0x198] sm:$0xff] %v1913_v22  ;;  %2406 = vrsqrt.f32 %v1333_v12  ;;  %v1286_v6 = vsub.f32 %v1238_v55, %v4445_v60  ;;  %v1289_v1 = vsub.f32 %v1241_v46, %v4464_v28  ;;  %v1288_v35 = vsub.f32 %v1240_v62, %v4490_v30  ;;  %v2399_v30 = vpop.eup %2398  ;;  %v6478_v3 = vld [vmem:[#allocation80_spill] sm:$0xff] }
 0x200   : > { %2058 = vst [vmem:[%s4552_s26 + $0x1a0] sm:$0xff] %v1914_v63  ;;  %2059 = vst [vmem:[%s4552_s26 + $0x1a8] sm:$0xff] %v1915_v50  ;;  %2408 = vrsqrt.f32 %v1332_v8  ;;  %v1291_v9 = vsub.f32 %v1243_v36, %v4494_v4  ;;  %v1290_v20 = vsub.f32 %v1242_v34, %v4758_v45  ;;  %v4953_v13 = vmul.f32 0.0013020834, %v1197_v7  ;;  %v2401_v32 = vpop.eup %2400  ;;  %v6480_v63 = vld [vmem:[#allocation83_spill] sm:$0xff] }
 0x201   : > { %v1310_v15 = vmax.f32 %v1286_v6, 0.0  ;;  %v1313_v19 = vmax.f32 %v1289_v1, 0.0  ;;  %v1312_v11 = vmax.f32 %v1288_v35, 0.0  ;;  %v4955_v14 = vmul.f32 0.0013020834, %v1190_v26  ;;  %v6482_v26 = vld [vmem:[#allocation81_spill] sm:$0xff] }
 0x202   : > { %2410 = vrsqrt.f32 %v1335_v53  ;;  %v4957_v61 = vmax.f32 %v1291_v9, 0.0  ;;  %v4959_v60 = vmax.f32 %v1290_v20, 0.0  ;;  %v4963_v28 = vmul.f32 %v4501_v2, %v4501_v2  ;;  %v2403_v53 = vpop.eup %2402  ;;  %v6483_v6 = vld [vmem:[#allocation38_spill] sm:$0xff] }
 0x203   : > { %v1334_v4 = vadd.f32 1e-12, %v1310_v15  ;;  %v4965_v16 = vadd.f32 1e-12, %v1313_v19  ;;  %v4967_v45 = vadd.f32 1e-12, %v1312_v11  ;;  %v1293_v0 = vsub.f32 %v4953_v13, %v4777_v49 }
 0x204   : > { %v6471_v43 = vsub.f32 %v6469_v48, %v6470_v31  ;;  %v6473_v39 = vsub.f32 %v6472_v21, %v6470_v31  ;;  %v6475_v58 = vsub.f32 %v6474_v41, %v6470_v31  ;;  %v6477_v27 = vsub.f32 %v6476_v40, %v6470_v31  ;;  %v6485_v9 = vld [vmem:[#allocation82_spill] sm:$0xff]  ;;  %v6487_v21 = vld [vmem:[#allocation84_spill] sm:$0xff]  ;;  %v6576_v49 = vld [vmem:[#allocation143_spill] sm:$0xff] }
 0x205   : > { %v6479_v22 = vsub.f32 %v6478_v3, %v6470_v31  ;;  %v6481_v50 = vsub.f32 %v6480_v63, %v6470_v31  ;;  %2412 = vrsqrt.f32 %v1334_v4  ;;  %v1292_v29 = vsub.f32 %v4955_v14, %v4963_v28  ;;  %v6489_v41 = vld [vmem:[#allocation86_spill] sm:$0xff]  ;;  %v6582_v14 = vld [vmem:[#allocation149_spill] sm:$0xff] }
 0x206   : > { %v1576_v51 = vmul.f32 %v2399_v30, %v6471_v43  ;;  %v1577_v47 = vmul.f32 %v2399_v30, %v6473_v39  ;;  %v1578_v17 = vmul.f32 %v2399_v30, %v6475_v58  ;;  %v1579_v25 = vmul.f32 %v2399_v30, %v6477_v27  ;;  %v6491_v27 = vld [vmem:[#allocation87_spill] sm:$0xff] }
 0x207   : > { %v1580_v12 = vmul.f32 %v2399_v30, %v6479_v22  ;;  %v1581_v8 = vmul.f32 %v2399_v30, %v6481_v50  ;;  %v6484_v1 = vsub.f32 %v6482_v26, %v6483_v6  ;;  %v6486_v20 = vsub.f32 %v6485_v9, %v6483_v6  ;;  %v5003_v19 = vpop.eup %2404  ;;  %v6493_v22 = vld [vmem:[#allocation92_spill] sm:$0xff]  ;;  %v6498_v26 = vld [vmem:[#allocation91_spill] sm:$0xff] }
 0x208   : > { %v1752_v55 = vmul.f32 %v4059_v5, %v1576_v51  ;;  %v1753_v46 = vmul.f32 %v4061_v57, %v1577_v47  ;;  %v1754_v62 = vmul.f32 %v4063_v42, %v1578_v17  ;;  %v1755_v7 = vmul.f32 %v4065_v38, %v1579_v25 }
 0x209   : > { %v1756_v36 = vmul.f32 %v6348_v54, %v1580_v12  ;;  %v1757_v34 = vmul.f32 %v6349_v52, %v1581_v8  ;;  %v1570_v35 = vmul.f32 %v2401_v32, %v6484_v1  ;;  %v1571_v15 = vmul.f32 %v2401_v32, %v6486_v20  ;;  %v5009_v31 = vpop.eup %2406 }
 0x20a   : > { %v1928_v11 = vadd.f32 %v6355_v44, %v1752_v55  ;;  %v1929_v30 = vadd.f32 %v6356_v37, %v1753_v46  ;;  %v1930_v4 = vadd.f32 %v6357_v18, %v1754_v62  ;;  %v1931_v48 = vadd.f32 %v6358_v56, %v1755_v7  ;;  %v5019_v40 = vpop.eup %2408  ;;  %v6495_v62 = vld [vmem:[#allocation90_spill] sm:$0xff]  ;;  %v6496_v7 = vld [vmem:[#allocation41_spill] sm:$0xff] }
 0x20b   : > { %v1932_v43 = vadd.f32 %v6359_v24, %v1756_v36  ;;  %v1933_v51 = vadd.f32 %v6360_v33, %v1757_v34  ;;  %v6488_v39 = vsub.f32 %v6487_v21, %v6483_v6  ;;  %v6490_v58 = vsub.f32 %v6489_v41, %v6483_v6 }
 0x20c   : > { %2072 = vst [vmem:[%s4552_s26 + $0x210] sm:$0xff] %v1928_v11  ;;  %2073 = vst [vmem:[%s4552_s26 + $0x218] sm:$0xff] %v1929_v30  ;;  %v6492_v25 = vsub.f32 %v6491_v27, %v6483_v6  ;;  %v6494_v12 = vsub.f32 %v6493_v22, %v6483_v6  ;;  %v1746_v50 = vmul.f32 %v4059_v5, %v1570_v35  ;;  %v5043_v1 = vpop.eup %2410  ;;  %2414 = vrsqrt.f32 %v4965_v16  ;;  %v6572_v16 = vld [vmem:[#allocation175_spill] sm:$0xff] }
 0x20d   : > { %v1572_v47 = vmul.f32 %v2401_v32, %v6488_v39  ;;  %v1573_v17 = vmul.f32 %v2401_v32, %v6490_v58  ;;  %2074 = vst [vmem:[%s4552_s26 + $0x220] sm:$0xff] %v1930_v4  ;;  %2075 = vst [vmem:[%s4552_s26 + $0x228] sm:$0xff] %v1931_v48  ;;  %v1747_v8 = vmul.f32 %v4061_v57, %v1571_v15  ;;  %v6500_v4 = vld [vmem:[#allocation93_spill] sm:$0xff]  ;;  %v6504_v58 = vld [vmem:[#allocation95_spill] sm:$0xff]  ;;  %2416 = vrsqrt.f32 %v4967_v45 }
 0x20e   : > { %v1574_v3 = vmul.f32 %v2401_v32, %v6492_v25  ;;  %v1575_v63 = vmul.f32 %v2401_v32, %v6494_v12  ;;  %2076 = vst [vmem:[%s4552_s26 + $0x230] sm:$0xff] %v1932_v43  ;;  %2077 = vst [vmem:[%s4552_s26 + $0x238] sm:$0xff] %v1933_v51  ;;  %v6497_v36 = vsub.f32 %v6495_v62, %v6496_v7  ;;  %v6502_v51 = vld [vmem:[#allocation94_spill] sm:$0xff]  ;;  %v6506_v25 = vld [vmem:[#allocation99_spill] sm:$0xff] }
 0x20f   : > { %v1748_v55 = vmul.f32 %v4063_v42, %v1572_v47  ;;  %v1749_v46 = vmul.f32 %v4065_v38, %v1573_v17  ;;  %v6499_v6 = vsub.f32 %v6498_v26, %v6496_v7  ;;  %v1922_v20 = vadd.f32 %v6355_v44, %v1746_v50  ;;  %v5067_v12 = vpop.eup %2412  ;;  %v6508_v62 = vld [vmem:[#allocation97_spill] sm:$0xff]  ;;  %v6511_v26 = vld [vmem:[#allocation98_spill] sm:$0xff] }
 0x210   : > { %v1588_v34 = vmul.f32 %v2403_v53, %v6497_v36  ;;  %v1750_v35 = vmul.f32 %v6348_v54, %v1574_v3  ;;  %v1751_v9 = vmul.f32 %v6349_v52, %v1575_v63  ;;  %v1923_v15 = vadd.f32 %v6356_v37, %v1747_v8  ;;  %v6575_v45 = vld [vmem:[#allocation142_spill] sm:$0xff] }
 0x211   : > { %v1589_v32 = vmul.f32 %v2403_v53, %v6499_v6  ;;  %v1924_v11 = vadd.f32 %v6357_v18, %v1748_v55  ;;  %v1925_v30 = vadd.f32 %v6358_v56, %v1749_v46  ;;  %v6501_v48 = vsub.f32 %v6500_v4, %v6496_v7  ;;  %2066 = vst [vmem:[%s4552_s26 + $0x1e0] sm:$0xff] %v1922_v20  ;;  %v6513_v4 = vld [vmem:[#allocation100_spill] sm:$0xff] }
 0x212   : > { %v6503_v21 = vsub.f32 %v6502_v51, %v6496_v7  ;;  %v1926_v47 = vadd.f32 %v6359_v24, %v1750_v35  ;;  %v1927_v41 = vadd.f32 %v6360_v33, %v1751_v9  ;;  %2067 = vst [vmem:[%s4552_s26 + $0x1e8] sm:$0xff] %v1923_v15  ;;  %v6505_v17 = vsub.f32 %v6504_v58, %v6496_v7  ;;  %v6515_v51 = vld [vmem:[#allocation101_spill] sm:$0xff] }
 0x213   : > { %v1590_v43 = vmul.f32 %v2403_v53, %v6501_v48  ;;  %v6507_v3 = vsub.f32 %v6506_v25, %v6496_v7  ;;  %2068 = vst [vmem:[%s4552_s26 + $0x1f0] sm:$0xff] %v1924_v11  ;;  %2069 = vst [vmem:[%s4552_s26 + $0x1f8] sm:$0xff] %v1925_v30  ;;  %v1764_v63 = vmul.f32 %v4059_v5, %v1588_v34  ;;  %v6509_v7 = vld [vmem:[#allocation63_spill] sm:$0xff] }
 0x214   : > { %v1591_v39 = vmul.f32 %v2403_v53, %v6503_v21  ;;  %v1592_v27 = vmul.f32 %v2403_v53, %v6505_v17  ;;  %v1765_v50 = vmul.f32 %v4061_v57, %v1589_v32  ;;  %2070 = vst [vmem:[%s4552_s26 + $0x200] sm:$0xff] %v1926_v47  ;;  %2071 = vst [vmem:[%s4552_s26 + $0x208] sm:$0xff] %v1927_v41  ;;  %v6517_v47 = vld [vmem:[#allocation102_spill] sm:$0xff]  ;;  %v6519_v17 = vld [vmem:[#allocation105_spill] sm:$0xff] }
 0x215   : > { %v1593_v22 = vmul.f32 %v2403_v53, %v6507_v3  ;;  %v1766_v8 = vmul.f32 %v4063_v42, %v1590_v43  ;;  %v6510_v36 = vsub.f32 %v6508_v62, %v6509_v7  ;;  %v6512_v6 = vsub.f32 %v6511_v26, %v6509_v7  ;;  %v6524_v62 = vld [vmem:[#allocation104_spill] sm:$0xff] }
 0x216   : > { %v1767_v55 = vmul.f32 %v4065_v38, %v1591_v39  ;;  %v1768_v53 = vmul.f32 %v6348_v54, %v1592_v27  ;;  %v1940_v35 = vadd.f32 %v6355_v44, %v1764_v63  ;;  %v1941_v9 = vadd.f32 %v6356_v37, %v1765_v50 }
 0x217   : > { %v1769_v46 = vmul.f32 %v6349_v52, %v1593_v22  ;;  %v1582_v34 = vmul.f32 %v5003_v19, %v6510_v36  ;;  %v1583_v32 = vmul.f32 %v5003_v19, %v6512_v6  ;;  %v1942_v20 = vadd.f32 %v6357_v18, %v1766_v8  ;;  %v6521_v8 = vld [vmem:[#allocation103_spill] sm:$0xff] }
 0x218   : > { %v1943_v15 = vadd.f32 %v6358_v56, %v1767_v55  ;;  %v1944_v11 = vadd.f32 %v6359_v24, %v1768_v53  ;;  %v6514_v48 = vsub.f32 %v6513_v4, %v6509_v7  ;;  %v6516_v21 = vsub.f32 %v6515_v51, %v6509_v7  ;;  %2084 = vst [vmem:[%s4552_s26 + $0x270] sm:$0xff] %v1940_v35  ;;  %v6522_v55 = vld [vmem:[#allocation69_spill] sm:$0xff]  ;;  %v6530_v51 = vld [vmem:[#allocation108_spill] sm:$0xff] }
 0x219   : > { %v1945_v30 = vadd.f32 %v6360_v33, %v1769_v46  ;;  %2085 = vst [vmem:[%s4552_s26 + $0x278] sm:$0xff] %v1941_v9  ;;  %2086 = vst [vmem:[%s4552_s26 + $0x280] sm:$0xff] %v1942_v20  ;;  %v6518_v41 = vsub.f32 %v6517_v47, %v6509_v7  ;;  %v6520_v27 = vsub.f32 %v6519_v17, %v6509_v7  ;;  %v6526_v9 = vld [vmem:[#allocation106_spill] sm:$0xff]  ;;  %v6532_v47 = vld [vmem:[#allocation111_spill] sm:$0xff] }
 0x21a   : > { %v1584_v43 = vmul.f32 %v5003_v19, %v6514_v48  ;;  %v1585_v39 = vmul.f32 %v5003_v19, %v6516_v21  ;;  %2087 = vst [vmem:[%s4552_s26 + $0x288] sm:$0xff] %v1943_v15  ;;  %v1758_v3 = vmul.f32 %v4059_v5, %v1582_v34  ;;  %v1759_v22 = vmul.f32 %v4061_v57, %v1583_v32 }
 0x21b   : > { %v1586_v58 = vmul.f32 %v5003_v19, %v6518_v41  ;;  %v1587_v25 = vmul.f32 %v5003_v19, %v6520_v27  ;;  %2088 = vst [vmem:[%s4552_s26 + $0x290] sm:$0xff] %v1944_v11  ;;  %2089 = vst [vmem:[%s4552_s26 + $0x298] sm:$0xff] %v1945_v30  ;;  %v6523_v53 = vsub.f32 %v6521_v8, %v6522_v55  ;;  %v6528_v11 = vld [vmem:[#allocation107_spill] sm:$0xff] }
 0x21c   : > { %v1760_v63 = vmul.f32 %v4063_v42, %v1584_v43  ;;  %v1761_v50 = vmul.f32 %v4065_v38, %v1585_v39  ;;  %v6525_v19 = vsub.f32 %v6524_v62, %v6522_v55  ;;  %v1934_v26 = vadd.f32 %v6355_v44, %v1758_v3 }
 0x21d   : > { %v1600_v46 = vmul.f32 %v5009_v31, %v6523_v53  ;;  %v1762_v36 = vmul.f32 %v6348_v54, %v1586_v58  ;;  %v1763_v34 = vmul.f32 %v6349_v52, %v1587_v25  ;;  %v1935_v6 = vadd.f32 %v6356_v37, %v1759_v22  ;;  %v6537_v53 = vld [vmem:[#allocation110_spill] sm:$0xff] }
 0x21e   : > { %v1601_v7 = vmul.f32 %v5009_v31, %v6525_v19  ;;  %v1936_v32 = vadd.f32 %v6357_v18, %v1760_v63  ;;  %v1937_v35 = vadd.f32 %v6358_v56, %v1761_v50  ;;  %v6527_v20 = vsub.f32 %v6526_v9, %v6522_v55  ;;  %2078 = vst [vmem:[%s4552_s26 + $0x240] sm:$0xff] %v1934_v26  ;;  %v6534_v63 = vld [vmem:[#allocation109_spill] sm:$0xff]  ;;  %v6535_v50 = vld [vmem:[#allocation70_spill] sm:$0xff] }
 0x21f   : > { %v6529_v30 = vsub.f32 %v6528_v11, %v6522_v55  ;;  %v1938_v48 = vadd.f32 %v6359_v24, %v1762_v36  ;;  %v1939_v43 = vadd.f32 %v6360_v33, %v1763_v34  ;;  %2079 = vst [vmem:[%s4552_s26 + $0x248] sm:$0xff] %v1935_v6  ;;  %v6531_v21 = vsub.f32 %v6530_v51, %v6522_v55 }
 0x220   : > { %v1602_v15 = vmul.f32 %v5009_v31, %v6527_v20  ;;  %v6533_v41 = vsub.f32 %v6532_v47, %v6522_v55  ;;  %2080 = vst [vmem:[%s4552_s26 + $0x250] sm:$0xff] %v1936_v32  ;;  %2081 = vst [vmem:[%s4552_s26 + $0x258] sm:$0xff] %v1937_v35  ;;  %v1776_v17 = vmul.f32 %v4059_v5, %v1600_v46  ;;  %v6539_v32 = vld [vmem:[#allocation112_spill] sm:$0xff]  ;;  %v6541_v20 = vld [vmem:[#allocation113_spill] sm:$0xff] }
 0x221   : > { %v1603_v4 = vmul.f32 %v5009_v31, %v6529_v30  ;;  %v1604_v39 = vmul.f32 %v5009_v31, %v6531_v21  ;;  %v1777_v27 = vmul.f32 %v4061_v57, %v1601_v7  ;;  %2082 = vst [vmem:[%s4552_s26 + $0x260] sm:$0xff] %v1938_v48  ;;  %2083 = vst [vmem:[%s4552_s26 + $0x268] sm:$0xff] %v1939_v43  ;;  %v6543_v30 = vld [vmem:[#allocation114_spill] sm:$0xff]  ;;  %v6545_v43 = vld [vmem:[#allocation117_spill] sm:$0xff] }
 0x222   : > { %v1605_v58 = vmul.f32 %v5009_v31, %v6533_v41  ;;  %v1778_v25 = vmul.f32 %v4063_v42, %v1602_v15  ;;  %v6536_v8 = vsub.f32 %v6534_v63, %v6535_v50  ;;  %v6538_v46 = vsub.f32 %v6537_v53, %v6535_v50 }
 0x223   : > { %v1779_v3 = vmul.f32 %v4065_v38, %v1603_v4  ;;  %v1780_v22 = vmul.f32 %v6348_v54, %v1604_v39  ;;  %v1952_v19 = vadd.f32 %v6355_v44, %v1776_v17  ;;  %v1953_v7 = vadd.f32 %v6356_v37, %v1777_v27  ;;  %v6547_v17 = vld [vmem:[#allocation115_spill] sm:$0xff]  ;;  %v6548_v27 = vld [vmem:[#allocation172_spill] sm:$0xff] }
 0x224   : > { %v1781_v31 = vmul.f32 %v6349_v52, %v1605_v58  ;;  %v1594_v55 = vmul.f32 %v5019_v40, %v6536_v8  ;;  %v1595_v62 = vmul.f32 %v5019_v40, %v6538_v46  ;;  %v1954_v36 = vadd.f32 %v6357_v18, %v1778_v25 }
 0x225   : > { %v1955_v34 = vadd.f32 %v6358_v56, %v1779_v3  ;;  %v1956_v26 = vadd.f32 %v6359_v24, %v1780_v22  ;;  %v6540_v35 = vsub.f32 %v6539_v32, %v6535_v50  ;;  %v6542_v15 = vsub.f32 %v6541_v20, %v6535_v50  ;;  %2096 = vst [vmem:[%s4552_s26 + $0x2d0] sm:$0xff] %v1952_v19  ;;  %v6550_v22 = vld [vmem:[#allocation116_spill] sm:$0xff] }
 0x226   : > { %v1957_v6 = vadd.f32 %v6360_v33, %v1781_v31  ;;  %2097 = vst [vmem:[%s4552_s26 + $0x2d8] sm:$0xff] %v1953_v7  ;;  %2098 = vst [vmem:[%s4552_s26 + $0x2e0] sm:$0xff] %v1954_v36  ;;  %v6544_v4 = vsub.f32 %v6543_v30, %v6535_v50  ;;  %v6546_v51 = vsub.f32 %v6545_v43, %v6535_v50  ;;  %v6554_v36 = vld [vmem:[#allocation119_spill] sm:$0xff] }
 0x227   : > { %v1596_v9 = vmul.f32 %v5019_v40, %v6540_v35  ;;  %v1597_v11 = vmul.f32 %v5019_v40, %v6542_v15  ;;  %2099 = vst [vmem:[%s4552_s26 + $0x2e8] sm:$0xff] %v1955_v34  ;;  %v1770_v39 = vmul.f32 %v4059_v5, %v1594_v55  ;;  %v1771_v47 = vmul.f32 %v4061_v57, %v1595_v62  ;;  %v6552_v62 = vld [vmem:[#allocation118_spill] sm:$0xff]  ;;  %v6556_v35 = vld [vmem:[#allocation120_spill] sm:$0xff]  ;;  %v6558_v15 = vld [vmem:[#allocation123_spill] sm:$0xff] }
 0x228   : > { %v1598_v48 = vmul.f32 %v5019_v40, %v6544_v4  ;;  %v1599_v21 = vmul.f32 %v5019_v40, %v6546_v51  ;;  %2100 = vst [vmem:[%s4552_s26 + $0x2f0] sm:$0xff] %v1956_v26  ;;  %2101 = vst [vmem:[%s4552_s26 + $0x2f8] sm:$0xff] %v1957_v6  ;;  %v6549_v25 = vsub.f32 %v6547_v17, %v6548_v27 }
 0x229   : > { %v1772_v41 = vmul.f32 %v4063_v42, %v1596_v9  ;;  %v1773_v58 = vmul.f32 %v4065_v38, %v1597_v11  ;;  %v6551_v40 = vsub.f32 %v6550_v22, %v6548_v27  ;;  %v1946_v8 = vadd.f32 %v6355_v44, %v1770_v39  ;;  %v6560_v39 = vld [vmem:[#allocation121_spill] sm:$0xff] }
 0x22a   : > { %v1612_v3 = vmul.f32 %v5043_v1, %v6549_v25  ;;  %v1774_v63 = vmul.f32 %v6348_v54, %v1598_v48  ;;  %v1775_v50 = vmul.f32 %v6349_v52, %v1599_v21  ;;  %v1947_v55 = vadd.f32 %v6356_v37, %v1771_v47 }
 0x22b   : > { %v1613_v31 = vmul.f32 %v5043_v1, %v6551_v40  ;;  %v1948_v53 = vadd.f32 %v6357_v18, %v1772_v41  ;;  %v1949_v46 = vadd.f32 %v6358_v56, %v1773_v58  ;;  %v6553_v19 = vsub.f32 %v6552_v62, %v6548_v27  ;;  %2090 = vst [vmem:[%s4552_s26 + $0x2a0] sm:$0xff] %v1946_v8  ;;  %v6562_v58 = vld [vmem:[#allocation122_spill] sm:$0xff] }
 0x22c   : > { %v6555_v34 = vsub.f32 %v6554_v36, %v6548_v27  ;;  %v1950_v6 = vadd.f32 %v6359_v24, %v1774_v63  ;;  %v1951_v32 = vadd.f32 %v6360_v33, %v1775_v50  ;;  %2091 = vst [vmem:[%s4552_s26 + $0x2a8] sm:$0xff] %v1947_v55  ;;  %v6557_v9 = vsub.f32 %v6556_v35, %v6548_v27  ;;  %v6564_v50 = vld [vmem:[#allocation124_spill] sm:$0xff] }
 0x22d   : > { %v1614_v7 = vmul.f32 %v5043_v1, %v6553_v19  ;;  %v6559_v11 = vsub.f32 %v6558_v15, %v6548_v27  ;;  %2092 = vst [vmem:[%s4552_s26 + $0x2b0] sm:$0xff] %v1948_v53  ;;  %2093 = vst [vmem:[%s4552_s26 + $0x2b8] sm:$0xff] %v1949_v46  ;;  %v1788_v4 = vmul.f32 %v4059_v5, %v1612_v3  ;;  %v6566_v53 = vld [vmem:[#allocation125_spill] sm:$0xff]  ;;  %v6568_v19 = vld [vmem:[#allocation126_spill] sm:$0xff]  ;;  %v1339_v15 = vadd.f32 1e-12, %v4957_v61 }
 0x22e   : > { %v1615_v26 = vmul.f32 %v5043_v1, %v6555_v34  ;;  %v1616_v20 = vmul.f32 %v5043_v1, %v6557_v9  ;;  %v1789_v48 = vmul.f32 %v4061_v57, %v1613_v31  ;;  %2094 = vst [vmem:[%s4552_s26 + $0x2c0] sm:$0xff] %v1950_v6  ;;  %2095 = vst [vmem:[%s4552_s26 + $0x2c8] sm:$0xff] %v1951_v32  ;;  %v6570_v34 = vld [vmem:[#allocation129_spill] sm:$0xff]  ;;  %v1317_v61 = vmax.f32 %v1293_v0, 0.0  ;;  %v6577_v0 = vld [vmem:[#allocation144_spill] sm:$0xff] }
 0x22f   : > { %v1617_v30 = vmul.f32 %v5043_v1, %v6559_v11  ;;  %v1790_v43 = vmul.f32 %v4063_v42, %v1614_v7  ;;  %v6561_v47 = vsub.f32 %v6560_v39, %v4401_v10  ;;  %v6563_v17 = vsub.f32 %v6562_v58, %v4401_v10 }
 0x230   : > { %v1791_v51 = vmul.f32 %v4065_v38, %v1615_v26  ;;  %v1792_v21 = vmul.f32 %v6348_v54, %v1616_v20  ;;  %v1964_v25 = vadd.f32 %v6355_v44, %v1788_v4  ;;  %v1965_v3 = vadd.f32 %v6356_v37, %v1789_v48 }
 0x231   : > { %v1793_v1 = vmul.f32 %v6349_v52, %v1617_v30  ;;  %v1606_v41 = vmul.f32 %v5067_v12, %v6561_v47  ;;  %v1607_v27 = vmul.f32 %v5067_v12, %v6563_v17  ;;  %v1966_v22 = vadd.f32 %v6357_v18, %v1790_v43  ;;  %v6573_v43 = vld [vmem:[#allocation139_spill] sm:$0xff] }
 0x232   : > { %v1967_v40 = vadd.f32 %v6358_v56, %v1791_v51  ;;  %v1968_v31 = vadd.f32 %v6359_v24, %v1792_v21  ;;  %v6565_v8 = vsub.f32 %v6564_v50, %v4401_v10  ;;  %v6567_v46 = vsub.f32 %v6566_v53, %v4401_v10  ;;  %2108 = vst [vmem:[%s4552_s26 + $0x330] sm:$0xff] %v1964_v25  ;;  %v6574_v21 = vld [vmem:[#allocation140_spill] sm:$0xff]  ;;  %v6608_v25 = vld [vmem:[#allocation135_spill] sm:$0xff] }
 0x233   : > { %v1969_v63 = vadd.f32 %v6360_v33, %v1793_v1  ;;  %2109 = vst [vmem:[%s4552_s26 + $0x338] sm:$0xff] %v1965_v3  ;;  %2110 = vst [vmem:[%s4552_s26 + $0x340] sm:$0xff] %v1966_v22  ;;  %v6569_v7 = vsub.f32 %v6568_v19, %v4401_v10  ;;  %v6571_v26 = vsub.f32 %v6570_v34, %v4401_v10  ;;  %v1316_v17 = vmax.f32 %v1292_v29, 0.0  ;;  %v6579_v3 = vld [vmem:[#allocation145_spill] sm:$0xff]  ;;  %v6581_v50 = vld [vmem:[#allocation148_spill] sm:$0xff] }
 0x234   : > { %v1608_v55 = vmul.f32 %v5067_v12, %v6565_v8  ;;  %v1609_v62 = vmul.f32 %v5067_v12, %v6567_v46  ;;  %2111 = vst [vmem:[%s4552_s26 + $0x348] sm:$0xff] %v1967_v40  ;;  %v1782_v32 = vmul.f32 %v4059_v5, %v1606_v41  ;;  %v1783_v35 = vmul.f32 %v4061_v57, %v1607_v27  ;;  %v6578_v27 = vld [vmem:[#allocation147_spill] sm:$0xff]  ;;  %v6584_v46 = vld [vmem:[#allocation153_spill] sm:$0xff]  ;;  %v6587_v34 = vld [vmem:[#allocation154_spill] sm:$0xff] }
 0x235   : > { %v1610_v36 = vmul.f32 %v5067_v12, %v6569_v7  ;;  %v1611_v6 = vmul.f32 %v5067_v12, %v6571_v26  ;;  %2112 = vst [vmem:[%s4552_s26 + $0x350] sm:$0xff] %v1968_v31  ;;  %2113 = vst [vmem:[%s4552_s26 + $0x358] sm:$0xff] %v1969_v63  ;;  %2418 = vrsqrt.f32 %v1339_v15  ;;  %v1338_v40 = vadd.f32 1e-12, %v4959_v60  ;;  %v6580_v31 = vld [vmem:[#allocation146_spill] sm:$0xff]  ;;  %v6585_v19 = vld [vmem:[#allocation151_spill] sm:$0xff] }
 0x236   : > { %v1784_v9 = vmul.f32 %v4063_v42, %v1608_v55  ;;  %v1785_v20 = vmul.f32 %v4065_v38, %v1609_v62  ;;  %v1958_v11 = vadd.f32 %v6355_v44, %v1782_v32  ;;  %v1959_v30 = vadd.f32 %v6356_v37, %v1783_v35  ;;  %v6583_v55 = vld [vmem:[#allocation150_spill] sm:$0xff]  ;;  %v6586_v60 = vld [vmem:[#allocation152_spill] sm:$0xff]  ;;  %v6590_v15 = vld [vmem:[#allocation157_spill] sm:$0xff] }
 0x237   : > { %v1786_v10 = vmul.f32 %v6348_v54, %v1610_v36  ;;  %v1787_v12 = vmul.f32 %v6349_v52, %v1611_v6  ;;  %v1341_v29 = vadd.f32 1e-12, %v1317_v61  ;;  %v6588_v6 = vld [vmem:[#allocation155_spill] sm:$0xff]  ;;  %v6589_v35 = vld [vmem:[#allocation156_spill] sm:$0xff]  ;;  %2420 = vrsqrt.f32 %v1338_v40  ;;  %v6601_v40 = vld [vmem:[#allocation130_spill] sm:$0xff] }
 0x238   : > { %v1960_v4 = vadd.f32 %v6357_v18, %v1784_v9  ;;  %v1961_v48 = vadd.f32 %v6358_v56, %v1785_v20  ;;  %2102 = vst [vmem:[%s4552_s26 + $0x300] sm:$0xff] %v1958_v11  ;;  %2103 = vst [vmem:[%s4552_s26 + $0x308] sm:$0xff] %v1959_v30  ;;  %v1340_v20 = vadd.f32 1e-12, %v1316_v17  ;;  %v6592_v30 = vld [vmem:[#allocation159_spill] sm:$0xff]  ;;  %v6593_v61 = vld [vmem:[#allocation160_spill] sm:$0xff] }
 0x239   : > { %v1962_v39 = vadd.f32 %v6359_v24, %v1786_v10  ;;  %v1963_v47 = vadd.f32 %v6360_v33, %v1787_v12  ;;  %v6591_v12 = vld [vmem:[#allocation158_spill] sm:$0xff]  ;;  %2422 = vrsqrt.f32 %v1341_v29  ;;  %v6596_v26 = vld [vmem:[#allocation127_spill] sm:$0xff]  ;;  %v6597_v10 = vld [vmem:[#allocation173_spill] sm:$0xff] }
 0x23a   : > { %2104 = vst [vmem:[%s4552_s26 + $0x310] sm:$0xff] %v1960_v4  ;;  %2105 = vst [vmem:[%s4552_s26 + $0x318] sm:$0xff] %v1961_v48  ;;  %v2415_v48 = vpop.eup %2414  ;;  %v6595_v9 = vld [vmem:[#allocation162_spill] sm:$0xff]  ;;  %v6598_v36 = vsub.f32 %v6596_v26, %v6597_v10  ;;  %v6599_v11 = vld [vmem:[#allocation128_spill] sm:$0xff]  ;;  %v6602_v53 = vsub.f32 %v6601_v40, %v6597_v10  ;;  %2424 = vrsqrt.f32 %v1340_v20 }
 0x23b   : > { %2106 = vst [vmem:[%s4552_s26 + $0x320] sm:$0xff] %v1962_v39  ;;  %2107 = vst [vmem:[%s4552_s26 + $0x328] sm:$0xff] %v1963_v47  ;;  %v6594_v47 = vld [vmem:[#allocation161_spill] sm:$0xff]  ;;  %v6600_v62 = vsub.f32 %v6599_v11, %v6597_v10  ;;  %v6603_v39 = vld [vmem:[#allocation131_spill] sm:$0xff]  ;;  %v2417_v63 = vpop.eup %2416  ;;  %v6609_v11 = vsub.f32 %v6608_v25, %v6597_v10 }
 0x23c   : > { %v1624_v7 = vmul.f32 %v2415_v48, %v6598_v36  ;;  %v1626_v28 = vmul.f32 %v2415_v48, %v6602_v53  ;;  %v6604_v8 = vsub.f32 %v6603_v39, %v6597_v10  ;;  %v6605_v17 = vld [vmem:[#allocation163_spill] sm:$0xff]  ;;  %v6606_v22 = vld [vmem:[#allocation132_spill] sm:$0xff]  ;;  %v6611_v25 = vld [vmem:[#allocation174_spill] sm:$0xff] }
 0x23d   : > { %v1625_v4 = vmul.f32 %v2415_v48, %v6600_v62  ;;  %v6607_v26 = vsub.f32 %v6606_v22, %v6597_v10  ;;  %v1629_v62 = vmul.f32 %v2415_v48, %v6609_v11  ;;  %v6621_v1 = vld [vmem:[#allocation141_spill] sm:$0xff] }
 0x23e   : > { %v1627_v32 = vmul.f32 %v2415_v48, %v6604_v8  ;;  %v1800_v40 = vmul.f32 %v4059_v5, %v1624_v7  ;;  %v1802_v8 = vmul.f32 %v4063_v42, %v1626_v28 }
 0x23f   : > { %v1628_v36 = vmul.f32 %v2415_v48, %v6607_v26  ;;  %v1801_v53 = vmul.f32 %v4061_v57, %v1625_v4  ;;  %v1805_v22 = vmul.f32 %v6349_v52, %v1629_v62  ;;  %v6610_v26 = vld [vmem:[#allocation133_spill] sm:$0xff]  ;;  %v6613_v48 = vld [vmem:[#allocation134_spill] sm:$0xff]  ;;  %v2419_v11 = vpop.eup %2418 }
 0x240   : > { %v1803_v39 = vmul.f32 %v4065_v38, %v1627_v32  ;;  %v6612_v10 = vsub.f32 %v6610_v26, %v6611_v25  ;;  %v6614_v7 = vsub.f32 %v6613_v48, %v6611_v25  ;;  %v1976_v28 = vadd.f32 %v6355_v44, %v1800_v40 }
 0x241   : > { %v1804_v29 = vmul.f32 %v6348_v54, %v1628_v36  ;;  %v1977_v32 = vadd.f32 %v6356_v37, %v1801_v53  ;;  %v1978_v36 = vadd.f32 %v6357_v18, %v1802_v8  ;;  %v1981_v26 = vadd.f32 %v6360_v33, %v1805_v22  ;;  %v6619_v53 = vld [vmem:[#allocation138_spill] sm:$0xff] }
 0x242   : > { %v1618_v20 = vmul.f32 %v2417_v63, %v6612_v10  ;;  %v1619_v4 = vmul.f32 %v2417_v63, %v6614_v7  ;;  %v1979_v58 = vadd.f32 %v6358_v56, %v1803_v39  ;;  %v6615_v10 = vld [vmem:[#allocation136_spill] sm:$0xff]  ;;  %v6617_v7 = vld [vmem:[#allocation137_spill] sm:$0xff]  ;;  %2120 = vst [vmem:[%s4552_s26 + $0x390] sm:$0xff] %v1976_v28  ;;  %v6620_v8 = vsub.f32 %v6619_v53, %v6611_v25 }
 0x243   : > { %v1980_v62 = vadd.f32 %v6359_v24, %v1804_v29  ;;  %v6616_v13 = vsub.f32 %v6615_v10, %v6611_v25  ;;  %v6618_v41 = vsub.f32 %v6617_v7, %v6611_v25  ;;  %2121 = vst [vmem:[%s4552_s26 + $0x398] sm:$0xff] %v1977_v32  ;;  %2122 = vst [vmem:[%s4552_s26 + $0x3a0] sm:$0xff] %v1978_v36 }
 0x244   : > { %2123 = vst [vmem:[%s4552_s26 + $0x3a8] sm:$0xff] %v1979_v58  ;;  %v1622_v39 = vmul.f32 %v2417_v63, %v6620_v8  ;;  %v6622_v29 = vsub.f32 %v6621_v1, %v6611_v25  ;;  %v1794_v51 = vmul.f32 %v4059_v5, %v1618_v20  ;;  %2125 = vst [vmem:[%s4552_s26 + $0x3b8] sm:$0xff] %v1981_v26  ;;  %v2421_v25 = vpop.eup %2420 }
 0x245   : > { %v1620_v48 = vmul.f32 %v2417_v63, %v6616_v13  ;;  %v1621_v40 = vmul.f32 %v2417_v63, %v6618_v41  ;;  %v1795_v13 = vmul.f32 %v4061_v57, %v1619_v4  ;;  %2124 = vst [vmem:[%s4552_s26 + $0x3b0] sm:$0xff] %v1980_v62  ;;  %v6623_v58 = vsub.f32 %v6573_v43, %v6572_v16  ;;  %v2423_v26 = vpop.eup %2422 }
 0x246   : > { %v1623_v22 = vmul.f32 %v2417_v63, %v6622_v29  ;;  %v6624_v1 = vsub.f32 %v6574_v21, %v6572_v16  ;;  %v1798_v20 = vmul.f32 %v6348_v54, %v1622_v39  ;;  %v1970_v36 = vadd.f32 %v6355_v44, %v1794_v51 }
 0x247   : > { %v1796_v41 = vmul.f32 %v4063_v42, %v1620_v48  ;;  %v1797_v28 = vmul.f32 %v4065_v38, %v1621_v40  ;;  %v1636_v32 = vmul.f32 %v2419_v11, %v6623_v58  ;;  %v1971_v62 = vadd.f32 %v6356_v37, %v1795_v13 }
 0x248   : > { %v1637_v63 = vmul.f32 %v2419_v11, %v6624_v1  ;;  %v1799_v4 = vmul.f32 %v6349_v52, %v1623_v22  ;;  %v6625_v21 = vsub.f32 %v6575_v45, %v6572_v16  ;;  %v6626_v7 = vsub.f32 %v6576_v49, %v6572_v16  ;;  %2114 = vst [vmem:[%s4552_s26 + $0x360] sm:$0xff] %v1970_v36  ;;  %v5445_v22 = vpop.eup %2424 }
 0x249   : > { %v1972_v43 = vadd.f32 %v6357_v18, %v1796_v41  ;;  %v1973_v10 = vadd.f32 %v6358_v56, %v1797_v28  ;;  %v1974_v53 = vadd.f32 %v6359_v24, %v1798_v20  ;;  %2115 = vst [vmem:[%s4552_s26 + $0x368] sm:$0xff] %v1971_v62  ;;  %v6627_v8 = vsub.f32 %v6577_v0, %v6572_v16 }
 0x24a   : > { %v1638_v48 = vmul.f32 %v2419_v11, %v6625_v21  ;;  %v1639_v40 = vmul.f32 %v2419_v11, %v6626_v7  ;;  %v1975_v51 = vadd.f32 %v6360_v33, %v1799_v4  ;;  %v6628_v45 = vsub.f32 %v6578_v27, %v6572_v16 }
 0x24b   : > { %v1640_v39 = vmul.f32 %v2419_v11, %v6627_v8  ;;  %2116 = vst [vmem:[%s4552_s26 + $0x370] sm:$0xff] %v1972_v43  ;;  %2117 = vst [vmem:[%s4552_s26 + $0x378] sm:$0xff] %v1973_v10  ;;  %v1812_v49 = vmul.f32 %v4059_v5, %v1636_v32  ;;  %v1813_v13 = vmul.f32 %v4061_v57, %v1637_v63 }
 0x24c   : > { %v1641_v29 = vmul.f32 %v2419_v11, %v6628_v45  ;;  %v1814_v41 = vmul.f32 %v4063_v42, %v1638_v48  ;;  %v1815_v28 = vmul.f32 %v4065_v38, %v1639_v40  ;;  %2118 = vst [vmem:[%s4552_s26 + $0x380] sm:$0xff] %v1974_v53  ;;  %2119 = vst [vmem:[%s4552_s26 + $0x388] sm:$0xff] %v1975_v51 }
 0x24d   : > { %v1816_v16 = vmul.f32 %v6348_v54, %v1640_v39  ;;  %v6629_v27 = vsub.f32 %v6579_v3, %v4486_v23  ;;  %v6630_v58 = vsub.f32 %v6580_v31, %v4486_v23  ;;  %v1988_v1 = vadd.f32 %v6355_v44, %v1812_v49 }
 0x24e   : > { %v1817_v0 = vmul.f32 %v6349_v52, %v1641_v29  ;;  %v1989_v63 = vadd.f32 %v6356_v37, %v1813_v13  ;;  %v1990_v20 = vadd.f32 %v6357_v18, %v1814_v41  ;;  %v1991_v4 = vadd.f32 %v6358_v56, %v1815_v28 }
 0x24f   : > { %v1630_v11 = vmul.f32 %v2421_v25, %v6629_v27  ;;  %v1631_v32 = vmul.f32 %v2421_v25, %v6630_v58  ;;  %v1992_v36 = vadd.f32 %v6359_v24, %v1816_v16  ;;  %v6631_v3 = vsub.f32 %v6581_v50, %v4486_v23  ;;  %2132 = vst [vmem:[%s4552_s26 + $0x3f0] sm:$0xff] %v1988_v1 }
 0x250   : > { %v1993_v62 = vadd.f32 %v6360_v33, %v1817_v0  ;;  %v6632_v31 = vsub.f32 %v6582_v14, %v4486_v23  ;;  %2133 = vst [vmem:[%s4552_s26 + $0x3f8] sm:$0xff] %v1989_v63  ;;  %2134 = vst [vmem:[%s4552_s26 + $0x400] sm:$0xff] %v1990_v20  ;;  %v6633_v21 = vsub.f32 %v6583_v55, %v4486_v23 }
 0x251   : > { %v1632_v43 = vmul.f32 %v2421_v25, %v6631_v3  ;;  %2135 = vst [vmem:[%s4552_s26 + $0x408] sm:$0xff] %v1991_v4  ;;  %v6634_v7 = vsub.f32 %v6584_v46, %v4486_v23  ;;  %v1806_v53 = vmul.f32 %v4059_v5, %v1630_v11  ;;  %v1807_v50 = vmul.f32 %v4061_v57, %v1631_v32 }
 0x252   : > { %v1633_v10 = vmul.f32 %v2421_v25, %v6632_v31  ;;  %v1634_v48 = vmul.f32 %v2421_v25, %v6633_v21  ;;  %2136 = vst [vmem:[%s4552_s26 + $0x410] sm:$0xff] %v1992_v36  ;;  %2137 = vst [vmem:[%s4552_s26 + $0x418] sm:$0xff] %v1993_v62  ;;  %v6635_v55 = vsub.f32 %v6585_v19, %v4497_v59 }
 0x253   : > { %v1635_v40 = vmul.f32 %v2421_v25, %v6634_v7  ;;  %v1808_v14 = vmul.f32 %v4063_v42, %v1632_v43  ;;  %v6636_v23 = vsub.f32 %v6586_v60, %v4497_v59  ;;  %v1982_v45 = vadd.f32 %v6355_v44, %v1806_v53 }
 0x254   : > { %v1809_v51 = vmul.f32 %v4065_v38, %v1633_v10  ;;  %v1648_v8 = vmul.f32 %v2423_v26, %v6635_v55  ;;  %v1810_v25 = vmul.f32 %v6348_v54, %v1634_v48  ;;  %v1983_v29 = vadd.f32 %v6356_v37, %v1807_v50 }
 0x255   : > { %v1649_v46 = vmul.f32 %v2423_v26, %v6636_v23  ;;  %v1811_v39 = vmul.f32 %v6349_v52, %v1635_v40  ;;  %v1984_v49 = vadd.f32 %v6357_v18, %v1808_v14  ;;  %v6637_v13 = vsub.f32 %v6587_v34, %v4497_v59  ;;  %2126 = vst [vmem:[%s4552_s26 + $0x3c0] sm:$0xff] %v1982_v45 }
 0x256   : > { %v1985_v19 = vadd.f32 %v6358_v56, %v1809_v51  ;;  %v6638_v41 = vsub.f32 %v6588_v6, %v4497_v59  ;;  %v1986_v16 = vadd.f32 %v6359_v24, %v1810_v25  ;;  %2127 = vst [vmem:[%s4552_s26 + $0x3c8] sm:$0xff] %v1983_v29  ;;  %v6639_v27 = vsub.f32 %v6589_v35, %v4497_v59 }
 0x257   : > { %v1650_v60 = vmul.f32 %v2423_v26, %v6637_v13  ;;  %v1987_v0 = vadd.f32 %v6360_v33, %v1811_v39  ;;  %v6640_v58 = vsub.f32 %v6590_v15, %v4497_v59  ;;  %2128 = vst [vmem:[%s4552_s26 + $0x3d0] sm:$0xff] %v1984_v49  ;;  %v1824_v32 = vmul.f32 %v4059_v5, %v1648_v8 }
 0x258   : > { %v1651_v28 = vmul.f32 %v2423_v26, %v6638_v41  ;;  %v1652_v11 = vmul.f32 %v2423_v26, %v6639_v27  ;;  %2129 = vst [vmem:[%s4552_s26 + $0x3d8] sm:$0xff] %v1985_v19  ;;  %v1825_v6 = vmul.f32 %v4061_v57, %v1649_v46  ;;  %2130 = vst [vmem:[%s4552_s26 + $0x3e0] sm:$0xff] %v1986_v16 }
 0x259   : > { %v1653_v34 = vmul.f32 %v2423_v26, %v6640_v58  ;;  %v1826_v1 = vmul.f32 %v4063_v42, %v1650_v60  ;;  %2131 = vst [vmem:[%s4552_s26 + $0x3e8] sm:$0xff] %v1987_v0  ;;  %v6641_v15 = vsub.f32 %v6591_v12, %v4501_v2  ;;  %v6642_v20 = vsub.f32 %v6592_v30, %v4501_v2 }
 0x25a   : > { %v1827_v63 = vmul.f32 %v4065_v38, %v1651_v28  ;;  %v1828_v35 = vmul.f32 %v6348_v54, %v1652_v11  ;;  %v2000_v36 = vadd.f32 %v6355_v44, %v1824_v32  ;;  %v2001_v62 = vadd.f32 %v6356_v37, %v1825_v6 }
 0x25b   : > { %v1829_v59 = vmul.f32 %v6349_v52, %v1653_v34  ;;  %v1642_v26 = vmul.f32 %v5445_v22, %v6641_v15  ;;  %v1643_v4 = vmul.f32 %v5445_v22, %v6642_v20  ;;  %v2002_v3 = vadd.f32 %v6357_v18, %v1826_v1 }
 0x25c   : > { %v2003_v43 = vadd.f32 %v6358_v56, %v1827_v63  ;;  %v2004_v12 = vadd.f32 %v6359_v24, %v1828_v35  ;;  %v6643_v30 = vsub.f32 %v6593_v61, %v4501_v2  ;;  %v6644_v21 = vsub.f32 %v6594_v47, %v4501_v2  ;;  %2144 = vst [vmem:[%s4552_s26 + $0x450] sm:$0xff] %v2000_v36 }
 0x25d   : > { %v2005_v31 = vadd.f32 %v6360_v33, %v1829_v59  ;;  %2145 = vst [vmem:[%s4552_s26 + $0x458] sm:$0xff] %v2001_v62  ;;  %2146 = vst [vmem:[%s4552_s26 + $0x460] sm:$0xff] %v2002_v3  ;;  %v6645_v7 = vsub.f32 %v6595_v9, %v4501_v2  ;;  %v6646_v61 = vsub.f32 %v6605_v17, %v4501_v2 }
 0x25e   : > { %v1644_v10 = vmul.f32 %v5445_v22, %v6643_v30  ;;  %v1645_v48 = vmul.f32 %v5445_v22, %v6644_v21  ;;  %2147 = vst [vmem:[%s4552_s26 + $0x468] sm:$0xff] %v2003_v43  ;;  %v1818_v50 = vmul.f32 %v4059_v5, %v1642_v26  ;;  %v1819_v47 = vmul.f32 %v4061_v57, %v1643_v4 }
 0x25f   : > { %v1646_v40 = vmul.f32 %v5445_v22, %v6645_v7  ;;  %v1647_v53 = vmul.f32 %v5445_v22, %v6646_v61  ;;  %2148 = vst [vmem:[%s4552_s26 + $0x470] sm:$0xff] %v2004_v12  ;;  %2149 = vst [vmem:[%s4552_s26 + $0x478] sm:$0xff] %v2005_v31 }
 0x260   : > { %v1820_v9 = vmul.f32 %v4063_v42, %v1644_v10  ;;  %v1821_v14 = vmul.f32 %v4065_v38, %v1645_v48  ;;  %v1994_v57 = vadd.f32 %v6355_v44, %v1818_v50  ;;  %v1995_v17 = vadd.f32 %v6356_v37, %v1819_v47 }
 0x261   : > { %v1822_v2 = vmul.f32 %v6348_v54, %v1646_v40  ;;  %v1823_v5 = vmul.f32 %v6349_v52, %v1647_v53 }
 0x262   : > { %v1996_v22 = vadd.f32 %v6357_v18, %v1820_v9  ;;  %v1997_v51 = vadd.f32 %v6358_v56, %v1821_v14  ;;  %2138 = vst [vmem:[%s4552_s26 + $0x420] sm:$0xff] %v1994_v57  ;;  %2139 = vst [vmem:[%s4552_s26 + $0x428] sm:$0xff] %v1995_v17 }
 0x263   : > { %v1998_v42 = vadd.f32 %v6359_v24, %v1822_v2  ;;  %v1999_v44 = vadd.f32 %v6360_v33, %v1823_v5 }
 0x264   : > { %2140 = vst [vmem:[%s4552_s26 + $0x430] sm:$0xff] %v1996_v22  ;;  %2141 = vst [vmem:[%s4552_s26 + $0x438] sm:$0xff] %v1997_v51 }
 0x265   : > { %2142 = vst [vmem:[%s4552_s26 + $0x440] sm:$0xff] %v1998_v42  ;;  %2143 = vst [vmem:[%s4552_s26 + $0x448] sm:$0xff] %v1999_v44 }
 0x266   : > { %2555 = shalt.err (!%p2552_p2)
}
 0x267   : > { %s2556_s12 = scalar_lea.hbm %s5580_s13, 18432  ;;  %s2560_s30 = scalar_lea.hbm %s5638_s4, 36864 }
 0x268   : > { %p2557_p1 = scmp.ne.s32.totalorder %s5580_s13, %s2556_s12  ;;  %p2561_p4 = scmp.lt.u32.totalorder %s5580_s13, %s5638_s4 }
 0x269   : > { %p2562_p5 = scmp.lt.u32.totalorder %s2560_s30, %s2556_s12  ;;  %p2564_p7 = scmp.lt.u32.totalorder %s2556_s12, %s5580_s13 }
 0x26a   : > { %p2558_p8 = pnand %p2557_p1, %p6647_p6 }
 0x26b   : > { %p2563_p0 = por %p2562_p5, %p2561_p4 }
 0x26c   : > { %p2559_p9 = pneg %p2558_p8 }
 0x26d   : > { %p2565_p12 = por %p2564_p7, %p2563_p0 }
 0x26f   : > { %p2566_p13 = pnand %p2565_p12, %p2559_p9 }
 0x271   : > { %2569 = shalt.err (!%p2566_p13)
}
 0x272   : > { %s2629_s23 = smov 768   ;;  %s2630_s26 = smov 48  }
 0x273   : > { %2311 = dma.vmem_to_hbm [thread:$0]  (%p6647_p6), %s5582_s19, 18432, %s5580_s13, %s2151_s9, %s2629_s23, %s2629_s23, %s2630_s26  }
 0x274 PF: > { %s2180_s25 = sand.u32 1, %s2608_s15   ;;  %p6648_p11 = scmp.ne.s32.totalorder %s5993_s28, 0 }
 0x275   : > { %p6649_p3 = scmp.ge.s32.totalorder %s2620_s18, 2  ;;  %s2181_s5 = scalar_lea.sflag [#allocation4], %s2180_s25 }
 0x277   : > { %p2328_p10 = pnand %p6649_p3, %p6648_p11 }
 0x279   : > { %2603 = dma.done.wait (!%p2328_p10), %s2181_s5, 18432  }
 0x27a   : > { %2605 = vsyncadd (!%p2328_p10), %s2181_s5, 4294948864  ;;  %p21_p2 = scmp.ge.s32.totalorder %s2681_s21, 4   ;;  %s6650_s15 = smov %s2612_s16 }
 0x27b   : > { %s6651_s16 = smov %s2616_s17  ;;  %s6652_s17 = smov %s2693_s24 }
 0x27c   : > { %s6653_s18 = smov %s2681_s21  ;;  %23 = sbr.rel (!%p21_p2) target bundleno = 10 (0xa), region = 102 }
 0x283   :  { %2186 = vsyncpa [#allocation3], 1 }
 0x284   :  { %2188 = vsyncpa [#allocation3 + $0x1], 1 }
 0x285   :  { %2189 = vsyncpa [#allocation6], 1 }
 0x286   :  { %2191 = vsyncpa [#allocation6 + $0x1], 1 }
 0x287   :  { %2192 = vsyncpa [#allocation9], 1 }
 0x288   :  { %2193 = vsyncpa [#allocation4], 1 }
 0x289   :  { %2195 = vsyncpa [#allocation4 + $0x1], 1 }

</bundles_post_ra>
